<compile_context>
chip_gen: v7x
topology: tpu7x:2x2x1
jax: 0.10.0
libtpu: 0.0.40
codegen_flags: <defaults>
</compile_context>

<pallas_src>
import functools

import jax
import jax.numpy as jnp
from jax.experimental import pallas as pl
from jax.experimental.pallas import tpu as pltpu

LANE = 128
GATE_ORDER = (0, 1, 3, 2)  # PyTorch gate blocks (i, f, g, o) -> packed (i, f, o, g)


def _round_up(x, m):
    return ((x + m - 1) // m) * m


def lstm_kernel(x_hbm, w_ih0_ref, w_ih_ref, w_hh_ref, b_ref, w_fc_ref, b_fc_ref,
                out_ref, x_scr, seq_scr, gates_scr, h_scr, c_scr, dma_sem,
                *, emit_prefetch, unroll):
    """Grid = (batch_tiles, num_layers), layer axis innermost ("arbitrary").

    x_scr     (2, T*Bt, Fp) bf16 : layer-0 input staging (double-buffered DMA).
    seq_scr   (T*Bt, Hp)    bf16 : layer input sequence (time-major); overwritten
                                   in place with this layer's hidden states.
    gates_scr (T*Bt, 4*Hp)  f32  : precomputed x @ W_ih + b for the sequence.
    h_scr/c_scr (Bt, Hp)    f32  : recurrent state (VMEM-resident, not vregs).
    """
    b_idx = pl.program_id(0)
    n_bt = pl.num_programs(0)
    l = pl.program_id(1)
    n_layers = pl.num_programs(1)

    Bt, Hp = h_scr.shape
    T = seq_scr.shape[0] // Bt

    slot = b_idx % 2

    def in_copy(tile, buf_slot):
        return pltpu.make_async_copy(x_hbm.at[tile], x_scr.at[buf_slot],
                                     dma_sem.at[buf_slot])

    # ---- layer-0 input staging (HBM -> VMEM) -------------------------------
    if emit_prefetch:
        # Tile b's copy is started during tile b-1's last layer and waited
        # here, so only tile 0's copy is exposed.  Needs a sequential batch
        # axis ("arbitrary"); for v7x dual-core sharding prefer parallel batch
        # and the non-prefetch path instead.
        @pl.when(jnp.logical_and(b_idx == 0, l == 0))
        def _():
            in_copy(0, 0).start()

        @pl.when(l == 0)
        def _():
            in_copy(b_idx, slot).wait()

        @pl.when(jnp.logical_and(l == n_layers - 1, b_idx + 1 < n_bt))
        def _():
            in_copy(b_idx + 1, 1 - slot).start()
    else:
        @pl.when(l == 0)
        def _():
            cp = in_copy(b_idx, slot)
            cp.start()
            cp.wait()

    # ---- whole-sequence input->gates precompute (one big MXU matmul) -------
    bias = b_ref[l]                                         # (1, 4*Hp) f32

    @pl.when(l == 0)
    def _():                                                # K = Fp
        gates_scr[...] = jnp.dot(x_scr[slot], w_ih0_ref[...],
                                 preferred_element_type=jnp.float32) + bias

    @pl.when(l > 0)
    def _():                                                # K = Hp
        li = jnp.maximum(l, 1) - 1                          # never index -1
        gates_scr[...] = jnp.dot(seq_scr[...], w_ih_ref[li],
                                 preferred_element_type=jnp.float32) + bias

    # ---- serial recurrence --------------------------------------------------
    h_scr[...] = jnp.zeros_like(h_scr)
    c_scr[...] = jnp.zeros_like(c_scr)
    write_seq = l < n_layers - 1        # last layer's hidden seq is never read

    def step(t, carry):
        r0 = pl.multiple_of(t * Bt, Bt)
        gates = gates_scr[pl.ds(r0, Bt), :] + jnp.dot(
            h_scr[...].astype(jnp.bfloat16), w_hh_ref[l],
            preferred_element_type=jnp.float32)
        # Gate layout (host-permuted/padded): [ i | f | o | g ], each Hp lanes.
        # One contiguous sigmoid slab + one tanh slab; all slices lane-aligned.
        sig = jax.nn.sigmoid(gates[:, :3 * Hp])
        i_g = sig[:, 0 * Hp:1 * Hp]
        f_g = sig[:, 1 * Hp:2 * Hp]
        o_g = sig[:, 2 * Hp:3 * Hp]
        g_g = jnp.tanh(gates[:, 3 * Hp:4 * Hp])
        c_new = f_g * c_scr[...] + i_g * g_g
        h_new = o_g * jnp.tanh(c_new)
        c_scr[...] = c_new
        h_scr[...] = h_new

        @pl.when(write_seq)      # hidden sequence feeds the next layer's matmul
        def _():
            seq_scr[pl.ds(r0, Bt), :] = h_new.astype(seq_scr.dtype)

        return carry

    jax.lax.fori_loop(0, T, step, 0, unroll=unroll)

    # ---- final layer: fc on the last timestep's hidden state ----------------
    # NOTE: the output block index depends only on b, so this relies on
    # output-block revisiting across the ("arbitrary") layer axis; the block is
    # flushed to HBM when b changes / at kernel end.
    @pl.when(l == n_layers - 1)
    def _():
        out_ref[...] = (jnp.dot(h_scr[...].astype(jnp.bfloat16), w_fc_ref[...],
                                preferred_element_type=jnp.float32)
                        + b_fc_ref[...])


def lstm_forward(x, params, *, hidden_size, num_layers, output_size,
                 batch_tile=None, time_unroll=8):
    B, T, F = x.shape
    H = hidden_size
    O = output_size
    L = num_layers

    Hp = _round_up(H, LANE)            # recurrent K dim & per-gate slab width
    Fp = _round_up(max(F, 1), LANE)    # layer-0 K dim (kept separate from Hp)

    if batch_tile is None:
        Bt = 128 if B >= 128 else _round_up(B, 16)
    else:
        Bt = batch_tile
    assert Bt % 16 == 0, "batch tile must be a multiple of 16 (bf16 sublanes)"
    B_pad = _round_up(B, Bt)
    n_bt = B_pad // Bt

    # ---- pack input: pad batch/features, time-major, contiguous batch tiles.
    # x_hbm[bt, t*Bt + bb, :] = x[bt*Bt + bb, t, :]   (bf16, stays in HBM).
    x_pad = jnp.zeros((B_pad, T, Fp), jnp.float32).at[:B, :, :F].set(x)
    x_hbm = (jnp.transpose(x_pad, (1, 0, 2))            # (T, B_pad, Fp)
             .reshape(T, n_bt, Bt, Fp)
             .transpose(1, 0, 2, 3)
             .reshape(n_bt, T * Bt, Fp)
             .astype(jnp.bfloat16))

    # ---- pack weights: transpose, permute gates to (i, f, o, g), pad each
    # gate slab to Hp lanes so every per-step slice is lane-tile aligned.
    def pack_matrix(W, k_pad):                          # (4H, k) -> (k_pad, 4Hp)
        out = jnp.zeros((k_pad, 4 * Hp), jnp.float32)
        k = W.shape[1]
        for s, g in enumerate(GATE_ORDER):
            out = out.at[:k, s * Hp:s * Hp + H].set(W[g * H:(g + 1) * H, :].T)
        return out.astype(jnp.bfloat16)

    def pack_bias(b):                                   # (4H,) -> (1, 4Hp)
        out = jnp.zeros((1, 4 * Hp), jnp.float32)
        for s, g in enumerate(GATE_ORDER):
            out = out.at[0, s * Hp:s * Hp + H].set(b[g * H:(g + 1) * H])
        return out

    w_ih0 = pack_matrix(params["weight_ih_l0"], Fp)                  # (Fp, 4Hp)
    if L > 1:
        w_ih_rest = jnp.stack([pack_matrix(params[f"weight_ih_l{l}"], Hp)
                               for l in range(1, L)])                # (L-1, Hp, 4Hp)
    else:
        w_ih_rest = jnp.zeros((1, Hp, 4 * Hp), jnp.bfloat16)         # dummy, never read
    w_hh_all = jnp.stack([pack_matrix(params[f"weight_hh_l{l}"], Hp)
                          for l in range(L)])                        # (L, Hp, 4Hp)
    b_all = jnp.stack([pack_bias(params[f"bias_ih_l{l}"] + params[f"bias_hh_l{l}"])
                       for l in range(L)])                           # (L, 1, 4Hp)
    w_fc = (jnp.zeros((Hp, O), jnp.float32)
            .at[:H, :].set(params["fc_weight"].T).astype(jnp.bfloat16))
    b_fc = params["fc_bias"][None, :].astype(jnp.float32)

    L_rest = w_ih_rest.shape[0]

    emit_prefetch = n_bt > 1
    unroll = True if T <= 32 else min(time_unroll, T)

    # VMEM budget: scratch + (double-buffered) resident weights + out block.
    scratch_bytes = (2 * T * Bt * Fp * 2 + T * Bt * Hp * 2
                     + T * Bt * 4 * Hp * 4 + 2 * Bt * Hp * 4)
    weight_bytes = 2 * (Fp * 4 * Hp * 2 + (L_rest + L) * Hp * 4 * Hp * 2
                        + L * 4 * Hp * 4 + Hp * O * 2 + O * 4 + Bt * O * 4)
    vmem_limit = max(32 << 20,
                     min(128 << 20,
                         int(1.25 * (scratch_bytes + weight_bytes)) + (2 << 20)))

    kernel = functools.partial(lstm_kernel, emit_prefetch=emit_prefetch,
                               unroll=unroll)

    out = pl.pallas_call(
        kernel,
        out_shape=jax.ShapeDtypeStruct((B_pad, O), jnp.float32),
        grid_spec=pltpu.PrefetchScalarGridSpec(
            num_scalar_prefetch=0,
            grid=(n_bt, L),
            in_specs=[
                pl.BlockSpec(memory_space=pl.ANY),                         # x (HBM)
                pl.BlockSpec((Fp, 4 * Hp), lambda b, l: (0, 0)),           # W_ih layer 0
                pl.BlockSpec((L_rest, Hp, 4 * Hp), lambda b, l: (0, 0, 0)),  # W_ih 1..L-1
                pl.BlockSpec((L, Hp, 4 * Hp), lambda b, l: (0, 0, 0)),     # W_hh (all L)
                pl.BlockSpec((L, 1, 4 * Hp), lambda b, l: (0, 0, 0)),      # bias (all L)
                pl.BlockSpec((Hp, O), lambda b, l: (0, 0)),                # fc weight
                pl.BlockSpec((1, O), lambda b, l: (0, 0)),                 # fc bias
            ],
            out_specs=pl.BlockSpec((Bt, O), lambda b, l: (b, 0)),
            scratch_shapes=[
                pltpu.VMEM((2, T * Bt, Fp), jnp.bfloat16),   # layer-0 input staging
                pltpu.VMEM((T * Bt, Hp), jnp.bfloat16),      # layer i/o hidden sequence
                pltpu.VMEM((T * Bt, 4 * Hp), jnp.float32),   # precomputed gates_x
                pltpu.VMEM((Bt, Hp), jnp.float32),           # h
                pltpu.VMEM((Bt, Hp), jnp.float32),           # c
                pltpu.SemaphoreType.DMA((2,)),               # input-staging DMA sems
            ],
        ),
        compiler_params=pltpu.CompilerParams(
            # Cross-tile input prefetch needs a sequential batch axis; without
            # it the batch axis is "parallel" so v7x's two TensorCores can
            # split independent batch shards.
            dimension_semantics=("arbitrary" if emit_prefetch else "parallel",
                                 "arbitrary"),
            vmem_limit_bytes=vmem_limit,
        ),
    )(x_hbm, w_ih0, w_ih_rest, w_hh_all, b_all, w_fc, b_fc)

    return out[:B]


def lstm_ref(x, params, *, hidden_size, num_layers):
    """Pure-JAX f32 reference matching nn.LSTM(batch_first) + Linear (eval)."""
    B, T, _ = x.shape
    H = hidden_size
    h_seq = x
    for l in range(num_layers):
        W_ih = params[f"weight_ih_l{l}"]
        W_hh = params[f"weight_hh_l{l}"]
        b = params[f"bias_ih_l{l}"] + params[f"bias_hh_l{l}"]
        h = jnp.zeros((B, H), jnp.float32)
        c = jnp.zeros((B, H), jnp.float32)
        outs = []
        for t in range(T):
            gates = h_seq[:, t] @ W_ih.T + h @ W_hh.T + b
            i = jax.nn.sigmoid(gates[:, :H])
            f = jax.nn.sigmoid(gates[:, H:2 * H])
            g = jnp.tanh(gates[:, 2 * H:3 * H])
            o = jax.nn.sigmoid(gates[:, 3 * H:])
            c = f * c + i * g
            h = o * jnp.tanh(c)
            outs.append(h)
        h_seq = jnp.stack(outs, axis=1)
    return h_seq[:, -1] @ params["fc_weight"].T + params["fc_bias"]


def init_params(key, *, input_size, hidden_size, num_layers, output_size):
    """Deterministic init matching PyTorch's U(-1/sqrt(H), 1/sqrt(H)) shapes."""
    H = hidden_size
    k = 1.0 / (H ** 0.5)
    params = {}
    for l in range(num_layers):
        in_dim = input_size if l == 0 else H
        key, k0, k1, k2, k3 = jax.random.split(key, 5)
        params[f"weight_ih_l{l}"] = jax.random.uniform(
            k0, (4 * H, in_dim), jnp.float32, -k, k)
        params[f"weight_hh_l{l}"] = jax.random.uniform(
            k1, (4 * H, H), jnp.float32, -k, k)
        params[f"bias_ih_l{l}"] = jax.random.uniform(
            k2, (4 * H,), jnp.float32, -k, k)
        params[f"bias_hh_l{l}"] = jax.random.uniform(
            k3, (4 * H,), jnp.float32, -k, k)
    key, kf0, kf1 = jax.random.split(key, 3)
    params["fc_weight"] = jax.random.uniform(
        kf0, (output_size, H), jnp.float32, -k, k)
    params["fc_bias"] = jax.random.uniform(
        kf1, (output_size,), jnp.float32, -k, k)
    return params


if __name__ == "__main__":
    B, T, F = 2, 8, 4           # batch, seq, input features
    H, L, O = 32, 2, 1          # hidden, num_layers, output_size (small shapes)

    key = jax.random.PRNGKey(0)
    key, kx = jax.random.split(key)
    x = jax.random.normal(kx, (B, T, F), jnp.float32)
    params = init_params(key, input_size=F, hidden_size=H,
                         num_layers=L, output_size=O)

    out = lstm_forward(x, params, hidden_size=H, num_layers=L, output_size=O)
    out = jax.block_until_ready(out)

    ref = lstm_ref(x, params, hidden_size=H, num_layers=L)
    assert out.shape == (B, O)
    # bf16 matmuls vs f32 reference -> loosened tolerance.
    assert jnp.allclose(out, ref, rtol=5e-2, atol=5e-2), (out, ref)

    print("KERNEL_OK")
</pallas_src>

<mosaic_0001>
module attributes {stable_mosaic.version = 11 : i64} {
  func.func @lstm_kernel(%arg0: i32, %arg1: i32, %arg2: memref<1x128x128xbf16, #tpu.memory_space<any>>, %arg3: memref<128x512xbf16, #tpu.memory_space<vmem>>, %arg4: memref<1x128x512xbf16, #tpu.memory_space<vmem>>, %arg5: memref<2x128x512xbf16, #tpu.memory_space<vmem>>, %arg6: memref<2x1x512xf32, #tpu.memory_space<vmem>>, %arg7: memref<128x1xbf16, #tpu.memory_space<vmem>>, %arg8: memref<1x1xf32, #tpu.memory_space<vmem>>, %arg9: memref<16x1xf32, #tpu.memory_space<vmem>>, %arg10: memref<2x128x128xbf16, #tpu.memory_space<vmem>>, %arg11: memref<128x128xbf16, #tpu.memory_space<vmem>>, %arg12: memref<128x512xf32, #tpu.memory_space<vmem>>, %arg13: memref<16x128xf32, #tpu.memory_space<vmem>>, %arg14: memref<16x128xf32, #tpu.memory_space<vmem>>, %arg15: memref<2x!tpu.dma_semaphore, #tpu.memory_space<semaphore_mem>>) attributes {dimension_semantics = [#tpu.dimension_semantics<parallel>, #tpu.dimension_semantics<arbitrary>], iteration_bounds = array<i64: 1, 2>, scalar_prefetch = 0 : i64, scratch_operands = 6 : i64, tpu.core_type = #tpu.core_type<tc>, window_params = [{}, {pipeline_mode = #tpu.pipeline_mode<synchronous>, transform_indices = @transform_1, window_bounds = array<i64: 128, 512>}, {pipeline_mode = #tpu.pipeline_mode<synchronous>, transform_indices = @transform_2, window_bounds = array<i64: 1, 128, 512>}, {pipeline_mode = #tpu.pipeline_mode<synchronous>, transform_indices = @transform_3, window_bounds = array<i64: 2, 128, 512>}, {pipeline_mode = #tpu.pipeline_mode<synchronous>, transform_indices = @transform_4, window_bounds = array<i64: 2, 1, 512>}, {pipeline_mode = #tpu.pipeline_mode<synchronous>, transform_indices = @transform_5, window_bounds = array<i64: 128, 1>}, {pipeline_mode = #tpu.pipeline_mode<synchronous>, transform_indices = @transform_6, window_bounds = array<i64: 1, 1>}, {transform_indices = @transform_7, window_bounds = array<i64: 16, 1>}]} {
    %c2_i32 = arith.constant 2 : i32
    %c0_i32 = arith.constant 0 : i32
    %0 = arith.cmpi eq, %c2_i32, %c0_i32 : i32
    %c1_i32 = arith.constant 1 : i32
    %1 = arith.select %0, %c1_i32, %c2_i32 : i32
    %2 = arith.remsi %arg0, %1 : i32
    %c0_i32_0 = arith.constant 0 : i32
    %3 = arith.cmpi ne, %2, %c0_i32_0 : i32
    %c0_i32_1 = arith.constant 0 : i32
    %4 = arith.cmpi slt, %2, %c0_i32_1 : i32
    %c0_i32_2 = arith.constant 0 : i32
    %5 = arith.cmpi slt, %1, %c0_i32_2 : i32
    %6 = arith.xori %4, %5 : i1
    %7 = arith.andi %6, %3 : i1
    %8 = arith.addi %2, %1 : i32
    %9 = arith.select %7, %8, %2 : i32
    %c0_i32_3 = arith.constant 0 : i32
    %10 = arith.cmpi eq, %arg1, %c0_i32_3 : i32
    %11 = arith.extui %10 : i1 to i32
    %c0_i32_4 = arith.constant 0 : i32
    %12 = arith.cmpi ne, %11, %c0_i32_4 : i32
    scf.if %12 {
      %c0_i32_140 = arith.constant 0 : i32
      %c0_i32_141 = arith.constant 0 : i32
      %286 = tpu.memref_slice %arg2[%arg0, %c0_i32_140, %c0_i32_141] : memref<1x128x128xbf16, #tpu.memory_space<any>> -> memref<1x128x128xbf16, #tpu.memory_space<any>>
      %287 = tpu.memref_squeeze %286 : memref<1x128x128xbf16, #tpu.memory_space<any>> -> memref<128x128xbf16, #tpu.memory_space<any>>
      %c0_i32_142 = arith.constant 0 : i32
      %c0_i32_143 = arith.constant 0 : i32
      %288 = tpu.memref_slice %arg10[%9, %c0_i32_142, %c0_i32_143] : memref<2x128x128xbf16, #tpu.memory_space<vmem>> -> memref<1x128x128xbf16, #tpu.memory_space<vmem>>
      %289 = tpu.memref_squeeze %288 : memref<1x128x128xbf16, #tpu.memory_space<vmem>> -> memref<128x128xbf16, #tpu.memory_space<vmem>>
      %290 = tpu.memref_slice %arg15[%9] : memref<2x!tpu.dma_semaphore, #tpu.memory_space<semaphore_mem>> -> memref<1x!tpu.dma_semaphore, #tpu.memory_space<semaphore_mem>>
      %291 = tpu.memref_squeeze %290 : memref<1x!tpu.dma_semaphore, #tpu.memory_space<semaphore_mem>> -> memref<!tpu.dma_semaphore, #tpu.memory_space<semaphore_mem>>
      tpu.enqueue_dma source(%287 : memref<128x128xbf16, #tpu.memory_space<any>>) target(%289 : memref<128x128xbf16, #tpu.memory_space<vmem>>) target_semaphore(%291 : memref<!tpu.dma_semaphore, #tpu.memory_space<semaphore_mem>>)
      %c0_i32_144 = arith.constant 0 : i32
      %c0_i32_145 = arith.constant 0 : i32
      %292 = tpu.memref_slice %arg2[%arg0, %c0_i32_144, %c0_i32_145] : memref<1x128x128xbf16, #tpu.memory_space<any>> -> memref<1x128x128xbf16, #tpu.memory_space<any>>
      %293 = tpu.memref_squeeze %292 : memref<1x128x128xbf16, #tpu.memory_space<any>> -> memref<128x128xbf16, #tpu.memory_space<any>>
      %c0_i32_146 = arith.constant 0 : i32
      %c0_i32_147 = arith.constant 0 : i32
      %294 = tpu.memref_slice %arg10[%9, %c0_i32_146, %c0_i32_147] : memref<2x128x128xbf16, #tpu.memory_space<vmem>> -> memref<1x128x128xbf16, #tpu.memory_space<vmem>>
      %295 = tpu.memref_squeeze %294 : memref<1x128x128xbf16, #tpu.memory_space<vmem>> -> memref<128x128xbf16, #tpu.memory_space<vmem>>
      %296 = tpu.memref_slice %arg15[%9] : memref<2x!tpu.dma_semaphore, #tpu.memory_space<semaphore_mem>> -> memref<1x!tpu.dma_semaphore, #tpu.memory_space<semaphore_mem>>
      %297 = tpu.memref_squeeze %296 : memref<1x!tpu.dma_semaphore, #tpu.memory_space<semaphore_mem>> -> memref<!tpu.dma_semaphore, #tpu.memory_space<semaphore_mem>>
      tpu.wait_dma2 semaphore(%297 : memref<!tpu.dma_semaphore, #tpu.memory_space<semaphore_mem>>) src(%293 : memref<128x128xbf16, #tpu.memory_space<any>>) dst(%295 : memref<128x128xbf16, #tpu.memory_space<vmem>>)
    } else {
    }
    %13 = arith.index_cast %arg1 : i32 to index
    %c0 = arith.constant 0 : index
    %c0_5 = arith.constant 0 : index
    %14 = vector.load %arg6[%13, %c0, %c0_5] : memref<2x1x512xf32, #tpu.memory_space<vmem>>, vector<1x1x512xf32>
    %15 = vector.shape_cast %14 : vector<1x1x512xf32> to vector<1x512xf32>
    %c0_i32_6 = arith.constant 0 : i32
    %16 = arith.cmpi eq, %arg1, %c0_i32_6 : i32
    %17 = arith.extui %16 : i1 to i32
    %c0_i32_7 = arith.constant 0 : i32
    %18 = arith.cmpi ne, %17, %c0_i32_7 : i32
    scf.if %18 {
      %286 = arith.index_cast %9 : i32 to index
      %c0_140 = arith.constant 0 : index
      %c0_141 = arith.constant 0 : index
      %287 = vector.load %arg10[%286, %c0_140, %c0_141] : memref<2x128x128xbf16, #tpu.memory_space<vmem>>, vector<1x128x128xbf16>
      %288 = vector.shape_cast %287 : vector<1x128x128xbf16> to vector<128x128xbf16>
      %c0_142 = arith.constant 0 : index
      %c0_143 = arith.constant 0 : index
      %289 = vector.load %arg3[%c0_142, %c0_143] : memref<128x512xbf16, #tpu.memory_space<vmem>>, vector<128x512xbf16>
      %cst_144 = arith.constant dense<0.000000e+00> : vector<128x512xf32>
      %290 = tpu.matmul %288, %289, %cst_144 {dimension_numbers = #tpu.dot_dimension_numbers<[1], [0], [0], [1], [0, 0, 1, 1], [], []>} : vector<128x128xbf16>, vector<128x512xbf16>, vector<128x512xf32> -> vector<128x512xf32>
      %291 = vector.broadcast %15 : vector<1x512xf32> to vector<128x512xf32>
      %292 = arith.addf %290, %291 : vector<128x512xf32>
      %c0_145 = arith.constant 0 : index
      %c0_146 = arith.constant 0 : index
      %293 = vector.load %arg12[%c0_145, %c0_146] : memref<128x512xf32, #tpu.memory_space<vmem>>, vector<128x512xf32>
      tpu.vector_store %arg12[%c0_145, %c0_146], %292 {strides = array<i32>} : memref<128x512xf32, #tpu.memory_space<vmem>>, vector<128x512xf32>,
    } else {
    }
    %c0_i32_8 = arith.constant 0 : i32
    %19 = arith.cmpi sgt, %arg1, %c0_i32_8 : i32
    %20 = arith.extui %19 : i1 to i32
    %c0_i32_9 = arith.constant 0 : i32
    %21 = arith.cmpi ne, %20, %c0_i32_9 : i32
    scf.if %21 {
      %c1_i32_140 = arith.constant 1 : i32
      %286 = arith.maxsi %arg1, %c1_i32_140 : i32
      %c1_i32_141 = arith.constant 1 : i32
      %287 = arith.subi %286, %c1_i32_141 : i32
      %c0_142 = arith.constant 0 : index
      %c0_143 = arith.constant 0 : index
      %288 = vector.load %arg11[%c0_142, %c0_143] : memref<128x128xbf16, #tpu.memory_space<vmem>>, vector<128x128xbf16>
      %289 = arith.index_cast %287 : i32 to index
      %c0_144 = arith.constant 0 : index
      %c0_145 = arith.constant 0 : index
      %290 = vector.load %arg4[%289, %c0_144, %c0_145] : memref<1x128x512xbf16, #tpu.memory_space<vmem>>, vector<1x128x512xbf16>
      %291 = vector.shape_cast %290 : vector<1x128x512xbf16> to vector<128x512xbf16>
      %cst_146 = arith.constant dense<0.000000e+00> : vector<128x512xf32>
      %292 = tpu.matmul %288, %291, %cst_146 {dimension_numbers = #tpu.dot_dimension_numbers<[1], [0], [0], [1], [0, 0, 1, 1], [], []>} : vector<128x128xbf16>, vector<128x512xbf16>, vector<128x512xf32> -> vector<128x512xf32>
      %293 = vector.broadcast %15 : vector<1x512xf32> to vector<128x512xf32>
      %294 = arith.addf %292, %293 : vector<128x512xf32>
      %c0_147 = arith.constant 0 : index
      %c0_148 = arith.constant 0 : index
      %295 = vector.load %arg12[%c0_147, %c0_148] : memref<128x512xf32, #tpu.memory_space<vmem>>, vector<128x512xf32>
      tpu.vector_store %arg12[%c0_147, %c0_148], %294 {strides = array<i32>} : memref<128x512xf32, #tpu.memory_space<vmem>>, vector<128x512xf32>,
    } else {
    }
    %cst = arith.constant 0.000000e+00 : f32
    %22 = vector.broadcast %cst : f32 to vector<16x128xf32>
    %c0_10 = arith.constant 0 : index
    %c0_11 = arith.constant 0 : index
    %23 = vector.load %arg13[%c0_10, %c0_11] : memref<16x128xf32, #tpu.memory_space<vmem>>, vector<16x128xf32>
    tpu.vector_store %arg13[%c0_10, %c0_11], %22 {strides = array<i32>} : memref<16x128xf32, #tpu.memory_space<vmem>>, vector<16x128xf32>,
    %cst_12 = arith.constant 0.000000e+00 : f32
    %24 = vector.broadcast %cst_12 : f32 to vector<16x128xf32>
    %c0_13 = arith.constant 0 : index
    %c0_14 = arith.constant 0 : index
    %25 = vector.load %arg14[%c0_13, %c0_14] : memref<16x128xf32, #tpu.memory_space<vmem>>, vector<16x128xf32>
    tpu.vector_store %arg14[%c0_13, %c0_14], %24 {strides = array<i32>} : memref<16x128xf32, #tpu.memory_space<vmem>>, vector<16x128xf32>,
    %c1_i32_15 = arith.constant 1 : i32
    %26 = arith.cmpi slt, %arg1, %c1_i32_15 : i32
    %c0_i32_16 = arith.constant 0 : i32
    %c16_i32 = arith.constant 16 : i32
    %27 = arith.muli %c0_i32_16, %c16_i32 : i32
    %28 = tpu.assume_multiple %27, 16 : i32
    %29 = arith.index_cast %28 : i32 to index
    %c0_17 = arith.constant 0 : index
    %30 = vector.load %arg12[%29, %c0_17] : memref<128x512xf32, #tpu.memory_space<vmem>>, vector<16x512xf32>
    %c0_18 = arith.constant 0 : index
    %c0_19 = arith.constant 0 : index
    %31 = vector.load %arg13[%c0_18, %c0_19] : memref<16x128xf32, #tpu.memory_space<vmem>>, vector<16x128xf32>
    %32 = arith.truncf %31 : vector<16x128xf32> to vector<16x128xbf16>
    %33 = arith.index_cast %arg1 : i32 to index
    %c0_20 = arith.constant 0 : index
    %c0_21 = arith.constant 0 : index
    %34 = vector.load %arg5[%33, %c0_20, %c0_21] : memref<2x128x512xbf16, #tpu.memory_space<vmem>>, vector<1x128x512xbf16>
    %35 = vector.shape_cast %34 : vector<1x128x512xbf16> to vector<128x512xbf16>
    %cst_22 = arith.constant dense<0.000000e+00> : vector<16x512xf32>
    %36 = tpu.matmul %32, %35, %cst_22 {dimension_numbers = #tpu.dot_dimension_numbers<[1], [0], [0], [1], [0, 0, 1, 1], [], []>} : vector<16x128xbf16>, vector<128x512xbf16>, vector<16x512xf32> -> vector<16x512xf32>
    %37 = arith.addf %30, %36 : vector<16x512xf32>
    %38 = vector.extract_strided_slice %37 {offsets = [0, 0], sizes = [16, 384], strides = [1, 1]} : vector<16x512xf32> to vector<16x384xf32>
    %39 = arith.negf %38 : vector<16x384xf32>
    %40 = math.exp %39 : vector<16x384xf32>
    %cst_23 = arith.constant 1.000000e+00 : f32
    %41 = vector.broadcast %cst_23 : f32 to vector<16x384xf32>
    %42 = arith.addf %41, %40 : vector<16x384xf32>
    %43 = arith.divf %41, %42 : vector<16x384xf32>
    %44 = vector.extract_strided_slice %43 {offsets = [0, 0], sizes = [16, 128], strides = [1, 1]} : vector<16x384xf32> to vector<16x128xf32>
    %45 = vector.extract_strided_slice %43 {offsets = [0, 128], sizes = [16, 128], strides = [1, 1]} : vector<16x384xf32> to vector<16x128xf32>
    %46 = vector.extract_strided_slice %43 {offsets = [0, 256], sizes = [16, 128], strides = [1, 1]} : vector<16x384xf32> to vector<16x128xf32>
    %47 = vector.extract_strided_slice %37 {offsets = [0, 384], sizes = [16, 128], strides = [1, 1]} : vector<16x512xf32> to vector<16x128xf32>
    %48 = math.tanh %47 : vector<16x128xf32>
    %c0_24 = arith.constant 0 : index
    %c0_25 = arith.constant 0 : index
    %49 = vector.load %arg14[%c0_24, %c0_25] : memref<16x128xf32, #tpu.memory_space<vmem>>, vector<16x128xf32>
    %50 = arith.mulf %45, %49 : vector<16x128xf32>
    %51 = arith.mulf %44, %48 : vector<16x128xf32>
    %52 = arith.addf %50, %51 : vector<16x128xf32>
    %53 = math.tanh %52 : vector<16x128xf32>
    %54 = arith.mulf %46, %53 : vector<16x128xf32>
    %c0_26 = arith.constant 0 : index
    %c0_27 = arith.constant 0 : index
    %55 = vector.load %arg14[%c0_26, %c0_27] : memref<16x128xf32, #tpu.memory_space<vmem>>, vector<16x128xf32>
    tpu.vector_store %arg14[%c0_26, %c0_27], %52 {strides = array<i32>} : memref<16x128xf32, #tpu.memory_space<vmem>>, vector<16x128xf32>,
    %c0_28 = arith.constant 0 : index
    %c0_29 = arith.constant 0 : index
    %56 = vector.load %arg13[%c0_28, %c0_29] : memref<16x128xf32, #tpu.memory_space<vmem>>, vector<16x128xf32>
    tpu.vector_store %arg13[%c0_28, %c0_29], %54 {strides = array<i32>} : memref<16x128xf32, #tpu.memory_space<vmem>>, vector<16x128xf32>,
    %57 = arith.extui %26 : i1 to i32
    %c0_i32_30 = arith.constant 0 : i32
    %58 = arith.cmpi ne, %57, %c0_i32_30 : i32
    scf.if %58 {
      %286 = arith.truncf %54 : vector<16x128xf32> to vector<16x128xbf16>
      %287 = arith.index_cast %28 : i32 to index
      %c0_140 = arith.constant 0 : index
      %288 = vector.load %arg11[%287, %c0_140] : memref<128x128xbf16, #tpu.memory_space<vmem>>, vector<16x128xbf16>
      tpu.vector_store %arg11[%287, %c0_140], %286 {strides = array<i32>} : memref<128x128xbf16, #tpu.memory_space<vmem>>, vector<16x128xbf16>,
    } else {
    }
    %c1_i32_31 = arith.constant 1 : i32
    %c16_i32_32 = arith.constant 16 : i32
    %59 = arith.muli %c1_i32_31, %c16_i32_32 : i32
    %60 = tpu.assume_multiple %59, 16 : i32
    %61 = arith.index_cast %60 : i32 to index
    %c0_33 = arith.constant 0 : index
    %62 = vector.load %arg12[%61, %c0_33] : memref<128x512xf32, #tpu.memory_space<vmem>>, vector<16x512xf32>
    %c0_34 = arith.constant 0 : index
    %c0_35 = arith.constant 0 : index
    %63 = vector.load %arg13[%c0_34, %c0_35] : memref<16x128xf32, #tpu.memory_space<vmem>>, vector<16x128xf32>
    %64 = arith.truncf %63 : vector<16x128xf32> to vector<16x128xbf16>
    %65 = arith.index_cast %arg1 : i32 to index
    %c0_36 = arith.constant 0 : index
    %c0_37 = arith.constant 0 : index
    %66 = vector.load %arg5[%65, %c0_36, %c0_37] : memref<2x128x512xbf16, #tpu.memory_space<vmem>>, vector<1x128x512xbf16>
    %67 = vector.shape_cast %66 : vector<1x128x512xbf16> to vector<128x512xbf16>
    %cst_38 = arith.constant dense<0.000000e+00> : vector<16x512xf32>
    %68 = tpu.matmul %64, %67, %cst_38 {dimension_numbers = #tpu.dot_dimension_numbers<[1], [0], [0], [1], [0, 0, 1, 1], [], []>} : vector<16x128xbf16>, vector<128x512xbf16>, vector<16x512xf32> -> vector<16x512xf32>
    %69 = arith.addf %62, %68 : vector<16x512xf32>
    %70 = vector.extract_strided_slice %69 {offsets = [0, 0], sizes = [16, 384], strides = [1, 1]} : vector<16x512xf32> to vector<16x384xf32>
    %71 = arith.negf %70 : vector<16x384xf32>
    %72 = math.exp %71 : vector<16x384xf32>
    %cst_39 = arith.constant 1.000000e+00 : f32
    %73 = vector.broadcast %cst_39 : f32 to vector<16x384xf32>
    %74 = arith.addf %73, %72 : vector<16x384xf32>
    %75 = arith.divf %73, %74 : vector<16x384xf32>
    %76 = vector.extract_strided_slice %75 {offsets = [0, 0], sizes = [16, 128], strides = [1, 1]} : vector<16x384xf32> to vector<16x128xf32>
    %77 = vector.extract_strided_slice %75 {offsets = [0, 128], sizes = [16, 128], strides = [1, 1]} : vector<16x384xf32> to vector<16x128xf32>
    %78 = vector.extract_strided_slice %75 {offsets = [0, 256], sizes = [16, 128], strides = [1, 1]} : vector<16x384xf32> to vector<16x128xf32>
    %79 = vector.extract_strided_slice %69 {offsets = [0, 384], sizes = [16, 128], strides = [1, 1]} : vector<16x512xf32> to vector<16x128xf32>
    %80 = math.tanh %79 : vector<16x128xf32>
    %c0_40 = arith.constant 0 : index
    %c0_41 = arith.constant 0 : index
    %81 = vector.load %arg14[%c0_40, %c0_41] : memref<16x128xf32, #tpu.memory_space<vmem>>, vector<16x128xf32>
    %82 = arith.mulf %77, %81 : vector<16x128xf32>
    %83 = arith.mulf %76, %80 : vector<16x128xf32>
    %84 = arith.addf %82, %83 : vector<16x128xf32>
    %85 = math.tanh %84 : vector<16x128xf32>
    %86 = arith.mulf %78, %85 : vector<16x128xf32>
    %c0_42 = arith.constant 0 : index
    %c0_43 = arith.constant 0 : index
    %87 = vector.load %arg14[%c0_42, %c0_43] : memref<16x128xf32, #tpu.memory_space<vmem>>, vector<16x128xf32>
    tpu.vector_store %arg14[%c0_42, %c0_43], %84 {strides = array<i32>} : memref<16x128xf32, #tpu.memory_space<vmem>>, vector<16x128xf32>,
    %c0_44 = arith.constant 0 : index
    %c0_45 = arith.constant 0 : index
    %88 = vector.load %arg13[%c0_44, %c0_45] : memref<16x128xf32, #tpu.memory_space<vmem>>, vector<16x128xf32>
    tpu.vector_store %arg13[%c0_44, %c0_45], %86 {strides = array<i32>} : memref<16x128xf32, #tpu.memory_space<vmem>>, vector<16x128xf32>,
    %89 = arith.extui %26 : i1 to i32
    %c0_i32_46 = arith.constant 0 : i32
    %90 = arith.cmpi ne, %89, %c0_i32_46 : i32
    scf.if %90 {
      %286 = arith.truncf %86 : vector<16x128xf32> to vector<16x128xbf16>
      %287 = arith.index_cast %60 : i32 to index
      %c0_140 = arith.constant 0 : index
      %288 = vector.load %arg11[%287, %c0_140] : memref<128x128xbf16, #tpu.memory_space<vmem>>, vector<16x128xbf16>
      tpu.vector_store %arg11[%287, %c0_140], %286 {strides = array<i32>} : memref<128x128xbf16, #tpu.memory_space<vmem>>, vector<16x128xbf16>,
    } else {
    }
    %c2_i32_47 = arith.constant 2 : i32
    %c16_i32_48 = arith.constant 16 : i32
    %91 = arith.muli %c2_i32_47, %c16_i32_48 : i32
    %92 = tpu.assume_multiple %91, 16 : i32
    %93 = arith.index_cast %92 : i32 to index
    %c0_49 = arith.constant 0 : index
    %94 = vector.load %arg12[%93, %c0_49] : memref<128x512xf32, #tpu.memory_space<vmem>>, vector<16x512xf32>
    %c0_50 = arith.constant 0 : index
    %c0_51 = arith.constant 0 : index
    %95 = vector.load %arg13[%c0_50, %c0_51] : memref<16x128xf32, #tpu.memory_space<vmem>>, vector<16x128xf32>
    %96 = arith.truncf %95 : vector<16x128xf32> to vector<16x128xbf16>
    %97 = arith.index_cast %arg1 : i32 to index
    %c0_52 = arith.constant 0 : index
    %c0_53 = arith.constant 0 : index
    %98 = vector.load %arg5[%97, %c0_52, %c0_53] : memref<2x128x512xbf16, #tpu.memory_space<vmem>>, vector<1x128x512xbf16>
    %99 = vector.shape_cast %98 : vector<1x128x512xbf16> to vector<128x512xbf16>
    %cst_54 = arith.constant dense<0.000000e+00> : vector<16x512xf32>
    %100 = tpu.matmul %96, %99, %cst_54 {dimension_numbers = #tpu.dot_dimension_numbers<[1], [0], [0], [1], [0, 0, 1, 1], [], []>} : vector<16x128xbf16>, vector<128x512xbf16>, vector<16x512xf32> -> vector<16x512xf32>
    %101 = arith.addf %94, %100 : vector<16x512xf32>
    %102 = vector.extract_strided_slice %101 {offsets = [0, 0], sizes = [16, 384], strides = [1, 1]} : vector<16x512xf32> to vector<16x384xf32>
    %103 = arith.negf %102 : vector<16x384xf32>
    %104 = math.exp %103 : vector<16x384xf32>
    %cst_55 = arith.constant 1.000000e+00 : f32
    %105 = vector.broadcast %cst_55 : f32 to vector<16x384xf32>
    %106 = arith.addf %105, %104 : vector<16x384xf32>
    %107 = arith.divf %105, %106 : vector<16x384xf32>
    %108 = vector.extract_strided_slice %107 {offsets = [0, 0], sizes = [16, 128], strides = [1, 1]} : vector<16x384xf32> to vector<16x128xf32>
    %109 = vector.extract_strided_slice %107 {offsets = [0, 128], sizes = [16, 128], strides = [1, 1]} : vector<16x384xf32> to vector<16x128xf32>
    %110 = vector.extract_strided_slice %107 {offsets = [0, 256], sizes = [16, 128], strides = [1, 1]} : vector<16x384xf32> to vector<16x128xf32>
    %111 = vector.extract_strided_slice %101 {offsets = [0, 384], sizes = [16, 128], strides = [1, 1]} : vector<16x512xf32> to vector<16x128xf32>
    %112 = math.tanh %111 : vector<16x128xf32>
    %c0_56 = arith.constant 0 : index
    %c0_57 = arith.constant 0 : index
    %113 = vector.load %arg14[%c0_56, %c0_57] : memref<16x128xf32, #tpu.memory_space<vmem>>, vector<16x128xf32>
    %114 = arith.mulf %109, %113 : vector<16x128xf32>
    %115 = arith.mulf %108, %112 : vector<16x128xf32>
    %116 = arith.addf %114, %115 : vector<16x128xf32>
    %117 = math.tanh %116 : vector<16x128xf32>
    %118 = arith.mulf %110, %117 : vector<16x128xf32>
    %c0_58 = arith.constant 0 : index
    %c0_59 = arith.constant 0 : index
    %119 = vector.load %arg14[%c0_58, %c0_59] : memref<16x128xf32, #tpu.memory_space<vmem>>, vector<16x128xf32>
    tpu.vector_store %arg14[%c0_58, %c0_59], %116 {strides = array<i32>} : memref<16x128xf32, #tpu.memory_space<vmem>>, vector<16x128xf32>,
    %c0_60 = arith.constant 0 : index
    %c0_61 = arith.constant 0 : index
    %120 = vector.load %arg13[%c0_60, %c0_61] : memref<16x128xf32, #tpu.memory_space<vmem>>, vector<16x128xf32>
    tpu.vector_store %arg13[%c0_60, %c0_61], %118 {strides = array<i32>} : memref<16x128xf32, #tpu.memory_space<vmem>>, vector<16x128xf32>,
    %121 = arith.extui %26 : i1 to i32
    %c0_i32_62 = arith.constant 0 : i32
    %122 = arith.cmpi ne, %121, %c0_i32_62 : i32
    scf.if %122 {
      %286 = arith.truncf %118 : vector<16x128xf32> to vector<16x128xbf16>
      %287 = arith.index_cast %92 : i32 to index
      %c0_140 = arith.constant 0 : index
      %288 = vector.load %arg11[%287, %c0_140] : memref<128x128xbf16, #tpu.memory_space<vmem>>, vector<16x128xbf16>
      tpu.vector_store %arg11[%287, %c0_140], %286 {strides = array<i32>} : memref<128x128xbf16, #tpu.memory_space<vmem>>, vector<16x128xbf16>,
    } else {
    }
    %c3_i32 = arith.constant 3 : i32
    %c16_i32_63 = arith.constant 16 : i32
    %123 = arith.muli %c3_i32, %c16_i32_63 : i32
    %124 = tpu.assume_multiple %123, 16 : i32
    %125 = arith.index_cast %124 : i32 to index
    %c0_64 = arith.constant 0 : index
    %126 = vector.load %arg12[%125, %c0_64] : memref<128x512xf32, #tpu.memory_space<vmem>>, vector<16x512xf32>
    %c0_65 = arith.constant 0 : index
    %c0_66 = arith.constant 0 : index
    %127 = vector.load %arg13[%c0_65, %c0_66] : memref<16x128xf32, #tpu.memory_space<vmem>>, vector<16x128xf32>
    %128 = arith.truncf %127 : vector<16x128xf32> to vector<16x128xbf16>
    %129 = arith.index_cast %arg1 : i32 to index
    %c0_67 = arith.constant 0 : index
    %c0_68 = arith.constant 0 : index
    %130 = vector.load %arg5[%129, %c0_67, %c0_68] : memref<2x128x512xbf16, #tpu.memory_space<vmem>>, vector<1x128x512xbf16>
    %131 = vector.shape_cast %130 : vector<1x128x512xbf16> to vector<128x512xbf16>
    %cst_69 = arith.constant dense<0.000000e+00> : vector<16x512xf32>
    %132 = tpu.matmul %128, %131, %cst_69 {dimension_numbers = #tpu.dot_dimension_numbers<[1], [0], [0], [1], [0, 0, 1, 1], [], []>} : vector<16x128xbf16>, vector<128x512xbf16>, vector<16x512xf32> -> vector<16x512xf32>
    %133 = arith.addf %126, %132 : vector<16x512xf32>
    %134 = vector.extract_strided_slice %133 {offsets = [0, 0], sizes = [16, 384], strides = [1, 1]} : vector<16x512xf32> to vector<16x384xf32>
    %135 = arith.negf %134 : vector<16x384xf32>
    %136 = math.exp %135 : vector<16x384xf32>
    %cst_70 = arith.constant 1.000000e+00 : f32
    %137 = vector.broadcast %cst_70 : f32 to vector<16x384xf32>
    %138 = arith.addf %137, %136 : vector<16x384xf32>
    %139 = arith.divf %137, %138 : vector<16x384xf32>
    %140 = vector.extract_strided_slice %139 {offsets = [0, 0], sizes = [16, 128], strides = [1, 1]} : vector<16x384xf32> to vector<16x128xf32>
    %141 = vector.extract_strided_slice %139 {offsets = [0, 128], sizes = [16, 128], strides = [1, 1]} : vector<16x384xf32> to vector<16x128xf32>
    %142 = vector.extract_strided_slice %139 {offsets = [0, 256], sizes = [16, 128], strides = [1, 1]} : vector<16x384xf32> to vector<16x128xf32>
    %143 = vector.extract_strided_slice %133 {offsets = [0, 384], sizes = [16, 128], strides = [1, 1]} : vector<16x512xf32> to vector<16x128xf32>
    %144 = math.tanh %143 : vector<16x128xf32>
    %c0_71 = arith.constant 0 : index
    %c0_72 = arith.constant 0 : index
    %145 = vector.load %arg14[%c0_71, %c0_72] : memref<16x128xf32, #tpu.memory_space<vmem>>, vector<16x128xf32>
    %146 = arith.mulf %141, %145 : vector<16x128xf32>
    %147 = arith.mulf %140, %144 : vector<16x128xf32>
    %148 = arith.addf %146, %147 : vector<16x128xf32>
    %149 = math.tanh %148 : vector<16x128xf32>
    %150 = arith.mulf %142, %149 : vector<16x128xf32>
    %c0_73 = arith.constant 0 : index
    %c0_74 = arith.constant 0 : index
    %151 = vector.load %arg14[%c0_73, %c0_74] : memref<16x128xf32, #tpu.memory_space<vmem>>, vector<16x128xf32>
    tpu.vector_store %arg14[%c0_73, %c0_74], %148 {strides = array<i32>} : memref<16x128xf32, #tpu.memory_space<vmem>>, vector<16x128xf32>,
    %c0_75 = arith.constant 0 : index
    %c0_76 = arith.constant 0 : index
    %152 = vector.load %arg13[%c0_75, %c0_76] : memref<16x128xf32, #tpu.memory_space<vmem>>, vector<16x128xf32>
    tpu.vector_store %arg13[%c0_75, %c0_76], %150 {strides = array<i32>} : memref<16x128xf32, #tpu.memory_space<vmem>>, vector<16x128xf32>,
    %153 = arith.extui %26 : i1 to i32
    %c0_i32_77 = arith.constant 0 : i32
    %154 = arith.cmpi ne, %153, %c0_i32_77 : i32
    scf.if %154 {
      %286 = arith.truncf %150 : vector<16x128xf32> to vector<16x128xbf16>
      %287 = arith.index_cast %124 : i32 to index
      %c0_140 = arith.constant 0 : index
      %288 = vector.load %arg11[%287, %c0_140] : memref<128x128xbf16, #tpu.memory_space<vmem>>, vector<16x128xbf16>
      tpu.vector_store %arg11[%287, %c0_140], %286 {strides = array<i32>} : memref<128x128xbf16, #tpu.memory_space<vmem>>, vector<16x128xbf16>,
    } else {
    }
    %c4_i32 = arith.constant 4 : i32
    %c16_i32_78 = arith.constant 16 : i32
    %155 = arith.muli %c4_i32, %c16_i32_78 : i32
    %156 = tpu.assume_multiple %155, 16 : i32
    %157 = arith.index_cast %156 : i32 to index
    %c0_79 = arith.constant 0 : index
    %158 = vector.load %arg12[%157, %c0_79] : memref<128x512xf32, #tpu.memory_space<vmem>>, vector<16x512xf32>
    %c0_80 = arith.constant 0 : index
    %c0_81 = arith.constant 0 : index
    %159 = vector.load %arg13[%c0_80, %c0_81] : memref<16x128xf32, #tpu.memory_space<vmem>>, vector<16x128xf32>
    %160 = arith.truncf %159 : vector<16x128xf32> to vector<16x128xbf16>
    %161 = arith.index_cast %arg1 : i32 to index
    %c0_82 = arith.constant 0 : index
    %c0_83 = arith.constant 0 : index
    %162 = vector.load %arg5[%161, %c0_82, %c0_83] : memref<2x128x512xbf16, #tpu.memory_space<vmem>>, vector<1x128x512xbf16>
    %163 = vector.shape_cast %162 : vector<1x128x512xbf16> to vector<128x512xbf16>
    %cst_84 = arith.constant dense<0.000000e+00> : vector<16x512xf32>
    %164 = tpu.matmul %160, %163, %cst_84 {dimension_numbers = #tpu.dot_dimension_numbers<[1], [0], [0], [1], [0, 0, 1, 1], [], []>} : vector<16x128xbf16>, vector<128x512xbf16>, vector<16x512xf32> -> vector<16x512xf32>
    %165 = arith.addf %158, %164 : vector<16x512xf32>
    %166 = vector.extract_strided_slice %165 {offsets = [0, 0], sizes = [16, 384], strides = [1, 1]} : vector<16x512xf32> to vector<16x384xf32>
    %167 = arith.negf %166 : vector<16x384xf32>
    %168 = math.exp %167 : vector<16x384xf32>
    %cst_85 = arith.constant 1.000000e+00 : f32
    %169 = vector.broadcast %cst_85 : f32 to vector<16x384xf32>
    %170 = arith.addf %169, %168 : vector<16x384xf32>
    %171 = arith.divf %169, %170 : vector<16x384xf32>
    %172 = vector.extract_strided_slice %171 {offsets = [0, 0], sizes = [16, 128], strides = [1, 1]} : vector<16x384xf32> to vector<16x128xf32>
    %173 = vector.extract_strided_slice %171 {offsets = [0, 128], sizes = [16, 128], strides = [1, 1]} : vector<16x384xf32> to vector<16x128xf32>
    %174 = vector.extract_strided_slice %171 {offsets = [0, 256], sizes = [16, 128], strides = [1, 1]} : vector<16x384xf32> to vector<16x128xf32>
    %175 = vector.extract_strided_slice %165 {offsets = [0, 384], sizes = [16, 128], strides = [1, 1]} : vector<16x512xf32> to vector<16x128xf32>
    %176 = math.tanh %175 : vector<16x128xf32>
    %c0_86 = arith.constant 0 : index
    %c0_87 = arith.constant 0 : index
    %177 = vector.load %arg14[%c0_86, %c0_87] : memref<16x128xf32, #tpu.memory_space<vmem>>, vector<16x128xf32>
    %178 = arith.mulf %173, %177 : vector<16x128xf32>
    %179 = arith.mulf %172, %176 : vector<16x128xf32>
    %180 = arith.addf %178, %179 : vector<16x128xf32>
    %181 = math.tanh %180 : vector<16x128xf32>
    %182 = arith.mulf %174, %181 : vector<16x128xf32>
    %c0_88 = arith.constant 0 : index
    %c0_89 = arith.constant 0 : index
    %183 = vector.load %arg14[%c0_88, %c0_89] : memref<16x128xf32, #tpu.memory_space<vmem>>, vector<16x128xf32>
    tpu.vector_store %arg14[%c0_88, %c0_89], %180 {strides = array<i32>} : memref<16x128xf32, #tpu.memory_space<vmem>>, vector<16x128xf32>,
    %c0_90 = arith.constant 0 : index
    %c0_91 = arith.constant 0 : index
    %184 = vector.load %arg13[%c0_90, %c0_91] : memref<16x128xf32, #tpu.memory_space<vmem>>, vector<16x128xf32>
    tpu.vector_store %arg13[%c0_90, %c0_91], %182 {strides = array<i32>} : memref<16x128xf32, #tpu.memory_space<vmem>>, vector<16x128xf32>,
    %185 = arith.extui %26 : i1 to i32
    %c0_i32_92 = arith.constant 0 : i32
    %186 = arith.cmpi ne, %185, %c0_i32_92 : i32
    scf.if %186 {
      %286 = arith.truncf %182 : vector<16x128xf32> to vector<16x128xbf16>
      %287 = arith.index_cast %156 : i32 to index
      %c0_140 = arith.constant 0 : index
      %288 = vector.load %arg11[%287, %c0_140] : memref<128x128xbf16, #tpu.memory_space<vmem>>, vector<16x128xbf16>
      tpu.vector_store %arg11[%287, %c0_140], %286 {strides = array<i32>} : memref<128x128xbf16, #tpu.memory_space<vmem>>, vector<16x128xbf16>,
    } else {
    }
    %c5_i32 = arith.constant 5 : i32
    %c16_i32_93 = arith.constant 16 : i32
    %187 = arith.muli %c5_i32, %c16_i32_93 : i32
    %188 = tpu.assume_multiple %187, 16 : i32
    %189 = arith.index_cast %188 : i32 to index
    %c0_94 = arith.constant 0 : index
    %190 = vector.load %arg12[%189, %c0_94] : memref<128x512xf32, #tpu.memory_space<vmem>>, vector<16x512xf32>
    %c0_95 = arith.constant 0 : index
    %c0_96 = arith.constant 0 : index
    %191 = vector.load %arg13[%c0_95, %c0_96] : memref<16x128xf32, #tpu.memory_space<vmem>>, vector<16x128xf32>
    %192 = arith.truncf %191 : vector<16x128xf32> to vector<16x128xbf16>
    %193 = arith.index_cast %arg1 : i32 to index
    %c0_97 = arith.constant 0 : index
    %c0_98 = arith.constant 0 : index
    %194 = vector.load %arg5[%193, %c0_97, %c0_98] : memref<2x128x512xbf16, #tpu.memory_space<vmem>>, vector<1x128x512xbf16>
    %195 = vector.shape_cast %194 : vector<1x128x512xbf16> to vector<128x512xbf16>
    %cst_99 = arith.constant dense<0.000000e+00> : vector<16x512xf32>
    %196 = tpu.matmul %192, %195, %cst_99 {dimension_numbers = #tpu.dot_dimension_numbers<[1], [0], [0], [1], [0, 0, 1, 1], [], []>} : vector<16x128xbf16>, vector<128x512xbf16>, vector<16x512xf32> -> vector<16x512xf32>
    %197 = arith.addf %190, %196 : vector<16x512xf32>
    %198 = vector.extract_strided_slice %197 {offsets = [0, 0], sizes = [16, 384], strides = [1, 1]} : vector<16x512xf32> to vector<16x384xf32>
    %199 = arith.negf %198 : vector<16x384xf32>
    %200 = math.exp %199 : vector<16x384xf32>
    %cst_100 = arith.constant 1.000000e+00 : f32
    %201 = vector.broadcast %cst_100 : f32 to vector<16x384xf32>
    %202 = arith.addf %201, %200 : vector<16x384xf32>
    %203 = arith.divf %201, %202 : vector<16x384xf32>
    %204 = vector.extract_strided_slice %203 {offsets = [0, 0], sizes = [16, 128], strides = [1, 1]} : vector<16x384xf32> to vector<16x128xf32>
    %205 = vector.extract_strided_slice %203 {offsets = [0, 128], sizes = [16, 128], strides = [1, 1]} : vector<16x384xf32> to vector<16x128xf32>
    %206 = vector.extract_strided_slice %203 {offsets = [0, 256], sizes = [16, 128], strides = [1, 1]} : vector<16x384xf32> to vector<16x128xf32>
    %207 = vector.extract_strided_slice %197 {offsets = [0, 384], sizes = [16, 128], strides = [1, 1]} : vector<16x512xf32> to vector<16x128xf32>
    %208 = math.tanh %207 : vector<16x128xf32>
    %c0_101 = arith.constant 0 : index
    %c0_102 = arith.constant 0 : index
    %209 = vector.load %arg14[%c0_101, %c0_102] : memref<16x128xf32, #tpu.memory_space<vmem>>, vector<16x128xf32>
    %210 = arith.mulf %205, %209 : vector<16x128xf32>
    %211 = arith.mulf %204, %208 : vector<16x128xf32>
    %212 = arith.addf %210, %211 : vector<16x128xf32>
    %213 = math.tanh %212 : vector<16x128xf32>
    %214 = arith.mulf %206, %213 : vector<16x128xf32>
    %c0_103 = arith.constant 0 : index
    %c0_104 = arith.constant 0 : index
    %215 = vector.load %arg14[%c0_103, %c0_104] : memref<16x128xf32, #tpu.memory_space<vmem>>, vector<16x128xf32>
    tpu.vector_store %arg14[%c0_103, %c0_104], %212 {strides = array<i32>} : memref<16x128xf32, #tpu.memory_space<vmem>>, vector<16x128xf32>,
    %c0_105 = arith.constant 0 : index
    %c0_106 = arith.constant 0 : index
    %216 = vector.load %arg13[%c0_105, %c0_106] : memref<16x128xf32, #tpu.memory_space<vmem>>, vector<16x128xf32>
    tpu.vector_store %arg13[%c0_105, %c0_106], %214 {strides = array<i32>} : memref<16x128xf32, #tpu.memory_space<vmem>>, vector<16x128xf32>,
    %217 = arith.extui %26 : i1 to i32
    %c0_i32_107 = arith.constant 0 : i32
    %218 = arith.cmpi ne, %217, %c0_i32_107 : i32
    scf.if %218 {
      %286 = arith.truncf %214 : vector<16x128xf32> to vector<16x128xbf16>
      %287 = arith.index_cast %188 : i32 to index
      %c0_140 = arith.constant 0 : index
      %288 = vector.load %arg11[%287, %c0_140] : memref<128x128xbf16, #tpu.memory_space<vmem>>, vector<16x128xbf16>
      tpu.vector_store %arg11[%287, %c0_140], %286 {strides = array<i32>} : memref<128x128xbf16, #tpu.memory_space<vmem>>, vector<16x128xbf16>,
    } else {
    }
    %c6_i32 = arith.constant 6 : i32
    %c16_i32_108 = arith.constant 16 : i32
    %219 = arith.muli %c6_i32, %c16_i32_108 : i32
    %220 = tpu.assume_multiple %219, 16 : i32
    %221 = arith.index_cast %220 : i32 to index
    %c0_109 = arith.constant 0 : index
    %222 = vector.load %arg12[%221, %c0_109] : memref<128x512xf32, #tpu.memory_space<vmem>>, vector<16x512xf32>
    %c0_110 = arith.constant 0 : index
    %c0_111 = arith.constant 0 : index
    %223 = vector.load %arg13[%c0_110, %c0_111] : memref<16x128xf32, #tpu.memory_space<vmem>>, vector<16x128xf32>
    %224 = arith.truncf %223 : vector<16x128xf32> to vector<16x128xbf16>
    %225 = arith.index_cast %arg1 : i32 to index
    %c0_112 = arith.constant 0 : index
    %c0_113 = arith.constant 0 : index
    %226 = vector.load %arg5[%225, %c0_112, %c0_113] : memref<2x128x512xbf16, #tpu.memory_space<vmem>>, vector<1x128x512xbf16>
    %227 = vector.shape_cast %226 : vector<1x128x512xbf16> to vector<128x512xbf16>
    %cst_114 = arith.constant dense<0.000000e+00> : vector<16x512xf32>
    %228 = tpu.matmul %224, %227, %cst_114 {dimension_numbers = #tpu.dot_dimension_numbers<[1], [0], [0], [1], [0, 0, 1, 1], [], []>} : vector<16x128xbf16>, vector<128x512xbf16>, vector<16x512xf32> -> vector<16x512xf32>
    %229 = arith.addf %222, %228 : vector<16x512xf32>
    %230 = vector.extract_strided_slice %229 {offsets = [0, 0], sizes = [16, 384], strides = [1, 1]} : vector<16x512xf32> to vector<16x384xf32>
    %231 = arith.negf %230 : vector<16x384xf32>
    %232 = math.exp %231 : vector<16x384xf32>
    %cst_115 = arith.constant 1.000000e+00 : f32
    %233 = vector.broadcast %cst_115 : f32 to vector<16x384xf32>
    %234 = arith.addf %233, %232 : vector<16x384xf32>
    %235 = arith.divf %233, %234 : vector<16x384xf32>
    %236 = vector.extract_strided_slice %235 {offsets = [0, 0], sizes = [16, 128], strides = [1, 1]} : vector<16x384xf32> to vector<16x128xf32>
    %237 = vector.extract_strided_slice %235 {offsets = [0, 128], sizes = [16, 128], strides = [1, 1]} : vector<16x384xf32> to vector<16x128xf32>
    %238 = vector.extract_strided_slice %235 {offsets = [0, 256], sizes = [16, 128], strides = [1, 1]} : vector<16x384xf32> to vector<16x128xf32>
    %239 = vector.extract_strided_slice %229 {offsets = [0, 384], sizes = [16, 128], strides = [1, 1]} : vector<16x512xf32> to vector<16x128xf32>
    %240 = math.tanh %239 : vector<16x128xf32>
    %c0_116 = arith.constant 0 : index
    %c0_117 = arith.constant 0 : index
    %241 = vector.load %arg14[%c0_116, %c0_117] : memref<16x128xf32, #tpu.memory_space<vmem>>, vector<16x128xf32>
    %242 = arith.mulf %237, %241 : vector<16x128xf32>
    %243 = arith.mulf %236, %240 : vector<16x128xf32>
    %244 = arith.addf %242, %243 : vector<16x128xf32>
    %245 = math.tanh %244 : vector<16x128xf32>
    %246 = arith.mulf %238, %245 : vector<16x128xf32>
    %c0_118 = arith.constant 0 : index
    %c0_119 = arith.constant 0 : index
    %247 = vector.load %arg14[%c0_118, %c0_119] : memref<16x128xf32, #tpu.memory_space<vmem>>, vector<16x128xf32>
    tpu.vector_store %arg14[%c0_118, %c0_119], %244 {strides = array<i32>} : memref<16x128xf32, #tpu.memory_space<vmem>>, vector<16x128xf32>,
    %c0_120 = arith.constant 0 : index
    %c0_121 = arith.constant 0 : index
    %248 = vector.load %arg13[%c0_120, %c0_121] : memref<16x128xf32, #tpu.memory_space<vmem>>, vector<16x128xf32>
    tpu.vector_store %arg13[%c0_120, %c0_121], %246 {strides = array<i32>} : memref<16x128xf32, #tpu.memory_space<vmem>>, vector<16x128xf32>,
    %249 = arith.extui %26 : i1 to i32
    %c0_i32_122 = arith.constant 0 : i32
    %250 = arith.cmpi ne, %249, %c0_i32_122 : i32
    scf.if %250 {
      %286 = arith.truncf %246 : vector<16x128xf32> to vector<16x128xbf16>
      %287 = arith.index_cast %220 : i32 to index
      %c0_140 = arith.constant 0 : index
      %288 = vector.load %arg11[%287, %c0_140] : memref<128x128xbf16, #tpu.memory_space<vmem>>, vector<16x128xbf16>
      tpu.vector_store %arg11[%287, %c0_140], %286 {strides = array<i32>} : memref<128x128xbf16, #tpu.memory_space<vmem>>, vector<16x128xbf16>,
    } else {
    }
    %c7_i32 = arith.constant 7 : i32
    %c16_i32_123 = arith.constant 16 : i32
    %251 = arith.muli %c7_i32, %c16_i32_123 : i32
    %252 = tpu.assume_multiple %251, 16 : i32
    %253 = arith.index_cast %252 : i32 to index
    %c0_124 = arith.constant 0 : index
    %254 = vector.load %arg12[%253, %c0_124] : memref<128x512xf32, #tpu.memory_space<vmem>>, vector<16x512xf32>
    %c0_125 = arith.constant 0 : index
    %c0_126 = arith.constant 0 : index
    %255 = vector.load %arg13[%c0_125, %c0_126] : memref<16x128xf32, #tpu.memory_space<vmem>>, vector<16x128xf32>
    %256 = arith.truncf %255 : vector<16x128xf32> to vector<16x128xbf16>
    %257 = arith.index_cast %arg1 : i32 to index
    %c0_127 = arith.constant 0 : index
    %c0_128 = arith.constant 0 : index
    %258 = vector.load %arg5[%257, %c0_127, %c0_128] : memref<2x128x512xbf16, #tpu.memory_space<vmem>>, vector<1x128x512xbf16>
    %259 = vector.shape_cast %258 : vector<1x128x512xbf16> to vector<128x512xbf16>
    %cst_129 = arith.constant dense<0.000000e+00> : vector<16x512xf32>
    %260 = tpu.matmul %256, %259, %cst_129 {dimension_numbers = #tpu.dot_dimension_numbers<[1], [0], [0], [1], [0, 0, 1, 1], [], []>} : vector<16x128xbf16>, vector<128x512xbf16>, vector<16x512xf32> -> vector<16x512xf32>
    %261 = arith.addf %254, %260 : vector<16x512xf32>
    %262 = vector.extract_strided_slice %261 {offsets = [0, 0], sizes = [16, 384], strides = [1, 1]} : vector<16x512xf32> to vector<16x384xf32>
    %263 = arith.negf %262 : vector<16x384xf32>
    %264 = math.exp %263 : vector<16x384xf32>
    %cst_130 = arith.constant 1.000000e+00 : f32
    %265 = vector.broadcast %cst_130 : f32 to vector<16x384xf32>
    %266 = arith.addf %265, %264 : vector<16x384xf32>
    %267 = arith.divf %265, %266 : vector<16x384xf32>
    %268 = vector.extract_strided_slice %267 {offsets = [0, 0], sizes = [16, 128], strides = [1, 1]} : vector<16x384xf32> to vector<16x128xf32>
    %269 = vector.extract_strided_slice %267 {offsets = [0, 128], sizes = [16, 128], strides = [1, 1]} : vector<16x384xf32> to vector<16x128xf32>
    %270 = vector.extract_strided_slice %267 {offsets = [0, 256], sizes = [16, 128], strides = [1, 1]} : vector<16x384xf32> to vector<16x128xf32>
    %271 = vector.extract_strided_slice %261 {offsets = [0, 384], sizes = [16, 128], strides = [1, 1]} : vector<16x512xf32> to vector<16x128xf32>
    %272 = math.tanh %271 : vector<16x128xf32>
    %c0_131 = arith.constant 0 : index
    %c0_132 = arith.constant 0 : index
    %273 = vector.load %arg14[%c0_131, %c0_132] : memref<16x128xf32, #tpu.memory_space<vmem>>, vector<16x128xf32>
    %274 = arith.mulf %269, %273 : vector<16x128xf32>
    %275 = arith.mulf %268, %272 : vector<16x128xf32>
    %276 = arith.addf %274, %275 : vector<16x128xf32>
    %277 = math.tanh %276 : vector<16x128xf32>
    %278 = arith.mulf %270, %277 : vector<16x128xf32>
    %c0_133 = arith.constant 0 : index
    %c0_134 = arith.constant 0 : index
    %279 = vector.load %arg14[%c0_133, %c0_134] : memref<16x128xf32, #tpu.memory_space<vmem>>, vector<16x128xf32>
    tpu.vector_store %arg14[%c0_133, %c0_134], %276 {strides = array<i32>} : memref<16x128xf32, #tpu.memory_space<vmem>>, vector<16x128xf32>,
    %c0_135 = arith.constant 0 : index
    %c0_136 = arith.constant 0 : index
    %280 = vector.load %arg13[%c0_135, %c0_136] : memref<16x128xf32, #tpu.memory_space<vmem>>, vector<16x128xf32>
    tpu.vector_store %arg13[%c0_135, %c0_136], %278 {strides = array<i32>} : memref<16x128xf32, #tpu.memory_space<vmem>>, vector<16x128xf32>,
    %281 = arith.extui %26 : i1 to i32
    %c0_i32_137 = arith.constant 0 : i32
    %282 = arith.cmpi ne, %281, %c0_i32_137 : i32
    scf.if %282 {
      %286 = arith.truncf %278 : vector<16x128xf32> to vector<16x128xbf16>
      %287 = arith.index_cast %252 : i32 to index
      %c0_140 = arith.constant 0 : index
      %288 = vector.load %arg11[%287, %c0_140] : memref<128x128xbf16, #tpu.memory_space<vmem>>, vector<16x128xbf16>
      tpu.vector_store %arg11[%287, %c0_140], %286 {strides = array<i32>} : memref<128x128xbf16, #tpu.memory_space<vmem>>, vector<16x128xbf16>,
    } else {
    }
    %c8_i32 = arith.constant 8 : i32
    %c1_i32_138 = arith.constant 1 : i32
    %283 = arith.cmpi eq, %arg1, %c1_i32_138 : i32
    %284 = arith.extui %283 : i1 to i32
    %c0_i32_139 = arith.constant 0 : i32
    %285 = arith.cmpi ne, %284, %c0_i32_139 : i32
    scf.if %285 {
      %c0_140 = arith.constant 0 : index
      %c0_141 = arith.constant 0 : index
      %286 = vector.load %arg13[%c0_140, %c0_141] : memref<16x128xf32, #tpu.memory_space<vmem>>, vector<16x128xf32>
      %287 = arith.truncf %286 : vector<16x128xf32> to vector<16x128xbf16>
      %c0_142 = arith.constant 0 : index
      %c0_143 = arith.constant 0 : index
      %288 = vector.load %arg7[%c0_142, %c0_143] : memref<128x1xbf16, #tpu.memory_space<vmem>>, vector<128x1xbf16>
      %cst_144 = arith.constant dense<0.000000e+00> : vector<16x1xf32>
      %289 = tpu.matmul %287, %288, %cst_144 {dimension_numbers = #tpu.dot_dimension_numbers<[1], [0], [0], [1], [0, 0, 1, 1], [], []>} : vector<16x128xbf16>, vector<128x1xbf16>, vector<16x1xf32> -> vector<16x1xf32>
      %c0_145 = arith.constant 0 : index
      %c0_146 = arith.constant 0 : index
      %290 = vector.load %arg8[%c0_145, %c0_146] : memref<1x1xf32, #tpu.memory_space<vmem>>, vector<1x1xf32>
      %291 = vector.broadcast %290 : vector<1x1xf32> to vector<16x1xf32>
      %292 = arith.addf %289, %291 : vector<16x1xf32>
      %c0_147 = arith.constant 0 : index
      %c0_148 = arith.constant 0 : index
      %293 = vector.load %arg9[%c0_147, %c0_148] : memref<16x1xf32, #tpu.memory_space<vmem>>, vector<16x1xf32>
      tpu.vector_store %arg9[%c0_147, %c0_148], %292 {strides = array<i32>} : memref<16x1xf32, #tpu.memory_space<vmem>>, vector<16x1xf32>,
    } else {
    }
    return
  }
  func.func @transform_1(%arg0: i32, %arg1: i32) -> (i32, i32) {
    %c0_i32 = arith.constant 0 : i32
    %c0_i32_0 = arith.constant 0 : i32
    %c0_i32_1 = arith.constant 0 : i32
    return %c0_i32, %c0_i32_0 : i32, i32
  }
  func.func @transform_2(%arg0: i32, %arg1: i32) -> (i32, i32, i32) {
    %c0_i32 = arith.constant 0 : i32
    %c0_i32_0 = arith.constant 0 : i32
    %c0_i32_1 = arith.constant 0 : i32
    %c0_i32_2 = arith.constant 0 : i32
    return %c0_i32, %c0_i32_0, %c0_i32_1 : i32, i32, i32
  }
  func.func @transform_3(%arg0: i32, %arg1: i32) -> (i32, i32, i32) {
    %c0_i32 = arith.constant 0 : i32
    %c0_i32_0 = arith.constant 0 : i32
    %c0_i32_1 = arith.constant 0 : i32
    %c0_i32_2 = arith.constant 0 : i32
    return %c0_i32, %c0_i32_0, %c0_i32_1 : i32, i32, i32
  }
  func.func @transform_4(%arg0: i32, %arg1: i32) -> (i32, i32, i32) {
    %c0_i32 = arith.constant 0 : i32
    %c0_i32_0 = arith.constant 0 : i32
    %c0_i32_1 = arith.constant 0 : i32
    %c0_i32_2 = arith.constant 0 : i32
    return %c0_i32, %c0_i32_0, %c0_i32_1 : i32, i32, i32
  }
  func.func @transform_5(%arg0: i32, %arg1: i32) -> (i32, i32) {
    %c0_i32 = arith.constant 0 : i32
    %c0_i32_0 = arith.constant 0 : i32
    %c0_i32_1 = arith.constant 0 : i32
    return %c0_i32, %c0_i32_0 : i32, i32
  }
  func.func @transform_6(%arg0: i32, %arg1: i32) -> (i32, i32) {
    %c0_i32 = arith.constant 0 : i32
    %c0_i32_0 = arith.constant 0 : i32
    %c0_i32_1 = arith.constant 0 : i32
    return %c0_i32, %c0_i32_0 : i32, i32
  }
  func.func @transform_7(%arg0: i32, %arg1: i32) -> (i32, i32) {
    %c0_i32 = arith.constant 0 : i32
    %c0_i32_0 = arith.constant 0 : i32
    return %arg0, %c0_i32 : i32, i32
  }
}

</mosaic_0001>

<bundles_post_ra>
// kernel: tpu_custom_call.1
= control target key start
LH: loop header
LB: loop body
LE: loop exit
PB: predicated region body
PF: predicated region fallthrough
CT: control target
= control target key end

     0   :  { %s6685_s0 = inlined_call_operand.vmem [shape: bf16[1,128,128], index: 0, kind: input, shape index: {}]   ;;  %s6686_s1 = inlined_call_operand.hbm [shape: bf16[128,512], index: 1, kind: input, shape index: {}]   ;;  %s6687_s2 = inlined_call_operand.hbm [shape: bf16[1,128,512], index: 2, kind: input, shape index: {}]   ;;  %s6688_s3 = inlined_call_operand.hbm [shape: bf16[2,128,512], index: 3, kind: input, shape index: {}]   ;;  %s6689_s4 = inlined_call_operand.vmem [shape: f32[2,1,512], index: 4, kind: input, shape index: {}]   ;;  %s6690_s5 = inlined_call_operand.vmem [shape: bf16[128,1], index: 5, kind: input, shape index: {}]   ;;  %s6691_s6 = inlined_call_operand.<no memory space> [shape: f32[1,1], index: 6, kind: input, shape index: {}]   ;;  %s6692_s7 = inlined_call_operand.vmem [shape: f32[16,1], index: 7, kind: output, shape index: {}]  }
   0x1   :  { %v12_v0 = vstv %s6691_s6 }
   0x2   :  { %13 = vst [vmem:[#allocation8] sm:$0x1] %v12_v0 }
   0x3   :  { %14 = vsyncpa [#allocation10], 0 }
   0x4   :  { %15 = vsyncpa [#allocation12], 0  ;;  %s5968_s26 = smov 0   ;;  %s5970_s27 = smov 0  }
   0x5   :  { %s5972_s28 = smov 0  }
   0x6 LB: > { %s4548_s6 = sadd.s32 4294967295, %s5912_s28   ;;  %p4549_p0 = scmp.ge.s32.totalorder %s5912_s28, 1  ;;  %s5912_s28 = sphi %s5972_s28, %s21_s28   ;;  %s5908_s27 = sphi %s5970_s27, %s6704_s27   ;;  %s5904_s26 = sphi %s5968_s26, %s6703_s26  }
   0x7   : > { %p190_p1 = scmp.lt.s32.totalorder %s5912_s28, 3  ;;  %p5986_p2 = scmp.eq.s32.totalorder %s4548_s6, 0 }
   0x8   : > { %s5914_s8 = smov [#allocation11]   ;;  %s30_s11 = sadd.s32 1, %s5908_s27 }
   0x9   : > { %s6696_s29 = scalar_select %p5986_p2, 1, 0 }
   0xa   : > { %p5990_p3 = pnand %p4549_p0, %p190_p1  ;;  %s215_s9 = sshll.u32 %s5914_s8, 4  ;;  %s5994_s9 = int_to_ptr.vmem [resolvable:$true] %s215_s9 }
   0xb   : > { %p6005_p6 = scmp.ge.s32.totalorder %s30_s11, 2  ;;  %s5915_s13 = smov [#allocation9]  }
   0xc   : > { %s6697_s30 = scalar_select %p5990_p3, 1, 0 }
   0xd   : > { %p5001_p4 = pneg %p5990_p3  ;;  %s202_s14 = sshll.u32 %s5915_s13, 4  ;;  %s203_s14 = int_to_ptr.vmem [resolvable:$true] %s202_s14 }
   0xe   : > { %s5796_s17 = scalar_lea.hbm %s6687_s2, 4096 }
   0xf   : > { %p6000_p5 = pnand %p5986_p2, %p5001_p4  ;;  %p5797_p7 = scmp.ne.s32.totalorder %s6687_s2, %s5796_s17 }
  0x10   : > { %p5803_p11 = scmp.lt.u32.totalorder %s5796_s17, %s6687_s2 }
  0x11   : > { %p6017_p8 = pneg %p6000_p5 }
  0x13   : > { %p5799_p9 = pnand %p6017_p8, %p5797_p7 }
  0x15   : > { %p5800_p10 = pneg %p5799_p9 }
  0x17   : > { %p5805_p12 = pnand %p5803_p11, %p5800_p10 }
  0x19   : > { %5808 = shalt.err (!%p5805_p12)
}
  0x1a   : > { %s5809_s23 = scalar_lea.vmem %s5994_s9, 4096  ;;  %p5817_p4 = scmp.lt.s32.totalorder %s5994_s9, %s5994_s9 }
  0x1b   : > { %p5810_p13 = scmp.ne.s32.totalorder %s5994_s9, %s5809_s23  ;;  %p5818_p2 = scmp.lt.s32.totalorder %s5809_s23, %s5809_s23 }
  0x1d   : > { %p5812_p0 = pnand %p5810_p13, %p6017_p8  ;;  %p5819_p7 = por %p5818_p2, %p5817_p4 }
  0x1f   : > { %p5813_p1 = pneg %p5812_p0 }
  0x21   : > { %p5820_p9 = pnand %p5819_p7, %p5813_p1 }
  0x23   : > { %5823 = shalt.err (!%p5820_p9)
}
  0x24   : > { %s5916_s24 = smov 256   ;;  %s5917_s25 = smov 16  }
  0x25   : > { %5007 = dma.hbm_to_vmem [thread:$0]  (!%p6000_p5), %s6687_s2, 4096, %s5994_s9, [#allocation12], %s5916_s24, %s5916_s24, %s5917_s25  }
  0x26   : > { %s6706_s11 = smov (%p6005_p6, %s30_s11), 0  ;;  %s5824_s16 = scalar_lea.hbm %s6686_s1, 4096 }
  0x27   : > { %p5825_p2 = scmp.ne.s32.totalorder %s6686_s1, %s5824_s16  ;;  %p5831_p12 = scmp.lt.u32.totalorder %s5824_s16, %s6686_s1 }
  0x29   : > { %p5827_p10 = pnand %p5825_p2, %p6017_p8 }
  0x2b   : > { %p5828_p11 = pneg %p5827_p10 }
  0x2d   : > { %p5833_p13 = pnand %p5831_p12, %p5828_p11 }
  0x2f   : > { %5836 = shalt.err (!%p5833_p13)
}
  0x30   : > { %s5837_s9 = scalar_lea.vmem %s203_s14, 4096  ;;  %p5845_p4 = scmp.lt.s32.totalorder %s203_s14, %s203_s14 }
  0x31   : > { %p5838_p6 = scmp.ne.s32.totalorder %s203_s14, %s5837_s9  ;;  %p5846_p7 = scmp.lt.s32.totalorder %s5837_s9, %s5837_s9 }
  0x33   : > { %p5840_p0 = pnand %p5838_p6, %p6017_p8  ;;  %p5847_p9 = por %p5846_p7, %p5845_p4 }
  0x35   : > { %p5841_p1 = pneg %p5840_p0 }
  0x37   : > { %p5848_p3 = pnand %p5847_p9, %p5841_p1 }
  0x39   : > { %5851 = shalt.err (!%p5848_p3)
}
  0x3a   : > { %5004 = dma.hbm_to_vmem [thread:$0]  (!%p6000_p5), %s6686_s1, 4096, %s203_s14, [#allocation10], %s5916_s24, %s5916_s24, %s5917_s25  }
  0x3b   : > { %s5918_s23 = smov [#allocation13]   ;;  %s5852_s15 = scalar_lea.hbm %s6688_s3, 8192 }
  0x3c   : > { %s228_s6 = sshll.u32 %s5918_s23, 4  ;;  %p5853_p3 = scmp.ne.s32.totalorder %s6688_s3, %s5852_s15  ;;  %s229_s6 = int_to_ptr.vmem [resolvable:$true] %s228_s6 }
  0x3d   : > { %p5859_p11 = scmp.lt.u32.totalorder %s5852_s15, %s6688_s3 }
  0x3e   : > { %p5855_p2 = pnand %p5853_p3, %p6017_p8 }
  0x40   : > { %p5856_p10 = pneg %p5855_p2 }
  0x42   : > { %p5861_p12 = pnand %p5859_p11, %p5856_p10 }
  0x44   : > { %5864 = shalt.err (!%p5861_p12)
}
  0x45   : > { %s5865_s14 = scalar_lea.vmem %s229_s6, 8192  ;;  %p5873_p1 = scmp.lt.s32.totalorder %s229_s6, %s229_s6 }
  0x46   : > { %p5866_p13 = scmp.ne.s32.totalorder %s229_s6, %s5865_s14  ;;  %p5874_p4 = scmp.lt.s32.totalorder %s5865_s14, %s5865_s14 }
  0x48   : > { %p5868_p6 = pnand %p5866_p13, %p6017_p8  ;;  %p5875_p7 = por %p5874_p4, %p5873_p1 }
  0x4a   : > { %p5869_p0 = pneg %p5868_p6 }
  0x4c   : > { %p5876_p9 = pnand %p5875_p7, %p5869_p0 }
  0x4e   : > { %5879 = shalt.err (!%p5876_p9)
}
  0x4f   : > { %5010 = dma.hbm_to_vmem [thread:$0]  (!%p6000_p5), %s6688_s3, 8192, %s229_s6, [#allocation12], %s5916_s24, %s5916_s24, %s5917_s25  }
  0x50   : > { %p6701_p3 = scmp.ne.s32.totalorder %s6697_s30, 0 }
  0x51   : > { %p6702_p8 = scmp.ne.s32.totalorder (!%p6701_p3), %s6696_s29, 0 }
  0x52   : > { %253 = sbr.rel (%p6701_p3) target bundleno = 3354 (0xd1a), region = 44 }
  0x59   : > { %5893 = dma.done.wait (%p6702_p8), [#allocation10], 4096  }
  0x5a   : > { %5895 = vsyncadd (%p6702_p8), [#allocation10], 4294963200 }
  0x5b   : > { %5897 = dma.done.wait (%p6702_p8), [#allocation12], 12288  }
  0x5c   : > { %5899 = vsyncadd (%p6702_p8), [#allocation12], 4294955008  ;;  %p4557_p2 = scmp.ne.s32.totalorder %s5904_s26, 0 }
  0x5d   : > { %v348_v1 = vld [vmem:[%s6685_s0] sm:$0xff] (!%p4557_p2)  ;;  %v350_v2 = vld [vmem:[%s6685_s0 + $0x8] sm:$0xff] (!%p4557_p2)  ;;  %v352_v3 = vld [vmem:[%s6685_s0 + $0x10] sm:$0xff] (!%p4557_p2) }
  0x5e   : > { %308 = sbr.rel (%p4557_p2) target bundleno = 104 (0x68), region = 60  ;;  %349 = vst [vmem:[#allocation2] sm:$0xff] (!%p4557_p2), %v348_v1  ;;  %351 = vst [vmem:[#allocation2 + $0x8] sm:$0xff] (!%p4557_p2), %v350_v2  ;;  %v354_v4 = vld [vmem:[%s6685_s0 + $0x18] sm:$0xff] (!%p4557_p2)  ;;  %v356_v5 = vld [vmem:[%s6685_s0 + $0x20] sm:$0xff] (!%p4557_p2) }
  0x5f   : > { %353 = vst [vmem:[#allocation2 + $0x10] sm:$0xff] (!%p4557_p2), %v352_v3  ;;  %v358_v6 = vld [vmem:[%s6685_s0 + $0x28] sm:$0xff] (!%p4557_p2)  ;;  %355 = vst [vmem:[#allocation2 + $0x18] sm:$0xff] (!%p4557_p2), %v354_v4  ;;  %v360_v7 = vld [vmem:[%s6685_s0 + $0x30] sm:$0xff] (!%p4557_p2) }
  0x60   : > { %357 = vst [vmem:[#allocation2 + $0x20] sm:$0xff] (!%p4557_p2), %v356_v5  ;;  %359 = vst [vmem:[#allocation2 + $0x28] sm:$0xff] (!%p4557_p2), %v358_v6  ;;  %v362_v8 = vld [vmem:[%s6685_s0 + $0x38] sm:$0xff] (!%p4557_p2) }
  0x61   : > { %361 = vst [vmem:[#allocation2 + $0x30] sm:$0xff] (!%p4557_p2), %v360_v7  ;;  %363 = vst [vmem:[#allocation2 + $0x38] sm:$0xff] (!%p4557_p2), %v362_v8 }
  0x65   : > { %371 = vsyncadd [#allocation7], 1024 }
  0x66   : > { %5900 = dma.done.wait [#allocation7], 1024 }
  0x67   : > { %5901 = vsyncadd [#allocation7], 4294966272 }
  0x68 PF: > { %s4558_s19 = sshll.u32 %s5904_s26, 2  ;;  %381 = sbr.rel (%p4557_p2) target bundleno = 412 (0x19c), region = 98  ;;  %v5052_v10 = vld [vmem:[#allocation9 + $0x4] ss:$16 sps:$4 sm:$0xff] (!%p4557_p2)   ;;  %v5054_v11 = vld [vmem:[#allocation9 + $0xc] ss:$16 sps:$4 sm:$0xff] (!%p4557_p2)   ;;  %v426_v51 = vlaneseq (!%p4557_p2) }
  0x69   : > { %s377_s9 = scalar_lea.vmem %s6689_s4, %s4558_s19  ;;  %v5919_v12 = vmov (!%p4557_p2), 0   ;;  %606 = vmatprep.subr.bf16.mxu0 (!%p4557_p2), %v5052_v10  ;;  %v5056_v13 = vld [vmem:[#allocation9] ss:$16 sps:$4 sm:$0xff] (!%p4557_p2)   ;;  %v5057_v14 = vld [vmem:[#allocation9 + $0x8] ss:$16 sps:$4 sm:$0xff] (!%p4557_p2)   ;;  %719 = vmatprep.subr.bf16.mxu1 (!%p4557_p2), %v5054_v11 }
  0x6a   : > { %v6128_v9 = vld [vmem:[%s377_s9] sm:$0xf]  ;;  %638 = vmatprep.mubr.bf16.mxu0 (!%p4557_p2), %v5919_v12  ;;  %751 = vmatprep.mubr.bf16.mxu1 (!%p4557_p2), %v5919_v12  ;;  %v5058_v15 = vld [vmem:[#allocation9 + $0x24] ss:$16 sps:$4 sm:$0xff] (!%p4557_p2)   ;;  %v5063_v18 = vld [vmem:[#allocation9 + $0x28] ss:$16 sps:$4 sm:$0xff] (!%p4557_p2)  }
  0x6b   : > { %607 = vmatpush1.bf16.msra.mxu0 (!%p4557_p2), %v5056_v13  ;;  %720 = vmatpush1.bf16.msra.mxu1 (!%p4557_p2), %v5057_v14  ;;  %v5060_v16 = vld [vmem:[#allocation9 + $0x2c] ss:$16 sps:$4 sm:$0xff] (!%p4557_p2)   ;;  %v5062_v17 = vld [vmem:[#allocation9 + $0x20] ss:$16 sps:$4 sm:$0xff] (!%p4557_p2)   ;;  %v5064_v19 = vld [vmem:[#allocation9 + $0x44] ss:$16 sps:$4 sm:$0xff] (!%p4557_p2)  }
  0x6c   : > { %608 = vmatprep.subr.bf16.mxu0 (!%p4557_p2), %v5058_v15  ;;  %721 = vmatprep.subr.bf16.mxu1 (!%p4557_p2), %v5060_v16  ;;  %v5066_v20 = vld [vmem:[#allocation9 + $0x4c] ss:$16 sps:$4 sm:$0xff] (!%p4557_p2)   ;;  %v5068_v21 = vld [vmem:[#allocation9 + $0x40] ss:$16 sps:$4 sm:$0xff] (!%p4557_p2)   ;;  %v5069_v22 = vld [vmem:[#allocation9 + $0x48] ss:$16 sps:$4 sm:$0xff] (!%p4557_p2)  }
  0x6d   : > { %v5070_v23 = vld [vmem:[#allocation9 + $0x64] ss:$16 sps:$4 sm:$0xff] (!%p4557_p2)   ;;  %v5072_v24 = vld [vmem:[#allocation9 + $0x6c] ss:$16 sps:$4 sm:$0xff] (!%p4557_p2)   ;;  %v5074_v25 = vld [vmem:[#allocation9 + $0x60] ss:$16 sps:$4 sm:$0xff] (!%p4557_p2)  }
  0x6e   : > { %v5075_v26 = vld [vmem:[#allocation9 + $0x68] ss:$16 sps:$4 sm:$0xff] (!%p4557_p2)   ;;  %v5076_v27 = vld [vmem:[#allocation9 + $0x84] ss:$16 sps:$4 sm:$0xff] (!%p4557_p2)   ;;  %v5078_v28 = vld [vmem:[#allocation9 + $0x8c] ss:$16 sps:$4 sm:$0xff] (!%p4557_p2)  }
  0x6f   : > { %609 = vmatpush1.bf16.msra.mxu0 %v5062_v17  ;;  %722 = vmatpush1.bf16.msra.mxu1 %v5063_v18  ;;  %v5080_v29 = vld [vmem:[#allocation9 + $0x80] ss:$16 sps:$4 sm:$0xff]   ;;  %v5081_v30 = vld [vmem:[#allocation9 + $0x88] ss:$16 sps:$4 sm:$0xff]   ;;  %v5082_v31 = vld [vmem:[#allocation9 + $0xa4] ss:$16 sps:$4 sm:$0xff]  }
  0x70   : > { %610 = vmatprep.subr.bf16.mxu0 %v5064_v19  ;;  %723 = vmatprep.subr.bf16.mxu1 %v5066_v20  ;;  %v5084_v32 = vld [vmem:[#allocation9 + $0xac] ss:$16 sps:$4 sm:$0xff]   ;;  %v5086_v33 = vld [vmem:[#allocation9 + $0xa0] ss:$16 sps:$4 sm:$0xff]   ;;  %v5087_v34 = vld [vmem:[#allocation9 + $0xa8] ss:$16 sps:$4 sm:$0xff]  }
  0x71   : > { %v5088_v35 = vld [vmem:[#allocation9 + $0xc4] ss:$16 sps:$4 sm:$0xff]   ;;  %v5090_v36 = vld [vmem:[#allocation9 + $0xcc] ss:$16 sps:$4 sm:$0xff]   ;;  %v5092_v37 = vld [vmem:[#allocation9 + $0xc0] ss:$16 sps:$4 sm:$0xff]  }
  0x72   : > { %v5093_v38 = vld [vmem:[#allocation9 + $0xc8] ss:$16 sps:$4 sm:$0xff]   ;;  %v5094_v39 = vld [vmem:[#allocation9 + $0xe4] ss:$16 sps:$4 sm:$0xff]   ;;  %v5096_v40 = vld [vmem:[#allocation9 + $0xec] ss:$16 sps:$4 sm:$0xff]  }
  0x73   : > { %611 = vmatpush1.bf16.msra.mxu0 %v5068_v21  ;;  %724 = vmatpush1.bf16.msra.mxu1 %v5069_v22  ;;  %v5098_v41 = vld [vmem:[#allocation9 + $0xe0] ss:$16 sps:$4 sm:$0xff]   ;;  %v5099_v42 = vld [vmem:[#allocation9 + $0xe8] ss:$16 sps:$4 sm:$0xff]   ;;  %v427_v52 = vshrl.u32 %v426_v51, 7 }
  0x74   : > { %612 = vmatprep.subr.bf16.mxu0 %v5070_v23  ;;  %725 = vmatprep.subr.bf16.mxu1 %v5072_v24  ;;  %v385_v43 = vld [vmem:[#allocation2] sm:$0xff]  ;;  %v386_v44 = vld [vmem:[#allocation2 + $0x8] sm:$0xff]  ;;  %v387_v45 = vld [vmem:[#allocation2 + $0x10] sm:$0xff] }
  0x75   : > { %v388_v46 = vld [vmem:[#allocation2 + $0x18] sm:$0xff]  ;;  %v389_v47 = vld [vmem:[#allocation2 + $0x20] sm:$0xff]  ;;  %v390_v48 = vld [vmem:[#allocation2 + $0x28] sm:$0xff]  ;;  %v428_v53 = vsub.s32 0, %v427_v52  ;;  %v436_v54 = vsub.s32 2, %v427_v52  ;;  %v432_v55 = vsub.s32 1, %v427_v52 }
  0x76   : > { %v391_v49 = vld [vmem:[#allocation2 + $0x30] sm:$0xff]  ;;  %v392_v50 = vld [vmem:[#allocation2 + $0x38] sm:$0xff]  ;;  %v440_v56 = vsub.s32 3, %v427_v52 }
  0x77   : > { %613 = vmatpush1.bf16.msra.mxu0 %v5074_v25  ;;  %726 = vmatpush1.bf16.msra.mxu1 %v5075_v26  ;;  %v6149_v57 = vrot.slane %v6128_v9, %v428_v53  ;;  %v6152_v58 = vrot.slane %v6128_v9, %v436_v54  ;;  %v6155_v59 = vrot.slane %v6128_v9, %v432_v55 }
  0x78   : > { %614 = vmatprep.subr.bf16.mxu0 %v5076_v27  ;;  %727 = vmatprep.subr.bf16.mxu1 %v5078_v28  ;;  %v6158_v60 = vrot.slane %v6128_v9, %v440_v56 }
  0x7b   : > { %615 = vmatpush1.bf16.msra.mxu0 %v5080_v29  ;;  %728 = vmatpush1.bf16.msra.mxu1 %v5081_v30 }
  0x7c   : > { %616 = vmatprep.subr.bf16.mxu0 %v5082_v31  ;;  %729 = vmatprep.subr.bf16.mxu1 %v5084_v32 }
  0x7f   : > { %617 = vmatpush1.bf16.msra.mxu0 %v5086_v33  ;;  %730 = vmatpush1.bf16.msra.mxu1 %v5087_v34 }
  0x80   : > { %618 = vmatprep.subr.bf16.mxu0 %v5088_v35  ;;  %731 = vmatprep.subr.bf16.mxu1 %v5090_v36 }
  0x83   : > { %619 = vmatpush1.bf16.msra.mxu0 %v5092_v37  ;;  %732 = vmatpush1.bf16.msra.mxu1 %v5093_v38 }
  0x84   : > { %620 = vmatprep.subr.bf16.mxu0 %v5094_v39  ;;  %733 = vmatprep.subr.bf16.mxu1 %v5096_v40 }
  0x87   : > { %621 = vmatpush1.bf16.msra.mxu0 %v5098_v41  ;;  %734 = vmatpush1.bf16.msra.mxu1 %v5099_v42 }
  0x8a   : > { %639 = vmatmul.mubr.bf16.vlgmr.msra.gmra.mrb[0].mxu0 %v385_v43  ;;  %752 = vmatmul.mubr.bf16.vlgmr.msra.gmra.mrb[0].mxu1 %v385_v43 }
  0x8b   : > { %648 = vmatprep.mubr.bf16.mxu0 %v5919_v12  ;;  %761 = vmatprep.mubr.bf16.mxu1 %v5919_v12 }
  0x92   : > { %649 = vmatmul.mubr.bf16.gmra.mrb[4].mxu0 %v386_v44  ;;  %762 = vmatmul.mubr.bf16.gmra.mrb[4].mxu1 %v386_v44 }
  0x93   : > { %658 = vmatprep.mubr.bf16.mxu0 %v5919_v12  ;;  %771 = vmatprep.mubr.bf16.mxu1 %v5919_v12 }
  0x9a   : > { %659 = vmatmul.mubr.bf16.gmra.mrb[8].mxu0 %v387_v45  ;;  %772 = vmatmul.mubr.bf16.gmra.mrb[8].mxu1 %v387_v45 }
  0x9b   : > { %668 = vmatprep.mubr.bf16.mxu0 %v5919_v12  ;;  %781 = vmatprep.mubr.bf16.mxu1 %v5919_v12 }
  0xa2   : > { %669 = vmatmul.mubr.bf16.gmra.mrb[12].mxu0 %v388_v46  ;;  %782 = vmatmul.mubr.bf16.gmra.mrb[12].mxu1 %v388_v46 }
  0xa3   : > { %678 = vmatprep.mubr.bf16.mxu0 %v5919_v12  ;;  %791 = vmatprep.mubr.bf16.mxu1 %v5919_v12 }
  0xaa   : > { %679 = vmatmul.mubr.bf16.gmra.mrb[16].mxu0 %v389_v47  ;;  %792 = vmatmul.mubr.bf16.gmra.mrb[16].mxu1 %v389_v47 }
  0xab   : > { %688 = vmatprep.mubr.bf16.mxu0 %v5919_v12  ;;  %801 = vmatprep.mubr.bf16.mxu1 %v5919_v12 }
  0xb2   : > { %689 = vmatmul.mubr.bf16.gmra.mrb[20].mxu0 %v390_v48  ;;  %802 = vmatmul.mubr.bf16.gmra.mrb[20].mxu1 %v390_v48 }
  0xb3   : > { %698 = vmatprep.mubr.bf16.mxu0 %v5919_v12  ;;  %811 = vmatprep.mubr.bf16.mxu1 %v5919_v12 }
  0xba   : > { %699 = vmatmul.mubr.bf16.gmra.mrb[24].mxu0 %v391_v49  ;;  %812 = vmatmul.mubr.bf16.gmra.mrb[24].mxu1 %v391_v49 }
  0xbb   : > { %708 = vmatprep.mubr.bf16.mxu0 %v5919_v12  ;;  %821 = vmatprep.mubr.bf16.mxu1 %v5919_v12 }
  0xc2   : > { %709 = vmatmul.mubr.bf16.gmra.mrb[28].mxu0 %v392_v50  ;;  %822 = vmatmul.mubr.bf16.gmra.mrb[28].mxu1 %v392_v50 }
 0x15d   : > { %v640_v61 = vpop.f32.mrb[0].mxu0  ;;  %v753_v62 = vpop.f32.mrb[0].mxu1 }
 0x15e   : > { %v641_v63 = vadd.f32 %v640_v61, %v6149_v57  ;;  %v754_v0 = vadd.f32 %v753_v62, %v6152_v58  ;;  %v642_v1 = vpop.f32.mrb[1].mxu0  ;;  %v755_v2 = vpop.f32.mrb[1].mxu1 }
 0x15f   : > { %v643_v3 = vadd.f32 %v642_v1, %v6155_v59  ;;  %v756_v4 = vadd.f32 %v755_v2, %v6158_v60  ;;  %v644_v5 = vpop.f32.mrb[2].mxu0  ;;  %v757_v6 = vpop.f32.mrb[2].mxu1 }
 0x160   : > { %832 = vst [vmem:[#allocation4] sm:$0xff] %v641_v63  ;;  %834 = vst [vmem:[#allocation4 + $0x10] sm:$0xff] %v754_v0  ;;  %v645_v7 = vadd.f32 %v644_v5, %v6149_v57  ;;  %v758_v8 = vadd.f32 %v757_v6, %v6152_v58  ;;  %v646_v10 = vpop.f32.mrb[3].mxu0  ;;  %v759_v11 = vpop.f32.mrb[3].mxu1 }
 0x161   : > { %833 = vst [vmem:[#allocation4 + $0x8] sm:$0xff] %v643_v3  ;;  %835 = vst [vmem:[#allocation4 + $0x18] sm:$0xff] %v756_v4  ;;  %v647_v12 = vadd.f32 %v646_v10, %v6155_v59  ;;  %v760_v13 = vadd.f32 %v759_v11, %v6158_v60 }
 0x162   : > { %836 = vst [vmem:[#allocation4 + $0x20] sm:$0xff] %v645_v7  ;;  %838 = vst [vmem:[#allocation4 + $0x30] sm:$0xff] %v758_v8 }
 0x163   : > { %837 = vst [vmem:[#allocation4 + $0x28] sm:$0xff] %v647_v12  ;;  %839 = vst [vmem:[#allocation4 + $0x38] sm:$0xff] %v760_v13 }
 0x165   : > { %v650_v14 = vpop.f32.mrb[4].mxu0  ;;  %v763_v15 = vpop.f32.mrb[4].mxu1 }
 0x166   : > { %v651_v16 = vadd.f32 %v650_v14, %v6149_v57  ;;  %v764_v17 = vadd.f32 %v763_v15, %v6152_v58  ;;  %v652_v18 = vpop.f32.mrb[5].mxu0  ;;  %v765_v19 = vpop.f32.mrb[5].mxu1 }
 0x167   : > { %v653_v20 = vadd.f32 %v652_v18, %v6155_v59  ;;  %v766_v21 = vadd.f32 %v765_v19, %v6158_v60  ;;  %v654_v22 = vpop.f32.mrb[6].mxu0  ;;  %v767_v23 = vpop.f32.mrb[6].mxu1 }
 0x168   : > { %840 = vst [vmem:[#allocation4 + $0x40] sm:$0xff] %v651_v16  ;;  %842 = vst [vmem:[#allocation4 + $0x50] sm:$0xff] %v764_v17  ;;  %v655_v24 = vadd.f32 %v654_v22, %v6149_v57  ;;  %v768_v25 = vadd.f32 %v767_v23, %v6152_v58  ;;  %v656_v26 = vpop.f32.mrb[7].mxu0  ;;  %v769_v27 = vpop.f32.mrb[7].mxu1 }
 0x169   : > { %841 = vst [vmem:[#allocation4 + $0x48] sm:$0xff] %v653_v20  ;;  %843 = vst [vmem:[#allocation4 + $0x58] sm:$0xff] %v766_v21  ;;  %v657_v28 = vadd.f32 %v656_v26, %v6155_v59  ;;  %v770_v29 = vadd.f32 %v769_v27, %v6158_v60 }
 0x16a   : > { %844 = vst [vmem:[#allocation4 + $0x60] sm:$0xff] %v655_v24  ;;  %846 = vst [vmem:[#allocation4 + $0x70] sm:$0xff] %v768_v25 }
 0x16b   : > { %845 = vst [vmem:[#allocation4 + $0x68] sm:$0xff] %v657_v28  ;;  %847 = vst [vmem:[#allocation4 + $0x78] sm:$0xff] %v770_v29 }
 0x16d   : > { %v660_v30 = vpop.f32.mrb[8].mxu0  ;;  %v773_v31 = vpop.f32.mrb[8].mxu1 }
 0x16e   : > { %v661_v32 = vadd.f32 %v660_v30, %v6149_v57  ;;  %v774_v33 = vadd.f32 %v773_v31, %v6152_v58  ;;  %v662_v34 = vpop.f32.mrb[9].mxu0  ;;  %v775_v35 = vpop.f32.mrb[9].mxu1 }
 0x16f   : > { %v663_v36 = vadd.f32 %v662_v34, %v6155_v59  ;;  %v776_v37 = vadd.f32 %v775_v35, %v6158_v60  ;;  %v664_v38 = vpop.f32.mrb[10].mxu0  ;;  %v777_v39 = vpop.f32.mrb[10].mxu1 }
 0x170   : > { %848 = vst [vmem:[#allocation4 + $0x80] sm:$0xff] %v661_v32  ;;  %850 = vst [vmem:[#allocation4 + $0x90] sm:$0xff] %v774_v33  ;;  %v665_v40 = vadd.f32 %v664_v38, %v6149_v57  ;;  %v778_v41 = vadd.f32 %v777_v39, %v6152_v58  ;;  %v666_v42 = vpop.f32.mrb[11].mxu0  ;;  %v779_v43 = vpop.f32.mrb[11].mxu1 }
 0x171   : > { %849 = vst [vmem:[#allocation4 + $0x88] sm:$0xff] %v663_v36  ;;  %851 = vst [vmem:[#allocation4 + $0x98] sm:$0xff] %v776_v37  ;;  %v667_v44 = vadd.f32 %v666_v42, %v6155_v59  ;;  %v780_v45 = vadd.f32 %v779_v43, %v6158_v60 }
 0x172   : > { %852 = vst [vmem:[#allocation4 + $0xa0] sm:$0xff] %v665_v40  ;;  %854 = vst [vmem:[#allocation4 + $0xb0] sm:$0xff] %v778_v41 }
 0x173   : > { %853 = vst [vmem:[#allocation4 + $0xa8] sm:$0xff] %v667_v44  ;;  %855 = vst [vmem:[#allocation4 + $0xb8] sm:$0xff] %v780_v45 }
 0x175   : > { %v670_v46 = vpop.f32.mrb[12].mxu0  ;;  %v783_v47 = vpop.f32.mrb[12].mxu1 }
 0x176   : > { %v671_v48 = vadd.f32 %v670_v46, %v6149_v57  ;;  %v784_v49 = vadd.f32 %v783_v47, %v6152_v58  ;;  %v672_v50 = vpop.f32.mrb[13].mxu0  ;;  %v785_v51 = vpop.f32.mrb[13].mxu1 }
 0x177   : > { %v673_v52 = vadd.f32 %v672_v50, %v6155_v59  ;;  %v786_v53 = vadd.f32 %v785_v51, %v6158_v60  ;;  %v674_v54 = vpop.f32.mrb[14].mxu0  ;;  %v787_v55 = vpop.f32.mrb[14].mxu1 }
 0x178   : > { %856 = vst [vmem:[#allocation4 + $0xc0] sm:$0xff] %v671_v48  ;;  %858 = vst [vmem:[#allocation4 + $0xd0] sm:$0xff] %v784_v49  ;;  %v675_v56 = vadd.f32 %v674_v54, %v6149_v57  ;;  %v788_v61 = vadd.f32 %v787_v55, %v6152_v58  ;;  %v676_v62 = vpop.f32.mrb[15].mxu0  ;;  %v789_v63 = vpop.f32.mrb[15].mxu1 }
 0x179   : > { %857 = vst [vmem:[#allocation4 + $0xc8] sm:$0xff] %v673_v52  ;;  %859 = vst [vmem:[#allocation4 + $0xd8] sm:$0xff] %v786_v53  ;;  %v677_v0 = vadd.f32 %v676_v62, %v6155_v59  ;;  %v790_v1 = vadd.f32 %v789_v63, %v6158_v60 }
 0x17a   : > { %860 = vst [vmem:[#allocation4 + $0xe0] sm:$0xff] %v675_v56  ;;  %862 = vst [vmem:[#allocation4 + $0xf0] sm:$0xff] %v788_v61 }
 0x17b   : > { %861 = vst [vmem:[#allocation4 + $0xe8] sm:$0xff] %v677_v0  ;;  %863 = vst [vmem:[#allocation4 + $0xf8] sm:$0xff] %v790_v1 }
 0x17d   : > { %v680_v2 = vpop.f32.mrb[16].mxu0  ;;  %v793_v3 = vpop.f32.mrb[16].mxu1 }
 0x17e   : > { %v681_v4 = vadd.f32 %v680_v2, %v6149_v57  ;;  %v794_v5 = vadd.f32 %v793_v3, %v6152_v58  ;;  %v682_v6 = vpop.f32.mrb[17].mxu0  ;;  %v795_v7 = vpop.f32.mrb[17].mxu1 }
 0x17f   : > { %v683_v8 = vadd.f32 %v682_v6, %v6155_v59  ;;  %v796_v10 = vadd.f32 %v795_v7, %v6158_v60  ;;  %v684_v11 = vpop.f32.mrb[18].mxu0  ;;  %v797_v12 = vpop.f32.mrb[18].mxu1 }
 0x180   : > { %864 = vst [vmem:[#allocation4 + $0x100] sm:$0xff] %v681_v4  ;;  %866 = vst [vmem:[#allocation4 + $0x110] sm:$0xff] %v794_v5  ;;  %v685_v13 = vadd.f32 %v684_v11, %v6149_v57  ;;  %v798_v14 = vadd.f32 %v797_v12, %v6152_v58  ;;  %v686_v15 = vpop.f32.mrb[19].mxu0  ;;  %v799_v16 = vpop.f32.mrb[19].mxu1 }
 0x181   : > { %865 = vst [vmem:[#allocation4 + $0x108] sm:$0xff] %v683_v8  ;;  %867 = vst [vmem:[#allocation4 + $0x118] sm:$0xff] %v796_v10  ;;  %v687_v17 = vadd.f32 %v686_v15, %v6155_v59  ;;  %v800_v18 = vadd.f32 %v799_v16, %v6158_v60 }
 0x182   : > { %868 = vst [vmem:[#allocation4 + $0x120] sm:$0xff] %v685_v13  ;;  %870 = vst [vmem:[#allocation4 + $0x130] sm:$0xff] %v798_v14 }
 0x183   : > { %869 = vst [vmem:[#allocation4 + $0x128] sm:$0xff] %v687_v17  ;;  %871 = vst [vmem:[#allocation4 + $0x138] sm:$0xff] %v800_v18 }
 0x185   : > { %v690_v19 = vpop.f32.mrb[20].mxu0  ;;  %v803_v20 = vpop.f32.mrb[20].mxu1 }
 0x186   : > { %v691_v21 = vadd.f32 %v690_v19, %v6149_v57  ;;  %v804_v22 = vadd.f32 %v803_v20, %v6152_v58  ;;  %v692_v23 = vpop.f32.mrb[21].mxu0  ;;  %v805_v24 = vpop.f32.mrb[21].mxu1 }
 0x187   : > { %v693_v25 = vadd.f32 %v692_v23, %v6155_v59  ;;  %v806_v26 = vadd.f32 %v805_v24, %v6158_v60  ;;  %v694_v27 = vpop.f32.mrb[22].mxu0  ;;  %v807_v28 = vpop.f32.mrb[22].mxu1 }
 0x188   : > { %872 = vst [vmem:[#allocation4 + $0x140] sm:$0xff] %v691_v21  ;;  %874 = vst [vmem:[#allocation4 + $0x150] sm:$0xff] %v804_v22  ;;  %v695_v29 = vadd.f32 %v694_v27, %v6149_v57  ;;  %v808_v30 = vadd.f32 %v807_v28, %v6152_v58  ;;  %v696_v31 = vpop.f32.mrb[23].mxu0  ;;  %v809_v32 = vpop.f32.mrb[23].mxu1 }
 0x189   : > { %873 = vst [vmem:[#allocation4 + $0x148] sm:$0xff] %v693_v25  ;;  %875 = vst [vmem:[#allocation4 + $0x158] sm:$0xff] %v806_v26  ;;  %v697_v33 = vadd.f32 %v696_v31, %v6155_v59  ;;  %v810_v34 = vadd.f32 %v809_v32, %v6158_v60 }
 0x18a   : > { %876 = vst [vmem:[#allocation4 + $0x160] sm:$0xff] %v695_v29  ;;  %878 = vst [vmem:[#allocation4 + $0x170] sm:$0xff] %v808_v30 }
 0x18b   : > { %877 = vst [vmem:[#allocation4 + $0x168] sm:$0xff] %v697_v33  ;;  %879 = vst [vmem:[#allocation4 + $0x178] sm:$0xff] %v810_v34 }
 0x18d   : > { %v700_v35 = vpop.f32.mrb[24].mxu0  ;;  %v813_v36 = vpop.f32.mrb[24].mxu1 }
 0x18e   : > { %v701_v37 = vadd.f32 %v700_v35, %v6149_v57  ;;  %v814_v38 = vadd.f32 %v813_v36, %v6152_v58  ;;  %v702_v39 = vpop.f32.mrb[25].mxu0  ;;  %v815_v40 = vpop.f32.mrb[25].mxu1 }
 0x18f   : > { %v703_v41 = vadd.f32 %v702_v39, %v6155_v59  ;;  %v816_v42 = vadd.f32 %v815_v40, %v6158_v60  ;;  %v704_v43 = vpop.f32.mrb[26].mxu0  ;;  %v817_v44 = vpop.f32.mrb[26].mxu1 }
 0x190   : > { %880 = vst [vmem:[#allocation4 + $0x180] sm:$0xff] %v701_v37  ;;  %882 = vst [vmem:[#allocation4 + $0x190] sm:$0xff] %v814_v38  ;;  %v705_v45 = vadd.f32 %v704_v43, %v6149_v57  ;;  %v818_v46 = vadd.f32 %v817_v44, %v6152_v58  ;;  %v706_v47 = vpop.f32.mrb[27].mxu0  ;;  %v819_v48 = vpop.f32.mrb[27].mxu1 }
 0x191   : > { %881 = vst [vmem:[#allocation4 + $0x188] sm:$0xff] %v703_v41  ;;  %883 = vst [vmem:[#allocation4 + $0x198] sm:$0xff] %v816_v42  ;;  %v707_v49 = vadd.f32 %v706_v47, %v6155_v59  ;;  %v820_v50 = vadd.f32 %v819_v48, %v6158_v60 }
 0x192   : > { %884 = vst [vmem:[#allocation4 + $0x1a0] sm:$0xff] %v705_v45  ;;  %886 = vst [vmem:[#allocation4 + $0x1b0] sm:$0xff] %v818_v46 }
 0x193   : > { %885 = vst [vmem:[#allocation4 + $0x1a8] sm:$0xff] %v707_v49  ;;  %887 = vst [vmem:[#allocation4 + $0x1b8] sm:$0xff] %v820_v50 }
 0x195   : > { %v710_v51 = vpop.f32.mrb[28].mxu0  ;;  %v823_v52 = vpop.f32.mrb[28].mxu1 }
 0x196   : > { %v711_v53 = vadd.f32 %v710_v51, %v6149_v57  ;;  %v824_v54 = vadd.f32 %v823_v52, %v6152_v58  ;;  %v712_v55 = vpop.f32.mrb[29].mxu0  ;;  %v825_v56 = vpop.f32.mrb[29].mxu1 }
 0x197   : > { %v713_v61 = vadd.f32 %v712_v55, %v6155_v59  ;;  %v826_v62 = vadd.f32 %v825_v56, %v6158_v60  ;;  %v714_v63 = vpop.f32.mrb[30].mxu0  ;;  %v827_v0 = vpop.f32.mrb[30].mxu1 }
 0x198   : > { %888 = vst [vmem:[#allocation4 + $0x1c0] sm:$0xff] %v711_v53  ;;  %890 = vst [vmem:[#allocation4 + $0x1d0] sm:$0xff] %v824_v54  ;;  %v715_v1 = vadd.f32 %v714_v63, %v6149_v57  ;;  %v828_v2 = vadd.f32 %v827_v0, %v6152_v58  ;;  %v716_v3 = vpop.f32.mrb[31].mxu0  ;;  %v829_v4 = vpop.f32.mrb[31].mxu1 }
 0x199   : > { %889 = vst [vmem:[#allocation4 + $0x1c8] sm:$0xff] %v713_v61  ;;  %891 = vst [vmem:[#allocation4 + $0x1d8] sm:$0xff] %v826_v62  ;;  %v717_v5 = vadd.f32 %v716_v3, %v6155_v59  ;;  %v830_v6 = vadd.f32 %v829_v4, %v6158_v60 }
 0x19a   : > { %892 = vst [vmem:[#allocation4 + $0x1e0] sm:$0xff] %v715_v1  ;;  %894 = vst [vmem:[#allocation4 + $0x1f0] sm:$0xff] %v828_v2 }
 0x19b   : > { %893 = vst [vmem:[#allocation4 + $0x1e8] sm:$0xff] %v717_v5  ;;  %895 = vst [vmem:[#allocation4 + $0x1f8] sm:$0xff] %v830_v6 }
 0x19c PF: > { %p4592_p5 = scmp.le.s32.totalorder %s5904_s26, 0 }
 0x19d   : > { %p900_p10 = scmp.gt.s32.totalorder (!%p4592_p5), %s5904_s26, 1  ;;  %v5920_v57 = vmov (!%p4592_p5), 0   ;;  %v903_v37 = vld [vmem:[#allocation3] sm:$0xff] (!%p4592_p5)  ;;  %v904_v38 = vld [vmem:[#allocation3 + $0x8] sm:$0xff] (!%p4592_p5)  ;;  %v905_v39 = vld [vmem:[#allocation3 + $0x10] sm:$0xff] (!%p4592_p5)  ;;  %v947_v45 = vlaneseq (!%p4592_p5) }
 0x19e   : > { %899 = sbr.rel (%p4592_p5) target bundleno = 733 (0x2dd), region = 102  ;;  %1159 = vmatprep.mubr.bf16.mxu0 (!%p4592_p5), %v5920_v57  ;;  %1272 = vmatprep.mubr.bf16.mxu1 (!%p4592_p5), %v5920_v57  ;;  %v906_v40 = vld [vmem:[#allocation3 + $0x18] sm:$0xff] (!%p4592_p5)  ;;  %v907_v41 = vld [vmem:[#allocation3 + $0x20] sm:$0xff] (!%p4592_p5)  ;;  %v908_v42 = vld [vmem:[#allocation3 + $0x28] sm:$0xff] (!%p4592_p5) }
 0x19f   : > { %v909_v43 = vld [vmem:[#allocation3 + $0x30] sm:$0xff] (!%p4592_p5)  ;;  %v910_v44 = vld [vmem:[#allocation3 + $0x38] sm:$0xff] (!%p4592_p5)  ;;  %v948_v46 = vshrl.u32 (!%p4592_p5), %v947_v45, 7 }
 0x1a1   : > { %v949_v47 = vsub.s32 (!%p4592_p5), 0, %v948_v46  ;;  %v957_v48 = vsub.s32 (!%p4592_p5), 2, %v948_v46  ;;  %v953_v49 = vsub.s32 (!%p4592_p5), 1, %v948_v46  ;;  %v961_v50 = vsub.s32 (!%p4592_p5), 3, %v948_v46 }
 0x1a3   : > { %v6278_v51 = vrot.slane (!%p4592_p5), %v6128_v9, %v949_v47  ;;  %v6281_v52 = vrot.slane (!%p4592_p5), %v6128_v9, %v957_v48  ;;  %v6284_v53 = vrot.slane (!%p4592_p5), %v6128_v9, %v953_v49  ;;  %v6287_v54 = vrot.slane (!%p4592_p5), %v6128_v9, %v961_v50 }
 0x1a5   : > { %s901_s10 = scalar_select %p900_p10, %s5904_s26, 1 }
 0x1a7   : > { %s4593_s30 = sadd.s32 4294967295, %s901_s10 }
 0x1a8   : > { %s4958_s20 = sshll.u32 %s4593_s30, 8 }
 0x1a9   : > { %s6229_s24 = scalar_lea.vmem [#allocation11], %s4958_s20 }
 0x1aa   : > { %v5100_v58 = vld [vmem:[%s6229_s24 + $0x4] ss:$16 sps:$4 sm:$0xff]   ;;  %v5102_v59 = vld [vmem:[%s6229_s24 + $0xc] ss:$16 sps:$4 sm:$0xff]   ;;  %v5104_v60 = vld [vmem:[%s6229_s24] ss:$16 sps:$4 sm:$0xff]  }
 0x1ab   : > { %1127 = vmatprep.subr.bf16.mxu0 %v5100_v58  ;;  %v5105_v7 = vld [vmem:[%s6229_s24 + $0x8] ss:$16 sps:$4 sm:$0xff]   ;;  %1240 = vmatprep.subr.bf16.mxu1 %v5102_v59  ;;  %v5106_v8 = vld [vmem:[%s6229_s24 + $0x24] ss:$16 sps:$4 sm:$0xff]   ;;  %v5108_v10 = vld [vmem:[%s6229_s24 + $0x2c] ss:$16 sps:$4 sm:$0xff]  }
 0x1ac   : > { %1128 = vmatpush1.bf16.msra.mxu0 %v5104_v60  ;;  %1241 = vmatpush1.bf16.msra.mxu1 %v5105_v7  ;;  %v5110_v11 = vld [vmem:[%s6229_s24 + $0x20] ss:$16 sps:$4 sm:$0xff]   ;;  %v5111_v12 = vld [vmem:[%s6229_s24 + $0x28] ss:$16 sps:$4 sm:$0xff]   ;;  %v5112_v13 = vld [vmem:[%s6229_s24 + $0x44] ss:$16 sps:$4 sm:$0xff]  }
 0x1ad   : > { %1129 = vmatprep.subr.bf16.mxu0 %v5106_v8  ;;  %1242 = vmatprep.subr.bf16.mxu1 %v5108_v10  ;;  %v5114_v14 = vld [vmem:[%s6229_s24 + $0x4c] ss:$16 sps:$4 sm:$0xff]   ;;  %v5116_v15 = vld [vmem:[%s6229_s24 + $0x40] ss:$16 sps:$4 sm:$0xff]   ;;  %v5117_v16 = vld [vmem:[%s6229_s24 + $0x48] ss:$16 sps:$4 sm:$0xff]  }
 0x1ae   : > { %v5118_v17 = vld [vmem:[%s6229_s24 + $0x64] ss:$16 sps:$4 sm:$0xff]   ;;  %v5120_v18 = vld [vmem:[%s6229_s24 + $0x6c] ss:$16 sps:$4 sm:$0xff]   ;;  %v5122_v19 = vld [vmem:[%s6229_s24 + $0x60] ss:$16 sps:$4 sm:$0xff]  }
 0x1af   : > { %v5123_v20 = vld [vmem:[%s6229_s24 + $0x68] ss:$16 sps:$4 sm:$0xff]   ;;  %v5124_v21 = vld [vmem:[%s6229_s24 + $0x84] ss:$16 sps:$4 sm:$0xff]   ;;  %v5126_v22 = vld [vmem:[%s6229_s24 + $0x8c] ss:$16 sps:$4 sm:$0xff]  }
 0x1b0   : > { %1130 = vmatpush1.bf16.msra.mxu0 %v5110_v11  ;;  %1243 = vmatpush1.bf16.msra.mxu1 %v5111_v12  ;;  %v5128_v23 = vld [vmem:[%s6229_s24 + $0x80] ss:$16 sps:$4 sm:$0xff]   ;;  %v5129_v24 = vld [vmem:[%s6229_s24 + $0x88] ss:$16 sps:$4 sm:$0xff]   ;;  %v5130_v25 = vld [vmem:[%s6229_s24 + $0xa4] ss:$16 sps:$4 sm:$0xff]  }
 0x1b1   : > { %1131 = vmatprep.subr.bf16.mxu0 %v5112_v13  ;;  %1244 = vmatprep.subr.bf16.mxu1 %v5114_v14  ;;  %v5132_v26 = vld [vmem:[%s6229_s24 + $0xac] ss:$16 sps:$4 sm:$0xff]   ;;  %v5134_v27 = vld [vmem:[%s6229_s24 + $0xa0] ss:$16 sps:$4 sm:$0xff]   ;;  %v5135_v28 = vld [vmem:[%s6229_s24 + $0xa8] ss:$16 sps:$4 sm:$0xff]  }
 0x1b2   : > { %v5136_v29 = vld [vmem:[%s6229_s24 + $0xc4] ss:$16 sps:$4 sm:$0xff]   ;;  %v5138_v30 = vld [vmem:[%s6229_s24 + $0xcc] ss:$16 sps:$4 sm:$0xff]   ;;  %v5140_v31 = vld [vmem:[%s6229_s24 + $0xc0] ss:$16 sps:$4 sm:$0xff]  }
 0x1b3   : > { %v5141_v32 = vld [vmem:[%s6229_s24 + $0xc8] ss:$16 sps:$4 sm:$0xff]   ;;  %v5142_v33 = vld [vmem:[%s6229_s24 + $0xe4] ss:$16 sps:$4 sm:$0xff]   ;;  %v5144_v34 = vld [vmem:[%s6229_s24 + $0xec] ss:$16 sps:$4 sm:$0xff]  }
 0x1b4   : > { %1132 = vmatpush1.bf16.msra.mxu0 %v5116_v15  ;;  %1245 = vmatpush1.bf16.msra.mxu1 %v5117_v16  ;;  %v5146_v35 = vld [vmem:[%s6229_s24 + $0xe0] ss:$16 sps:$4 sm:$0xff]   ;;  %v5147_v36 = vld [vmem:[%s6229_s24 + $0xe8] ss:$16 sps:$4 sm:$0xff]  }
 0x1b5   : > { %1133 = vmatprep.subr.bf16.mxu0 %v5118_v17  ;;  %1246 = vmatprep.subr.bf16.mxu1 %v5120_v18 }
 0x1b8   : > { %1134 = vmatpush1.bf16.msra.mxu0 %v5122_v19  ;;  %1247 = vmatpush1.bf16.msra.mxu1 %v5123_v20 }
 0x1b9   : > { %1135 = vmatprep.subr.bf16.mxu0 %v5124_v21  ;;  %1248 = vmatprep.subr.bf16.mxu1 %v5126_v22 }
 0x1bc   : > { %1136 = vmatpush1.bf16.msra.mxu0 %v5128_v23  ;;  %1249 = vmatpush1.bf16.msra.mxu1 %v5129_v24 }
 0x1bd   : > { %1137 = vmatprep.subr.bf16.mxu0 %v5130_v25  ;;  %1250 = vmatprep.subr.bf16.mxu1 %v5132_v26 }
 0x1c0   : > { %1138 = vmatpush1.bf16.msra.mxu0 %v5134_v27  ;;  %1251 = vmatpush1.bf16.msra.mxu1 %v5135_v28 }
 0x1c1   : > { %1139 = vmatprep.subr.bf16.mxu0 %v5136_v29  ;;  %1252 = vmatprep.subr.bf16.mxu1 %v5138_v30 }
 0x1c4   : > { %1140 = vmatpush1.bf16.msra.mxu0 %v5140_v31  ;;  %1253 = vmatpush1.bf16.msra.mxu1 %v5141_v32 }
 0x1c5   : > { %1141 = vmatprep.subr.bf16.mxu0 %v5142_v33  ;;  %1254 = vmatprep.subr.bf16.mxu1 %v5144_v34 }
 0x1c8   : > { %1142 = vmatpush1.bf16.msra.mxu0 %v5146_v35  ;;  %1255 = vmatpush1.bf16.msra.mxu1 %v5147_v36 }
 0x1cb   : > { %1160 = vmatmul.mubr.bf16.vlgmr.msra.gmra.mrb[0].mxu0 %v903_v37  ;;  %1273 = vmatmul.mubr.bf16.vlgmr.msra.gmra.mrb[0].mxu1 %v903_v37 }
 0x1cc   : > { %1169 = vmatprep.mubr.bf16.mxu0 %v5920_v57  ;;  %1282 = vmatprep.mubr.bf16.mxu1 %v5920_v57 }
 0x1d3   : > { %1170 = vmatmul.mubr.bf16.gmra.mrb[4].mxu0 %v904_v38  ;;  %1283 = vmatmul.mubr.bf16.gmra.mrb[4].mxu1 %v904_v38 }
 0x1d4   : > { %1179 = vmatprep.mubr.bf16.mxu0 %v5920_v57  ;;  %1292 = vmatprep.mubr.bf16.mxu1 %v5920_v57 }
 0x1db   : > { %1180 = vmatmul.mubr.bf16.gmra.mrb[8].mxu0 %v905_v39  ;;  %1293 = vmatmul.mubr.bf16.gmra.mrb[8].mxu1 %v905_v39 }
 0x1dc   : > { %1189 = vmatprep.mubr.bf16.mxu0 %v5920_v57  ;;  %1302 = vmatprep.mubr.bf16.mxu1 %v5920_v57 }
 0x1e3   : > { %1190 = vmatmul.mubr.bf16.gmra.mrb[12].mxu0 %v906_v40  ;;  %1303 = vmatmul.mubr.bf16.gmra.mrb[12].mxu1 %v906_v40 }
 0x1e4   : > { %1199 = vmatprep.mubr.bf16.mxu0 %v5920_v57  ;;  %1312 = vmatprep.mubr.bf16.mxu1 %v5920_v57 }
 0x1eb   : > { %1200 = vmatmul.mubr.bf16.gmra.mrb[16].mxu0 %v907_v41  ;;  %1313 = vmatmul.mubr.bf16.gmra.mrb[16].mxu1 %v907_v41 }
 0x1ec   : > { %1209 = vmatprep.mubr.bf16.mxu0 %v5920_v57  ;;  %1322 = vmatprep.mubr.bf16.mxu1 %v5920_v57 }
 0x1f3   : > { %1210 = vmatmul.mubr.bf16.gmra.mrb[20].mxu0 %v908_v42  ;;  %1323 = vmatmul.mubr.bf16.gmra.mrb[20].mxu1 %v908_v42 }
 0x1f4   : > { %1219 = vmatprep.mubr.bf16.mxu0 %v5920_v57  ;;  %1332 = vmatprep.mubr.bf16.mxu1 %v5920_v57 }
 0x1fb   : > { %1220 = vmatmul.mubr.bf16.gmra.mrb[24].mxu0 %v909_v43  ;;  %1333 = vmatmul.mubr.bf16.gmra.mrb[24].mxu1 %v909_v43 }
 0x1fc   : > { %1229 = vmatprep.mubr.bf16.mxu0 %v5920_v57  ;;  %1342 = vmatprep.mubr.bf16.mxu1 %v5920_v57 }
 0x203   : > { %1230 = vmatmul.mubr.bf16.gmra.mrb[28].mxu0 %v910_v44  ;;  %1343 = vmatmul.mubr.bf16.gmra.mrb[28].mxu1 %v910_v44 }
 0x29e   : > { %v1161_v55 = vpop.f32.mrb[0].mxu0  ;;  %v1274_v56 = vpop.f32.mrb[0].mxu1 }
 0x29f   : > { %v1162_v61 = vadd.f32 %v1161_v55, %v6278_v51  ;;  %v1275_v62 = vadd.f32 %v1274_v56, %v6281_v52  ;;  %v1163_v63 = vpop.f32.mrb[1].mxu0  ;;  %v1276_v0 = vpop.f32.mrb[1].mxu1 }
 0x2a0   : > { %v1164_v1 = vadd.f32 %v1163_v63, %v6284_v53  ;;  %v1277_v2 = vadd.f32 %v1276_v0, %v6287_v54  ;;  %v1165_v3 = vpop.f32.mrb[2].mxu0  ;;  %v1278_v4 = vpop.f32.mrb[2].mxu1 }
 0x2a1   : > { %1353 = vst [vmem:[#allocation4] sm:$0xff] %v1162_v61  ;;  %1355 = vst [vmem:[#allocation4 + $0x10] sm:$0xff] %v1275_v62  ;;  %v1166_v5 = vadd.f32 %v1165_v3, %v6278_v51  ;;  %v1279_v9 = vadd.f32 %v1278_v4, %v6281_v52  ;;  %v1167_v6 = vpop.f32.mrb[3].mxu0  ;;  %v1280_v57 = vpop.f32.mrb[3].mxu1 }
 0x2a2   : > { %1354 = vst [vmem:[#allocation4 + $0x8] sm:$0xff] %v1164_v1  ;;  %1356 = vst [vmem:[#allocation4 + $0x18] sm:$0xff] %v1277_v2  ;;  %v1168_v58 = vadd.f32 %v1167_v6, %v6284_v53  ;;  %v1281_v59 = vadd.f32 %v1280_v57, %v6287_v54 }
 0x2a3   : > { %1357 = vst [vmem:[#allocation4 + $0x20] sm:$0xff] %v1166_v5  ;;  %1359 = vst [vmem:[#allocation4 + $0x30] sm:$0xff] %v1279_v9 }
 0x2a4   : > { %1358 = vst [vmem:[#allocation4 + $0x28] sm:$0xff] %v1168_v58  ;;  %1360 = vst [vmem:[#allocation4 + $0x38] sm:$0xff] %v1281_v59 }
 0x2a6   : > { %v1171_v60 = vpop.f32.mrb[4].mxu0  ;;  %v1284_v7 = vpop.f32.mrb[4].mxu1 }
 0x2a7   : > { %v1172_v8 = vadd.f32 %v1171_v60, %v6278_v51  ;;  %v1285_v10 = vadd.f32 %v1284_v7, %v6281_v52  ;;  %v1173_v11 = vpop.f32.mrb[5].mxu0  ;;  %v1286_v12 = vpop.f32.mrb[5].mxu1 }
 0x2a8   : > { %v1174_v13 = vadd.f32 %v1173_v11, %v6284_v53  ;;  %v1287_v14 = vadd.f32 %v1286_v12, %v6287_v54  ;;  %v1175_v15 = vpop.f32.mrb[6].mxu0  ;;  %v1288_v16 = vpop.f32.mrb[6].mxu1 }
 0x2a9   : > { %1361 = vst [vmem:[#allocation4 + $0x40] sm:$0xff] %v1172_v8  ;;  %1363 = vst [vmem:[#allocation4 + $0x50] sm:$0xff] %v1285_v10  ;;  %v1176_v17 = vadd.f32 %v1175_v15, %v6278_v51  ;;  %v1289_v18 = vadd.f32 %v1288_v16, %v6281_v52  ;;  %v1177_v19 = vpop.f32.mrb[7].mxu0  ;;  %v1290_v20 = vpop.f32.mrb[7].mxu1 }
 0x2aa   : > { %1362 = vst [vmem:[#allocation4 + $0x48] sm:$0xff] %v1174_v13  ;;  %1364 = vst [vmem:[#allocation4 + $0x58] sm:$0xff] %v1287_v14  ;;  %v1178_v21 = vadd.f32 %v1177_v19, %v6284_v53  ;;  %v1291_v22 = vadd.f32 %v1290_v20, %v6287_v54 }
 0x2ab   : > { %1365 = vst [vmem:[#allocation4 + $0x60] sm:$0xff] %v1176_v17  ;;  %1367 = vst [vmem:[#allocation4 + $0x70] sm:$0xff] %v1289_v18 }
 0x2ac   : > { %1366 = vst [vmem:[#allocation4 + $0x68] sm:$0xff] %v1178_v21  ;;  %1368 = vst [vmem:[#allocation4 + $0x78] sm:$0xff] %v1291_v22 }
 0x2ae   : > { %v1181_v23 = vpop.f32.mrb[8].mxu0  ;;  %v1294_v24 = vpop.f32.mrb[8].mxu1 }
 0x2af   : > { %v1182_v25 = vadd.f32 %v1181_v23, %v6278_v51  ;;  %v1295_v26 = vadd.f32 %v1294_v24, %v6281_v52  ;;  %v1183_v27 = vpop.f32.mrb[9].mxu0  ;;  %v1296_v28 = vpop.f32.mrb[9].mxu1 }
 0x2b0   : > { %v1184_v29 = vadd.f32 %v1183_v27, %v6284_v53  ;;  %v1297_v30 = vadd.f32 %v1296_v28, %v6287_v54  ;;  %v1185_v31 = vpop.f32.mrb[10].mxu0  ;;  %v1298_v32 = vpop.f32.mrb[10].mxu1 }
 0x2b1   : > { %1369 = vst [vmem:[#allocation4 + $0x80] sm:$0xff] %v1182_v25  ;;  %1371 = vst [vmem:[#allocation4 + $0x90] sm:$0xff] %v1295_v26  ;;  %v1186_v33 = vadd.f32 %v1185_v31, %v6278_v51  ;;  %v1299_v34 = vadd.f32 %v1298_v32, %v6281_v52  ;;  %v1187_v35 = vpop.f32.mrb[11].mxu0  ;;  %v1300_v36 = vpop.f32.mrb[11].mxu1 }
 0x2b2   : > { %1370 = vst [vmem:[#allocation4 + $0x88] sm:$0xff] %v1184_v29  ;;  %1372 = vst [vmem:[#allocation4 + $0x98] sm:$0xff] %v1297_v30  ;;  %v1188_v37 = vadd.f32 %v1187_v35, %v6284_v53  ;;  %v1301_v38 = vadd.f32 %v1300_v36, %v6287_v54 }
 0x2b3   : > { %1373 = vst [vmem:[#allocation4 + $0xa0] sm:$0xff] %v1186_v33  ;;  %1375 = vst [vmem:[#allocation4 + $0xb0] sm:$0xff] %v1299_v34 }
 0x2b4   : > { %1374 = vst [vmem:[#allocation4 + $0xa8] sm:$0xff] %v1188_v37  ;;  %1376 = vst [vmem:[#allocation4 + $0xb8] sm:$0xff] %v1301_v38 }
 0x2b6   : > { %v1191_v39 = vpop.f32.mrb[12].mxu0  ;;  %v1304_v40 = vpop.f32.mrb[12].mxu1 }
 0x2b7   : > { %v1192_v41 = vadd.f32 %v1191_v39, %v6278_v51  ;;  %v1305_v42 = vadd.f32 %v1304_v40, %v6281_v52  ;;  %v1193_v43 = vpop.f32.mrb[13].mxu0  ;;  %v1306_v44 = vpop.f32.mrb[13].mxu1 }
 0x2b8   : > { %v1194_v45 = vadd.f32 %v1193_v43, %v6284_v53  ;;  %v1307_v46 = vadd.f32 %v1306_v44, %v6287_v54  ;;  %v1195_v47 = vpop.f32.mrb[14].mxu0  ;;  %v1308_v48 = vpop.f32.mrb[14].mxu1 }
 0x2b9   : > { %1377 = vst [vmem:[#allocation4 + $0xc0] sm:$0xff] %v1192_v41  ;;  %1379 = vst [vmem:[#allocation4 + $0xd0] sm:$0xff] %v1305_v42  ;;  %v1196_v49 = vadd.f32 %v1195_v47, %v6278_v51  ;;  %v1309_v50 = vadd.f32 %v1308_v48, %v6281_v52  ;;  %v1197_v55 = vpop.f32.mrb[15].mxu0  ;;  %v1310_v56 = vpop.f32.mrb[15].mxu1 }
 0x2ba   : > { %1378 = vst [vmem:[#allocation4 + $0xc8] sm:$0xff] %v1194_v45  ;;  %1380 = vst [vmem:[#allocation4 + $0xd8] sm:$0xff] %v1307_v46  ;;  %v1198_v61 = vadd.f32 %v1197_v55, %v6284_v53  ;;  %v1311_v62 = vadd.f32 %v1310_v56, %v6287_v54 }
 0x2bb   : > { %1381 = vst [vmem:[#allocation4 + $0xe0] sm:$0xff] %v1196_v49  ;;  %1383 = vst [vmem:[#allocation4 + $0xf0] sm:$0xff] %v1309_v50 }
 0x2bc   : > { %1382 = vst [vmem:[#allocation4 + $0xe8] sm:$0xff] %v1198_v61  ;;  %1384 = vst [vmem:[#allocation4 + $0xf8] sm:$0xff] %v1311_v62 }
 0x2be   : > { %v1201_v63 = vpop.f32.mrb[16].mxu0  ;;  %v1314_v0 = vpop.f32.mrb[16].mxu1 }
 0x2bf   : > { %v1202_v1 = vadd.f32 %v1201_v63, %v6278_v51  ;;  %v1315_v2 = vadd.f32 %v1314_v0, %v6281_v52  ;;  %v1203_v3 = vpop.f32.mrb[17].mxu0  ;;  %v1316_v4 = vpop.f32.mrb[17].mxu1 }
 0x2c0   : > { %v1204_v5 = vadd.f32 %v1203_v3, %v6284_v53  ;;  %v1317_v9 = vadd.f32 %v1316_v4, %v6287_v54  ;;  %v1205_v6 = vpop.f32.mrb[18].mxu0  ;;  %v1318_v57 = vpop.f32.mrb[18].mxu1 }
 0x2c1   : > { %1385 = vst [vmem:[#allocation4 + $0x100] sm:$0xff] %v1202_v1  ;;  %1387 = vst [vmem:[#allocation4 + $0x110] sm:$0xff] %v1315_v2  ;;  %v1206_v58 = vadd.f32 %v1205_v6, %v6278_v51  ;;  %v1319_v59 = vadd.f32 %v1318_v57, %v6281_v52  ;;  %v1207_v60 = vpop.f32.mrb[19].mxu0  ;;  %v1320_v7 = vpop.f32.mrb[19].mxu1 }
 0x2c2   : > { %1386 = vst [vmem:[#allocation4 + $0x108] sm:$0xff] %v1204_v5  ;;  %1388 = vst [vmem:[#allocation4 + $0x118] sm:$0xff] %v1317_v9  ;;  %v1208_v8 = vadd.f32 %v1207_v60, %v6284_v53  ;;  %v1321_v10 = vadd.f32 %v1320_v7, %v6287_v54 }
 0x2c3   : > { %1389 = vst [vmem:[#allocation4 + $0x120] sm:$0xff] %v1206_v58  ;;  %1391 = vst [vmem:[#allocation4 + $0x130] sm:$0xff] %v1319_v59 }
 0x2c4   : > { %1390 = vst [vmem:[#allocation4 + $0x128] sm:$0xff] %v1208_v8  ;;  %1392 = vst [vmem:[#allocation4 + $0x138] sm:$0xff] %v1321_v10 }
 0x2c6   : > { %v1211_v11 = vpop.f32.mrb[20].mxu0  ;;  %v1324_v12 = vpop.f32.mrb[20].mxu1 }
 0x2c7   : > { %v1212_v13 = vadd.f32 %v1211_v11, %v6278_v51  ;;  %v1325_v14 = vadd.f32 %v1324_v12, %v6281_v52  ;;  %v1213_v15 = vpop.f32.mrb[21].mxu0  ;;  %v1326_v16 = vpop.f32.mrb[21].mxu1 }
 0x2c8   : > { %v1214_v17 = vadd.f32 %v1213_v15, %v6284_v53  ;;  %v1327_v18 = vadd.f32 %v1326_v16, %v6287_v54  ;;  %v1215_v19 = vpop.f32.mrb[22].mxu0  ;;  %v1328_v20 = vpop.f32.mrb[22].mxu1 }
 0x2c9   : > { %1393 = vst [vmem:[#allocation4 + $0x140] sm:$0xff] %v1212_v13  ;;  %1395 = vst [vmem:[#allocation4 + $0x150] sm:$0xff] %v1325_v14  ;;  %v1216_v21 = vadd.f32 %v1215_v19, %v6278_v51  ;;  %v1329_v22 = vadd.f32 %v1328_v20, %v6281_v52  ;;  %v1217_v23 = vpop.f32.mrb[23].mxu0  ;;  %v1330_v24 = vpop.f32.mrb[23].mxu1 }
 0x2ca   : > { %1394 = vst [vmem:[#allocation4 + $0x148] sm:$0xff] %v1214_v17  ;;  %1396 = vst [vmem:[#allocation4 + $0x158] sm:$0xff] %v1327_v18  ;;  %v1218_v25 = vadd.f32 %v1217_v23, %v6284_v53  ;;  %v1331_v26 = vadd.f32 %v1330_v24, %v6287_v54 }
 0x2cb   : > { %1397 = vst [vmem:[#allocation4 + $0x160] sm:$0xff] %v1216_v21  ;;  %1399 = vst [vmem:[#allocation4 + $0x170] sm:$0xff] %v1329_v22 }
 0x2cc   : > { %1398 = vst [vmem:[#allocation4 + $0x168] sm:$0xff] %v1218_v25  ;;  %1400 = vst [vmem:[#allocation4 + $0x178] sm:$0xff] %v1331_v26 }
 0x2ce   : > { %v1221_v27 = vpop.f32.mrb[24].mxu0  ;;  %v1334_v28 = vpop.f32.mrb[24].mxu1 }
 0x2cf   : > { %v1222_v29 = vadd.f32 %v1221_v27, %v6278_v51  ;;  %v1335_v30 = vadd.f32 %v1334_v28, %v6281_v52  ;;  %v1223_v31 = vpop.f32.mrb[25].mxu0  ;;  %v1336_v32 = vpop.f32.mrb[25].mxu1 }
 0x2d0   : > { %v1224_v33 = vadd.f32 %v1223_v31, %v6284_v53  ;;  %v1337_v34 = vadd.f32 %v1336_v32, %v6287_v54  ;;  %v1225_v35 = vpop.f32.mrb[26].mxu0  ;;  %v1338_v36 = vpop.f32.mrb[26].mxu1 }
 0x2d1   : > { %1401 = vst [vmem:[#allocation4 + $0x180] sm:$0xff] %v1222_v29  ;;  %1403 = vst [vmem:[#allocation4 + $0x190] sm:$0xff] %v1335_v30  ;;  %v1226_v37 = vadd.f32 %v1225_v35, %v6278_v51  ;;  %v1339_v38 = vadd.f32 %v1338_v36, %v6281_v52  ;;  %v1227_v39 = vpop.f32.mrb[27].mxu0  ;;  %v1340_v40 = vpop.f32.mrb[27].mxu1 }
 0x2d2   : > { %1402 = vst [vmem:[#allocation4 + $0x188] sm:$0xff] %v1224_v33  ;;  %1404 = vst [vmem:[#allocation4 + $0x198] sm:$0xff] %v1337_v34  ;;  %v1228_v41 = vadd.f32 %v1227_v39, %v6284_v53  ;;  %v1341_v42 = vadd.f32 %v1340_v40, %v6287_v54 }
 0x2d3   : > { %1405 = vst [vmem:[#allocation4 + $0x1a0] sm:$0xff] %v1226_v37  ;;  %1407 = vst [vmem:[#allocation4 + $0x1b0] sm:$0xff] %v1339_v38 }
 0x2d4   : > { %1406 = vst [vmem:[#allocation4 + $0x1a8] sm:$0xff] %v1228_v41  ;;  %1408 = vst [vmem:[#allocation4 + $0x1b8] sm:$0xff] %v1341_v42 }
 0x2d6   : > { %v1231_v43 = vpop.f32.mrb[28].mxu0  ;;  %v1344_v44 = vpop.f32.mrb[28].mxu1 }
 0x2d7   : > { %v1232_v45 = vadd.f32 %v1231_v43, %v6278_v51  ;;  %v1345_v46 = vadd.f32 %v1344_v44, %v6281_v52  ;;  %v1233_v47 = vpop.f32.mrb[29].mxu0  ;;  %v1346_v48 = vpop.f32.mrb[29].mxu1 }
 0x2d8   : > { %v1234_v49 = vadd.f32 %v1233_v47, %v6284_v53  ;;  %v1347_v50 = vadd.f32 %v1346_v48, %v6287_v54  ;;  %v1235_v55 = vpop.f32.mrb[30].mxu0  ;;  %v1348_v56 = vpop.f32.mrb[30].mxu1 }
 0x2d9   : > { %1409 = vst [vmem:[#allocation4 + $0x1c0] sm:$0xff] %v1232_v45  ;;  %1411 = vst [vmem:[#allocation4 + $0x1d0] sm:$0xff] %v1345_v46  ;;  %v1236_v61 = vadd.f32 %v1235_v55, %v6278_v51  ;;  %v1349_v62 = vadd.f32 %v1348_v56, %v6281_v52  ;;  %v1237_v63 = vpop.f32.mrb[31].mxu0  ;;  %v1350_v0 = vpop.f32.mrb[31].mxu1 }
 0x2da   : > { %1410 = vst [vmem:[#allocation4 + $0x1c8] sm:$0xff] %v1234_v49  ;;  %1412 = vst [vmem:[#allocation4 + $0x1d8] sm:$0xff] %v1347_v50  ;;  %v1238_v1 = vadd.f32 %v1237_v63, %v6284_v53  ;;  %v1351_v2 = vadd.f32 %v1350_v0, %v6287_v54 }
 0x2db   : > { %1413 = vst [vmem:[#allocation4 + $0x1e0] sm:$0xff] %v1236_v61  ;;  %1415 = vst [vmem:[#allocation4 + $0x1f0] sm:$0xff] %v1349_v62 }
 0x2dc   : > { %1414 = vst [vmem:[#allocation4 + $0x1e8] sm:$0xff] %v1238_v1  ;;  %1416 = vst [vmem:[#allocation4 + $0x1f8] sm:$0xff] %v1351_v2 }
 0x2dd PF: > { %s4959_s25 = sshll.u32 %s5904_s26, 8  ;;  %v5921_v3 = vmov 0   ;;  %v5922_v28 = vmov 0.0|0.0   ;;  %v1425_v29 = vld [vmem:[#allocation4] sm:$0xff]  ;;  %v1426_v30 = vld [vmem:[#allocation4 + $0x8] sm:$0xff]  ;;  %v1427_v43 = vld [vmem:[#allocation4 + $0x10] sm:$0xff] }
 0x2de   : > { %1663 = vmatprep.mubr.bf16.mxu0 %v5921_v3  ;;  %1706 = vmatprep.mubr.bf16.mxu1 %v5921_v3  ;;  %s6356_s12 = scalar_lea.vmem [#allocation13], %s4959_s25  ;;  %v1429_v32 = vld [vmem:[#allocation4 + $0x20] sm:$0xff]  ;;  %v1430_v35 = vld [vmem:[#allocation4 + $0x28] sm:$0xff]  ;;  %v1431_v48 = vld [vmem:[#allocation4 + $0x30] sm:$0xff]  ;;  %p4668_p11 = scmp.ge.s32.totalorder %s5904_s26, 1 }
 0x2df   : > { %v5148_v51 = vld [vmem:[%s6356_s12 + $0x4] ss:$16 sps:$4 sm:$0xff]   ;;  %v5150_v52 = vld [vmem:[%s6356_s12] ss:$16 sps:$4 sm:$0xff]   ;;  %v5159_v5 = vld [vmem:[%s6356_s12 + $0xc] ss:$16 sps:$4 sm:$0xff]  }
 0x2e0   : > { %1631 = vmatprep.subr.bf16.mxu0 %v5148_v51  ;;  %v5151_v53 = vld [vmem:[%s6356_s12 + $0x24] ss:$16 sps:$4 sm:$0xff]   ;;  %v5153_v54 = vld [vmem:[%s6356_s12 + $0x20] ss:$16 sps:$4 sm:$0xff]   ;;  %v5162_v9 = vld [vmem:[%s6356_s12 + $0x8] ss:$16 sps:$4 sm:$0xff]   ;;  %1674 = vmatprep.subr.bf16.mxu1 %v5159_v5 }
 0x2e1   : > { %1632 = vmatpush1.bf16.msra.mxu0 %v5150_v52  ;;  %v5154_v4 = vld [vmem:[%s6356_s12 + $0x44] ss:$16 sps:$4 sm:$0xff]   ;;  %v5156_v6 = vld [vmem:[%s6356_s12 + $0x40] ss:$16 sps:$4 sm:$0xff]   ;;  %1675 = vmatpush1.bf16.msra.mxu1 %v5162_v9  ;;  %v5165_v58 = vld [vmem:[%s6356_s12 + $0x2c] ss:$16 sps:$4 sm:$0xff]  }
 0x2e2   : > { %1633 = vmatprep.subr.bf16.mxu0 %v5151_v53  ;;  %v5157_v57 = vld [vmem:[%s6356_s12 + $0x64] ss:$16 sps:$4 sm:$0xff]   ;;  %v5168_v59 = vld [vmem:[%s6356_s12 + $0x28] ss:$16 sps:$4 sm:$0xff]   ;;  %1676 = vmatprep.subr.bf16.mxu1 %v5165_v58  ;;  %v5161_v60 = vld [vmem:[%s6356_s12 + $0x60] ss:$16 sps:$4 sm:$0xff]  }
 0x2e3   : > { %v5163_v7 = vld [vmem:[%s6356_s12 + $0x84] ss:$16 sps:$4 sm:$0xff]   ;;  %v5171_v8 = vld [vmem:[%s6356_s12 + $0x4c] ss:$16 sps:$4 sm:$0xff]   ;;  %v5174_v10 = vld [vmem:[%s6356_s12 + $0x48] ss:$16 sps:$4 sm:$0xff]  }
 0x2e4   : > { %v5177_v11 = vld [vmem:[%s6356_s12 + $0x6c] ss:$16 sps:$4 sm:$0xff]   ;;  %v5167_v12 = vld [vmem:[%s6356_s12 + $0x80] ss:$16 sps:$4 sm:$0xff]   ;;  %v5169_v13 = vld [vmem:[%s6356_s12 + $0xa4] ss:$16 sps:$4 sm:$0xff]  }
 0x2e5   : > { %1634 = vmatpush1.bf16.msra.mxu0 %v5153_v54  ;;  %1677 = vmatpush1.bf16.msra.mxu1 %v5168_v59  ;;  %v5180_v14 = vld [vmem:[%s6356_s12 + $0x68] ss:$16 sps:$4 sm:$0xff]   ;;  %v5183_v15 = vld [vmem:[%s6356_s12 + $0x8c] ss:$16 sps:$4 sm:$0xff]   ;;  %v5173_v16 = vld [vmem:[%s6356_s12 + $0xa0] ss:$16 sps:$4 sm:$0xff]  }
 0x2e6   : > { %1635 = vmatprep.subr.bf16.mxu0 %v5154_v4  ;;  %1678 = vmatprep.subr.bf16.mxu1 %v5171_v8  ;;  %v5175_v17 = vld [vmem:[%s6356_s12 + $0xc4] ss:$16 sps:$4 sm:$0xff]   ;;  %v5186_v18 = vld [vmem:[%s6356_s12 + $0x88] ss:$16 sps:$4 sm:$0xff]   ;;  %v5187_v19 = vld [vmem:[%s6356_s12 + $0xac] ss:$16 sps:$4 sm:$0xff]  }
 0x2e7   : > { %v5179_v20 = vld [vmem:[%s6356_s12 + $0xc0] ss:$16 sps:$4 sm:$0xff]   ;;  %v5181_v21 = vld [vmem:[%s6356_s12 + $0xe4] ss:$16 sps:$4 sm:$0xff]   ;;  %v5189_v22 = vld [vmem:[%s6356_s12 + $0xa8] ss:$16 sps:$4 sm:$0xff]  }
 0x2e8   : > { %v5190_v23 = vld [vmem:[%s6356_s12 + $0xcc] ss:$16 sps:$4 sm:$0xff]   ;;  %v5185_v24 = vld [vmem:[%s6356_s12 + $0xe0] ss:$16 sps:$4 sm:$0xff]   ;;  %v5192_v25 = vld [vmem:[%s6356_s12 + $0xc8] ss:$16 sps:$4 sm:$0xff]  }
 0x2e9   : > { %1636 = vmatpush1.bf16.msra.mxu0 %v5156_v6  ;;  %1679 = vmatpush1.bf16.msra.mxu1 %v5174_v10  ;;  %v5193_v26 = vld [vmem:[%s6356_s12 + $0xec] ss:$16 sps:$4 sm:$0xff]   ;;  %v5195_v27 = vld [vmem:[%s6356_s12 + $0xe8] ss:$16 sps:$4 sm:$0xff]  }
 0x2ea   : > { %1637 = vmatprep.subr.bf16.mxu0 %v5157_v57  ;;  %1680 = vmatprep.subr.bf16.mxu1 %v5177_v11  ;;  %v1428_v50 = vld [vmem:[#allocation4 + $0x18] sm:$0xff] }
 0x2eb   : > { %v1432_v62 = vld [vmem:[#allocation4 + $0x38] sm:$0xff] }
 0x2ed   : > { %1638 = vmatpush1.bf16.msra.mxu0 %v5161_v60  ;;  %1681 = vmatpush1.bf16.msra.mxu1 %v5180_v14 }
 0x2ee   : > { %1639 = vmatprep.subr.bf16.mxu0 %v5163_v7  ;;  %1682 = vmatprep.subr.bf16.mxu1 %v5183_v15 }
 0x2f1   : > { %1640 = vmatpush1.bf16.msra.mxu0 %v5167_v12  ;;  %1683 = vmatpush1.bf16.msra.mxu1 %v5186_v18 }
 0x2f2   : > { %1641 = vmatprep.subr.bf16.mxu0 %v5169_v13  ;;  %1684 = vmatprep.subr.bf16.mxu1 %v5187_v19 }
 0x2f5   : > { %1642 = vmatpush1.bf16.msra.mxu0 %v5173_v16  ;;  %1685 = vmatpush1.bf16.msra.mxu1 %v5189_v22 }
 0x2f6   : > { %1643 = vmatprep.subr.bf16.mxu0 %v5175_v17  ;;  %1686 = vmatprep.subr.bf16.mxu1 %v5190_v23 }
 0x2f9   : > { %1644 = vmatpush1.bf16.msra.mxu0 %v5179_v20  ;;  %1687 = vmatpush1.bf16.msra.mxu1 %v5192_v25 }
 0x2fa   : > { %1645 = vmatprep.subr.bf16.mxu0 %v5181_v21  ;;  %1688 = vmatprep.subr.bf16.mxu1 %v5193_v26 }
 0x2fd   : > { %1646 = vmatpush1.bf16.msra.mxu0 %v5185_v24  ;;  %1689 = vmatpush1.bf16.msra.mxu1 %v5195_v27 }
 0x300   : > { %1664 = vmatmul.mubr.bf16.vlgmr.msra.gmra.mrb[0].mxu0 %v5922_v28  ;;  %1707 = vmatmul.mubr.bf16.vlgmr.msra.gmra.mrb[0].mxu1 %v5922_v28 }
 0x3d3   : > { %v1665_v31 = vpop.f32.mrb[0].mxu0  ;;  %v1708_v45 = vpop.f32.mrb[0].mxu1 }
 0x3d4   : > { %v1717_v33 = vadd.f32 %v1665_v31, %v1425_v29  ;;  %v1667_v34 = vpop.f32.mrb[1].mxu0  ;;  %v1710_v47 = vpop.f32.mrb[1].mxu1  ;;  %v1719_v49 = vadd.f32 %v1708_v45, %v1427_v43 }
 0x3d5   : > { %v1718_v36 = vadd.f32 %v1667_v34, %v1426_v30  ;;  %v1669_v37 = vpop.f32.mrb[2].mxu0  ;;  %v1712_v55 = vpop.f32.mrb[2].mxu1  ;;  %v1720_v63 = vadd.f32 %v1710_v47, %v1428_v50 }
 0x3d6   : > { %v4662_v38 = vmul.f32 -1.442695, %v1717_v33  ;;  %v1721_v39 = vadd.f32 %v1669_v37, %v1429_v32  ;;  %v1671_v40 = vpop.f32.mrb[3].mxu0  ;;  %v1714_v56 = vpop.f32.mrb[3].mxu1  ;;  %v1723_v61 = vadd.f32 %v1712_v55, %v1431_v48  ;;  %v4664_v0 = vmul.f32 -1.442695, %v1719_v49 }
 0x3d7   : > { %v4663_v41 = vmul.f32 -1.442695, %v1718_v36  ;;  %v1722_v42 = vadd.f32 %v1671_v40, %v1430_v35  ;;  %v1724_v1 = vadd.f32 %v1714_v56, %v1432_v62 }
 0x3d8   : > { %5196 = vpow2.f32 %v4662_v38  ;;  %v4665_v44 = vmul.f32 -1.442695, %v1721_v39  ;;  %v4667_v2 = vmul.f32 -1.442695, %v1723_v61 }
 0x3d9   : > { %5198 = vpow2.f32 %v4663_v41  ;;  %v4666_v46 = vmul.f32 -1.442695, %v1722_v42 }
 0x3da   : > { %5200 = vpow2.f32 %v4665_v44 }
 0x3db   : > { %5202 = vpow2.f32 %v4666_v46 }
 0x3dc   : > { %5204 = vtanh.f32 %v1720_v63 }
 0x3dd   : > { %5206 = vpow2.f32 %v4664_v0 }
 0x3de   : > { %5208 = vtanh.f32 %v1724_v1 }
 0x3df   : > { %5210 = vpow2.f32 %v4667_v2 }
 0x3e2   : > { %v5197_v51 = vpop.eup %5196 }
 0x3e3   : > { %v5199_v52 = vpop.eup %5198  ;;  %v1743_v53 = vadd.f32 1.0, %v5197_v51 }
 0x3e4   : > { %v5201_v54 = vpop.eup %5200  ;;  %v1744_v4 = vadd.f32 1.0, %v5199_v52 }
 0x3e5   : > { %v5203_v5 = vpop.eup %5202  ;;  %5212 = vrcp.f32 %v1743_v53  ;;  %v1746_v9 = vadd.f32 1.0, %v5201_v54 }
 0x3e6   : > { %5214 = vrcp.f32 %v1744_v4  ;;  %v1747_v6 = vadd.f32 1.0, %v5203_v5  ;;  %v5205_v57 = vpop.eup %5204 }
 0x3e7   : > { %5216 = vrcp.f32 %v1746_v9  ;;  %v5207_v58 = vpop.eup %5206 }
 0x3e8   : > { %5218 = vrcp.f32 %v1747_v6  ;;  %v5209_v59 = vpop.eup %5208  ;;  %v1745_v8 = vadd.f32 1.0, %v5207_v58 }
 0x3e9   : > { %v5211_v60 = vpop.eup %5210 }
 0x3ea   : > { %v1748_v15 = vadd.f32 1.0, %v5211_v60  ;;  %5220 = vrcp.f32 %v1745_v8 }
 0x3ef   : > { %v5213_v7 = vpop.eup %5212 }
 0x3f0   : > { %v5215_v10 = vpop.eup %5214  ;;  %v1767_v11 = vmul.f32 %v5213_v7, %v5205_v57 }
 0x3f1   : > { %v5217_v12 = vpop.eup %5216  ;;  %v1765_v13 = vmul.f32 0.0, %v5215_v10 }
 0x3f2   : > { %v5219_v14 = vpop.eup %5218  ;;  %v1768_v16 = vmul.f32 %v5217_v12, %v5209_v59 }
 0x3f3   : > { %v1766_v17 = vmul.f32 0.0, %v5219_v14  ;;  %v1769_v18 = vadd.f32 %v1767_v11, %v1765_v13 }
 0x3f4   : > { %v5221_v20 = vpop.eup %5220 }
 0x3f5   : > { %5222 = vtanh.f32 %v1769_v18  ;;  %1775 = vst [vmem:[#allocation6] sm:$0xff] %v1769_v18  ;;  %v1770_v19 = vadd.f32 %v1768_v16, %v1766_v17 }
 0x3f6   : > { %5224 = vrcp.f32 %v1748_v15 }
 0x3f7   : > { %5226 = vtanh.f32 %v1770_v19  ;;  %1776 = vst [vmem:[#allocation6 + $0x8] sm:$0xff] %v1770_v19 }
 0x3fe   : > { %1781 = sbr.rel (%p4668_p11) target bundleno = 1031 (0x407), region = 106 }
 0x3ff   : > { %v5223_v21 = vpop.eup %5222 }
 0x400   : > { %v5225_v22 = vpop.eup %5224  ;;  %v1773_v23 = vmul.f32 %v5223_v21, %v5221_v20 }
 0x401   : > { %v5227_v24 = vpop.eup %5226 }
 0x402   : > { %1777 = vst [vmem:[#allocation5] sm:$0xff] %v1773_v23  ;;  %v1774_v25 = vmul.f32 %v5227_v24, %v5225_v22 }
 0x404   : > { %1778 = vst [vmem:[#allocation5 + $0x8] sm:$0xff] %v1774_v25  ;;  %v1782_v26 = vpack.c.bf16 (!%p4668_p11), %v1774_v25, %v1773_v23 }
 0x406   : > { %1783 = vst [vmem:[#allocation3] sm:$0xff] %v1782_v26 }
 0x407 PF: > { %v5228_v27 = vld [vmem:[%s6356_s12 + $0x4] ss:$16 sps:$4 sm:$0xff]   ;;  %2022 = vmatprep.mubr.bf16.mxu0 %v5921_v3  ;;  %2065 = vmatprep.mubr.bf16.mxu1 %v5921_v3  ;;  %v5230_v28 = vld [vmem:[%s6356_s12] ss:$16 sps:$4 sm:$0xff]   ;;  %v5239_v32 = vld [vmem:[%s6356_s12 + $0xc] ss:$16 sps:$4 sm:$0xff]  }
 0x408   : > { %1990 = vmatprep.subr.bf16.mxu0 %v5228_v27  ;;  %v5231_v29 = vld [vmem:[%s6356_s12 + $0x24] ss:$16 sps:$4 sm:$0xff]   ;;  %v5233_v30 = vld [vmem:[%s6356_s12 + $0x20] ss:$16 sps:$4 sm:$0xff]   ;;  %v5242_v33 = vld [vmem:[%s6356_s12 + $0x8] ss:$16 sps:$4 sm:$0xff]   ;;  %2033 = vmatprep.subr.bf16.mxu1 %v5239_v32 }
 0x409   : > { %1991 = vmatpush1.bf16.msra.mxu0 %v5230_v28  ;;  %v5234_v31 = vld [vmem:[%s6356_s12 + $0x44] ss:$16 sps:$4 sm:$0xff]   ;;  %v5236_v34 = vld [vmem:[%s6356_s12 + $0x40] ss:$16 sps:$4 sm:$0xff]   ;;  %2034 = vmatpush1.bf16.msra.mxu1 %v5242_v33  ;;  %v5245_v36 = vld [vmem:[%s6356_s12 + $0x2c] ss:$16 sps:$4 sm:$0xff]  }
 0x40a   : > { %1992 = vmatprep.subr.bf16.mxu0 %v5231_v29  ;;  %v5237_v35 = vld [vmem:[%s6356_s12 + $0x64] ss:$16 sps:$4 sm:$0xff]   ;;  %v5248_v37 = vld [vmem:[%s6356_s12 + $0x28] ss:$16 sps:$4 sm:$0xff]   ;;  %2035 = vmatprep.subr.bf16.mxu1 %v5245_v36  ;;  %v5241_v38 = vld [vmem:[%s6356_s12 + $0x60] ss:$16 sps:$4 sm:$0xff]  }
 0x40b   : > { %v5243_v39 = vld [vmem:[%s6356_s12 + $0x84] ss:$16 sps:$4 sm:$0xff]   ;;  %v5251_v40 = vld [vmem:[%s6356_s12 + $0x4c] ss:$16 sps:$4 sm:$0xff]   ;;  %v5254_v41 = vld [vmem:[%s6356_s12 + $0x48] ss:$16 sps:$4 sm:$0xff]  }
 0x40c   : > { %v5257_v42 = vld [vmem:[%s6356_s12 + $0x6c] ss:$16 sps:$4 sm:$0xff]   ;;  %v5247_v43 = vld [vmem:[%s6356_s12 + $0x80] ss:$16 sps:$4 sm:$0xff]   ;;  %v5249_v44 = vld [vmem:[%s6356_s12 + $0xa4] ss:$16 sps:$4 sm:$0xff]  }
 0x40d   : > { %1993 = vmatpush1.bf16.msra.mxu0 %v5233_v30  ;;  %2036 = vmatpush1.bf16.msra.mxu1 %v5248_v37  ;;  %v5260_v45 = vld [vmem:[%s6356_s12 + $0x68] ss:$16 sps:$4 sm:$0xff]   ;;  %v5263_v46 = vld [vmem:[%s6356_s12 + $0x8c] ss:$16 sps:$4 sm:$0xff]   ;;  %v5253_v47 = vld [vmem:[%s6356_s12 + $0xa0] ss:$16 sps:$4 sm:$0xff]  }
 0x40e   : > { %1994 = vmatprep.subr.bf16.mxu0 %v5234_v31  ;;  %2037 = vmatprep.subr.bf16.mxu1 %v5251_v40  ;;  %v5255_v48 = vld [vmem:[%s6356_s12 + $0xc4] ss:$16 sps:$4 sm:$0xff]   ;;  %v5266_v49 = vld [vmem:[%s6356_s12 + $0x88] ss:$16 sps:$4 sm:$0xff]   ;;  %v5267_v50 = vld [vmem:[%s6356_s12 + $0xac] ss:$16 sps:$4 sm:$0xff]  }
 0x40f   : > { %v5259_v55 = vld [vmem:[%s6356_s12 + $0xc0] ss:$16 sps:$4 sm:$0xff]   ;;  %v5261_v56 = vld [vmem:[%s6356_s12 + $0xe4] ss:$16 sps:$4 sm:$0xff]   ;;  %v5269_v61 = vld [vmem:[%s6356_s12 + $0xa8] ss:$16 sps:$4 sm:$0xff]  }
 0x410   : > { %v5270_v62 = vld [vmem:[%s6356_s12 + $0xcc] ss:$16 sps:$4 sm:$0xff]   ;;  %v5265_v63 = vld [vmem:[%s6356_s12 + $0xe0] ss:$16 sps:$4 sm:$0xff]   ;;  %v5272_v2 = vld [vmem:[%s6356_s12 + $0xc8] ss:$16 sps:$4 sm:$0xff]  }
 0x411   : > { %1995 = vmatpush1.bf16.msra.mxu0 %v5236_v34  ;;  %2038 = vmatpush1.bf16.msra.mxu1 %v5254_v41  ;;  %v1795_v0 = vld [vmem:[#allocation5] sm:$0xff]  ;;  %v1796_v1 = vld [vmem:[#allocation5 + $0x8] sm:$0xff]  ;;  %v1789_v13 = vld [vmem:[#allocation4 + $0x50] sm:$0xff] }
 0x412   : > { %1996 = vmatprep.subr.bf16.mxu0 %v5237_v35  ;;  %2039 = vmatprep.subr.bf16.mxu1 %v5257_v42  ;;  %v5273_v51 = vld [vmem:[%s6356_s12 + $0xec] ss:$16 sps:$4 sm:$0xff]   ;;  %v1797_v52 = vpack.c.bf16 %v1796_v1, %v1795_v0  ;;  %v5275_v53 = vld [vmem:[%s6356_s12 + $0xe8] ss:$16 sps:$4 sm:$0xff]   ;;  %v1787_v54 = vld [vmem:[#allocation4 + $0x40] sm:$0xff] }
 0x413   : > { %v1788_v4 = vld [vmem:[#allocation4 + $0x48] sm:$0xff]  ;;  %v1791_v9 = vld [vmem:[#allocation4 + $0x60] sm:$0xff]  ;;  %v1793_v18 = vld [vmem:[#allocation4 + $0x70] sm:$0xff] }
 0x414   : > { %v1792_v58 = vld [vmem:[#allocation4 + $0x68] sm:$0xff]  ;;  %v1790_v20 = vld [vmem:[#allocation4 + $0x58] sm:$0xff]  ;;  %v2122_v41 = vld [vmem:[#allocation6] sm:$0xff] }
 0x415   : > { %1997 = vmatpush1.bf16.msra.mxu0 %v5241_v38  ;;  %2040 = vmatpush1.bf16.msra.mxu1 %v5260_v45  ;;  %v1794_v24 = vld [vmem:[#allocation4 + $0x78] sm:$0xff] }
 0x416   : > { %1998 = vmatprep.subr.bf16.mxu0 %v5243_v39  ;;  %2041 = vmatprep.subr.bf16.mxu1 %v5263_v46  ;;  %v2123_v45 = vld [vmem:[#allocation6 + $0x8] sm:$0xff] }
 0x419   : > { %1999 = vmatpush1.bf16.msra.mxu0 %v5247_v43  ;;  %2042 = vmatpush1.bf16.msra.mxu1 %v5266_v49 }
 0x41a   : > { %2000 = vmatprep.subr.bf16.mxu0 %v5249_v44  ;;  %2043 = vmatprep.subr.bf16.mxu1 %v5267_v50 }
 0x41d   : > { %2001 = vmatpush1.bf16.msra.mxu0 %v5253_v47  ;;  %2044 = vmatpush1.bf16.msra.mxu1 %v5269_v61 }
 0x41e   : > { %2002 = vmatprep.subr.bf16.mxu0 %v5255_v48  ;;  %2045 = vmatprep.subr.bf16.mxu1 %v5270_v62 }
 0x421   : > { %2003 = vmatpush1.bf16.msra.mxu0 %v5259_v55  ;;  %2046 = vmatpush1.bf16.msra.mxu1 %v5272_v2 }
 0x422   : > { %2004 = vmatprep.subr.bf16.mxu0 %v5261_v56  ;;  %2047 = vmatprep.subr.bf16.mxu1 %v5273_v51 }
 0x425   : > { %2005 = vmatpush1.bf16.msra.mxu0 %v5265_v63  ;;  %2048 = vmatpush1.bf16.msra.mxu1 %v5275_v53 }
 0x428   : > { %2023 = vmatmul.mubr.bf16.vlgmr.msra.gmra.mrb[4].mxu0 %v1797_v52  ;;  %2066 = vmatmul.mubr.bf16.vlgmr.msra.gmra.mrb[4].mxu1 %v1797_v52 }
 0x4fb   : > { %v2024_v5 = vpop.f32.mrb[4].mxu0  ;;  %v2067_v15 = vpop.f32.mrb[4].mxu1 }
 0x4fc   : > { %v2076_v6 = vadd.f32 %v2024_v5, %v1787_v54  ;;  %v2026_v57 = vpop.f32.mrb[5].mxu0  ;;  %v2069_v17 = vpop.f32.mrb[5].mxu1  ;;  %v2078_v19 = vadd.f32 %v2067_v15, %v1789_v13 }
 0x4fd   : > { %v2077_v59 = vadd.f32 %v2026_v57, %v1788_v4  ;;  %v2028_v60 = vpop.f32.mrb[6].mxu0  ;;  %v2071_v21 = vpop.f32.mrb[6].mxu1  ;;  %v2079_v25 = vadd.f32 %v2069_v17, %v1790_v20 }
 0x4fe   : > { %v4701_v7 = vmul.f32 -1.442695, %v2076_v6  ;;  %v2080_v8 = vadd.f32 %v2028_v60, %v1791_v9  ;;  %v2030_v10 = vpop.f32.mrb[7].mxu0  ;;  %v2073_v22 = vpop.f32.mrb[7].mxu1  ;;  %v2082_v23 = vadd.f32 %v2071_v21, %v1793_v18  ;;  %v4703_v26 = vmul.f32 -1.442695, %v2078_v19 }
 0x4ff   : > { %v4702_v11 = vmul.f32 -1.442695, %v2077_v59  ;;  %v2081_v12 = vadd.f32 %v2030_v10, %v1792_v58  ;;  %v2083_v27 = vadd.f32 %v2073_v22, %v1794_v24 }
 0x500   : > { %5276 = vpow2.f32 %v4701_v7  ;;  %v4704_v14 = vmul.f32 -1.442695, %v2080_v8  ;;  %v4706_v28 = vmul.f32 -1.442695, %v2082_v23 }
 0x501   : > { %5278 = vpow2.f32 %v4702_v11  ;;  %v4705_v16 = vmul.f32 -1.442695, %v2081_v12 }
 0x502   : > { %5280 = vpow2.f32 %v4704_v14 }
 0x503   : > { %5282 = vpow2.f32 %v4705_v16 }
 0x504   : > { %5284 = vtanh.f32 %v2079_v25 }
 0x505   : > { %5286 = vpow2.f32 %v4703_v26 }
 0x506   : > { %5288 = vtanh.f32 %v2083_v27 }
 0x507   : > { %5290 = vpow2.f32 %v4706_v28 }
 0x50a   : > { %v5277_v29 = vpop.eup %5276 }
 0x50b   : > { %v5279_v30 = vpop.eup %5278  ;;  %v2102_v31 = vadd.f32 1.0, %v5277_v29 }
 0x50c   : > { %v5281_v32 = vpop.eup %5280  ;;  %v2103_v33 = vadd.f32 1.0, %v5279_v30 }
 0x50d   : > { %v5283_v34 = vpop.eup %5282  ;;  %5292 = vrcp.f32 %v2102_v31  ;;  %v2105_v35 = vadd.f32 1.0, %v5281_v32 }
 0x50e   : > { %5294 = vrcp.f32 %v2103_v33  ;;  %v2106_v36 = vadd.f32 1.0, %v5283_v34  ;;  %v5285_v37 = vpop.eup %5284 }
 0x50f   : > { %5296 = vrcp.f32 %v2105_v35  ;;  %v5287_v38 = vpop.eup %5286 }
 0x510   : > { %5298 = vrcp.f32 %v2106_v36  ;;  %v5289_v39 = vpop.eup %5288  ;;  %v2104_v43 = vadd.f32 1.0, %v5287_v38 }
 0x511   : > { %v5291_v40 = vpop.eup %5290 }
 0x512   : > { %v2107_v50 = vadd.f32 1.0, %v5291_v40  ;;  %5300 = vrcp.f32 %v2104_v43 }
 0x517   : > { %v5293_v42 = vpop.eup %5292 }
 0x518   : > { %v5295_v44 = vpop.eup %5294  ;;  %v2126_v46 = vmul.f32 %v5293_v42, %v5285_v37 }
 0x519   : > { %v5297_v47 = vpop.eup %5296  ;;  %v2124_v48 = vmul.f32 %v5295_v44, %v2122_v41 }
 0x51a   : > { %v5299_v49 = vpop.eup %5298  ;;  %v2127_v55 = vmul.f32 %v5297_v47, %v5289_v39 }
 0x51b   : > { %v2125_v56 = vmul.f32 %v5299_v49, %v2123_v45  ;;  %v2128_v61 = vadd.f32 %v2126_v46, %v2124_v48 }
 0x51c   : > { %v5301_v63 = vpop.eup %5300 }
 0x51d   : > { %5302 = vtanh.f32 %v2128_v61  ;;  %2134 = vst [vmem:[#allocation6] sm:$0xff] %v2128_v61  ;;  %v2129_v62 = vadd.f32 %v2127_v55, %v2125_v56 }
 0x51e   : > { %5304 = vrcp.f32 %v2107_v50 }
 0x51f   : > { %5306 = vtanh.f32 %v2129_v62  ;;  %2135 = vst [vmem:[#allocation6 + $0x8] sm:$0xff] %v2129_v62 }
 0x526   : > { %2140 = sbr.rel (%p4668_p11) target bundleno = 1327 (0x52f), region = 110 }
 0x527   : > { %v5303_v0 = vpop.eup %5302 }
 0x528   : > { %v5305_v1 = vpop.eup %5304  ;;  %v2132_v2 = vmul.f32 %v5303_v0, %v5301_v63 }
 0x529   : > { %v5307_v51 = vpop.eup %5306 }
 0x52a   : > { %2136 = vst [vmem:[#allocation5] sm:$0xff] %v2132_v2  ;;  %v2133_v52 = vmul.f32 %v5307_v51, %v5305_v1 }
 0x52c   : > { %2137 = vst [vmem:[#allocation5 + $0x8] sm:$0xff] %v2133_v52  ;;  %v2141_v53 = vpack.c.bf16 (!%p4668_p11), %v2133_v52, %v2132_v2 }
 0x52e   : > { %2143 = vst [vmem:[#allocation3 + $0x8] sm:$0xff] %v2141_v53 }
 0x52f PF: > { %v5308_v54 = vld [vmem:[%s6356_s12 + $0x4] ss:$16 sps:$4 sm:$0xff]   ;;  %2382 = vmatprep.mubr.bf16.mxu0 %v5921_v3  ;;  %2425 = vmatprep.mubr.bf16.mxu1 %v5921_v3  ;;  %v5310_v4 = vld [vmem:[%s6356_s12] ss:$16 sps:$4 sm:$0xff]   ;;  %v5319_v57 = vld [vmem:[%s6356_s12 + $0xc] ss:$16 sps:$4 sm:$0xff]  }
 0x530   : > { %2350 = vmatprep.subr.bf16.mxu0 %v5308_v54  ;;  %v5311_v5 = vld [vmem:[%s6356_s12 + $0x24] ss:$16 sps:$4 sm:$0xff]   ;;  %v5313_v9 = vld [vmem:[%s6356_s12 + $0x20] ss:$16 sps:$4 sm:$0xff]   ;;  %v5322_v58 = vld [vmem:[%s6356_s12 + $0x8] ss:$16 sps:$4 sm:$0xff]   ;;  %2393 = vmatprep.subr.bf16.mxu1 %v5319_v57 }
 0x531   : > { %2351 = vmatpush1.bf16.msra.mxu0 %v5310_v4  ;;  %v5314_v6 = vld [vmem:[%s6356_s12 + $0x44] ss:$16 sps:$4 sm:$0xff]   ;;  %v5316_v59 = vld [vmem:[%s6356_s12 + $0x40] ss:$16 sps:$4 sm:$0xff]   ;;  %2394 = vmatpush1.bf16.msra.mxu1 %v5322_v58  ;;  %v5325_v7 = vld [vmem:[%s6356_s12 + $0x2c] ss:$16 sps:$4 sm:$0xff]  }
 0x532   : > { %2352 = vmatprep.subr.bf16.mxu0 %v5311_v5  ;;  %v5317_v60 = vld [vmem:[%s6356_s12 + $0x64] ss:$16 sps:$4 sm:$0xff]   ;;  %v5328_v8 = vld [vmem:[%s6356_s12 + $0x28] ss:$16 sps:$4 sm:$0xff]   ;;  %2395 = vmatprep.subr.bf16.mxu1 %v5325_v7  ;;  %v5321_v10 = vld [vmem:[%s6356_s12 + $0x60] ss:$16 sps:$4 sm:$0xff]  }
 0x533   : > { %v5323_v11 = vld [vmem:[%s6356_s12 + $0x84] ss:$16 sps:$4 sm:$0xff]   ;;  %v5331_v12 = vld [vmem:[%s6356_s12 + $0x4c] ss:$16 sps:$4 sm:$0xff]   ;;  %v5334_v13 = vld [vmem:[%s6356_s12 + $0x48] ss:$16 sps:$4 sm:$0xff]  }
 0x534   : > { %v5337_v14 = vld [vmem:[%s6356_s12 + $0x6c] ss:$16 sps:$4 sm:$0xff]   ;;  %v5327_v15 = vld [vmem:[%s6356_s12 + $0x80] ss:$16 sps:$4 sm:$0xff]   ;;  %v5329_v16 = vld [vmem:[%s6356_s12 + $0xa4] ss:$16 sps:$4 sm:$0xff]  }
 0x535   : > { %2353 = vmatpush1.bf16.msra.mxu0 %v5313_v9  ;;  %2396 = vmatpush1.bf16.msra.mxu1 %v5328_v8  ;;  %v5340_v17 = vld [vmem:[%s6356_s12 + $0x68] ss:$16 sps:$4 sm:$0xff]   ;;  %v5343_v18 = vld [vmem:[%s6356_s12 + $0x8c] ss:$16 sps:$4 sm:$0xff]   ;;  %v5333_v19 = vld [vmem:[%s6356_s12 + $0xa0] ss:$16 sps:$4 sm:$0xff]  }
 0x536   : > { %2354 = vmatprep.subr.bf16.mxu0 %v5314_v6  ;;  %2397 = vmatprep.subr.bf16.mxu1 %v5331_v12  ;;  %v5335_v20 = vld [vmem:[%s6356_s12 + $0xc4] ss:$16 sps:$4 sm:$0xff]   ;;  %v5346_v21 = vld [vmem:[%s6356_s12 + $0x88] ss:$16 sps:$4 sm:$0xff]   ;;  %v5347_v22 = vld [vmem:[%s6356_s12 + $0xac] ss:$16 sps:$4 sm:$0xff]  }
 0x537   : > { %v5339_v23 = vld [vmem:[%s6356_s12 + $0xc0] ss:$16 sps:$4 sm:$0xff]   ;;  %v5341_v24 = vld [vmem:[%s6356_s12 + $0xe4] ss:$16 sps:$4 sm:$0xff]   ;;  %v5349_v25 = vld [vmem:[%s6356_s12 + $0xa8] ss:$16 sps:$4 sm:$0xff]  }
 0x538   : > { %v5350_v26 = vld [vmem:[%s6356_s12 + $0xcc] ss:$16 sps:$4 sm:$0xff]   ;;  %v5345_v27 = vld [vmem:[%s6356_s12 + $0xe0] ss:$16 sps:$4 sm:$0xff]   ;;  %v5352_v30 = vld [vmem:[%s6356_s12 + $0xc8] ss:$16 sps:$4 sm:$0xff]  }
 0x539   : > { %2355 = vmatpush1.bf16.msra.mxu0 %v5316_v59  ;;  %2398 = vmatpush1.bf16.msra.mxu1 %v5334_v13  ;;  %v2155_v28 = vld [vmem:[#allocation5] sm:$0xff]  ;;  %v2156_v29 = vld [vmem:[#allocation5 + $0x8] sm:$0xff]  ;;  %v2149_v48 = vld [vmem:[#allocation4 + $0x90] sm:$0xff] }
 0x53a   : > { %2356 = vmatprep.subr.bf16.mxu0 %v5317_v60  ;;  %2399 = vmatprep.subr.bf16.mxu1 %v5337_v14  ;;  %v5353_v31 = vld [vmem:[%s6356_s12 + $0xec] ss:$16 sps:$4 sm:$0xff]   ;;  %v2157_v32 = vpack.c.bf16 %v2156_v29, %v2155_v28  ;;  %v5355_v33 = vld [vmem:[%s6356_s12 + $0xe8] ss:$16 sps:$4 sm:$0xff]   ;;  %v2147_v34 = vld [vmem:[#allocation4 + $0x80] sm:$0xff] }
 0x53b   : > { %v2148_v35 = vld [vmem:[#allocation4 + $0x88] sm:$0xff]  ;;  %v2151_v37 = vld [vmem:[#allocation4 + $0xa0] sm:$0xff]  ;;  %v2153_v61 = vld [vmem:[#allocation4 + $0xb0] sm:$0xff] }
 0x53c   : > { %v2152_v40 = vld [vmem:[#allocation4 + $0xa8] sm:$0xff]  ;;  %v2150_v63 = vld [vmem:[#allocation4 + $0x98] sm:$0xff]  ;;  %v2482_v13 = vld [vmem:[#allocation6] sm:$0xff] }
 0x53d   : > { %2357 = vmatpush1.bf16.msra.mxu0 %v5321_v10  ;;  %2400 = vmatpush1.bf16.msra.mxu1 %v5340_v17  ;;  %v2154_v51 = vld [vmem:[#allocation4 + $0xb8] sm:$0xff] }
 0x53e   : > { %2358 = vmatprep.subr.bf16.mxu0 %v5323_v11  ;;  %2401 = vmatprep.subr.bf16.mxu1 %v5343_v18  ;;  %v2483_v17 = vld [vmem:[#allocation6 + $0x8] sm:$0xff] }
 0x541   : > { %2359 = vmatpush1.bf16.msra.mxu0 %v5327_v15  ;;  %2402 = vmatpush1.bf16.msra.mxu1 %v5346_v21 }
 0x542   : > { %2360 = vmatprep.subr.bf16.mxu0 %v5329_v16  ;;  %2403 = vmatprep.subr.bf16.mxu1 %v5347_v22 }
 0x545   : > { %2361 = vmatpush1.bf16.msra.mxu0 %v5333_v19  ;;  %2404 = vmatpush1.bf16.msra.mxu1 %v5349_v25 }
 0x546   : > { %2362 = vmatprep.subr.bf16.mxu0 %v5335_v20  ;;  %2405 = vmatprep.subr.bf16.mxu1 %v5350_v26 }
 0x549   : > { %2363 = vmatpush1.bf16.msra.mxu0 %v5339_v23  ;;  %2406 = vmatpush1.bf16.msra.mxu1 %v5352_v30 }
 0x54a   : > { %2364 = vmatprep.subr.bf16.mxu0 %v5341_v24  ;;  %2407 = vmatprep.subr.bf16.mxu1 %v5353_v31 }
 0x54d   : > { %2365 = vmatpush1.bf16.msra.mxu0 %v5345_v27  ;;  %2408 = vmatpush1.bf16.msra.mxu1 %v5355_v33 }
 0x550   : > { %2383 = vmatmul.mubr.bf16.vlgmr.msra.gmra.mrb[8].mxu0 %v2157_v32  ;;  %2426 = vmatmul.mubr.bf16.vlgmr.msra.gmra.mrb[8].mxu1 %v2157_v32 }
 0x623   : > { %v2384_v36 = vpop.f32.mrb[8].mxu0  ;;  %v2427_v50 = vpop.f32.mrb[8].mxu1 }
 0x624   : > { %v2436_v38 = vadd.f32 %v2384_v36, %v2147_v34  ;;  %v2386_v39 = vpop.f32.mrb[9].mxu0  ;;  %v2429_v56 = vpop.f32.mrb[9].mxu1  ;;  %v2438_v62 = vadd.f32 %v2427_v50, %v2149_v48 }
 0x625   : > { %v2437_v41 = vadd.f32 %v2386_v39, %v2148_v35  ;;  %v2388_v42 = vpop.f32.mrb[10].mxu0  ;;  %v2431_v0 = vpop.f32.mrb[10].mxu1  ;;  %v2439_v52 = vadd.f32 %v2429_v56, %v2150_v63 }
 0x626   : > { %v4740_v43 = vmul.f32 -1.442695, %v2436_v38  ;;  %v2440_v44 = vadd.f32 %v2388_v42, %v2151_v37  ;;  %v2390_v45 = vpop.f32.mrb[11].mxu0  ;;  %v2433_v1 = vpop.f32.mrb[11].mxu1  ;;  %v2442_v2 = vadd.f32 %v2431_v0, %v2153_v61  ;;  %v4742_v53 = vmul.f32 -1.442695, %v2438_v62 }
 0x627   : > { %v4741_v46 = vmul.f32 -1.442695, %v2437_v41  ;;  %v2441_v47 = vadd.f32 %v2390_v45, %v2152_v40  ;;  %v2443_v54 = vadd.f32 %v2433_v1, %v2154_v51 }
 0x628   : > { %5356 = vpow2.f32 %v4740_v43  ;;  %v4743_v49 = vmul.f32 -1.442695, %v2440_v44  ;;  %v4745_v4 = vmul.f32 -1.442695, %v2442_v2 }
 0x629   : > { %5358 = vpow2.f32 %v4741_v46  ;;  %v4744_v55 = vmul.f32 -1.442695, %v2441_v47 }
 0x62a   : > { %5360 = vpow2.f32 %v4743_v49 }
 0x62b   : > { %5362 = vpow2.f32 %v4744_v55 }
 0x62c   : > { %5364 = vtanh.f32 %v2439_v52 }
 0x62d   : > { %5366 = vpow2.f32 %v4742_v53 }
 0x62e   : > { %5368 = vtanh.f32 %v2443_v54 }
 0x62f   : > { %5370 = vpow2.f32 %v4745_v4 }
 0x632   : > { %v5357_v5 = vpop.eup %5356 }
 0x633   : > { %v5359_v9 = vpop.eup %5358  ;;  %v2462_v6 = vadd.f32 1.0, %v5357_v5 }
 0x634   : > { %v5361_v57 = vpop.eup %5360  ;;  %v2463_v58 = vadd.f32 1.0, %v5359_v9 }
 0x635   : > { %v5363_v59 = vpop.eup %5362  ;;  %5372 = vrcp.f32 %v2462_v6  ;;  %v2465_v60 = vadd.f32 1.0, %v5361_v57 }
 0x636   : > { %5374 = vrcp.f32 %v2463_v58  ;;  %v2466_v7 = vadd.f32 1.0, %v5363_v59  ;;  %v5365_v8 = vpop.eup %5364 }
 0x637   : > { %5376 = vrcp.f32 %v2465_v60  ;;  %v5367_v10 = vpop.eup %5366 }
 0x638   : > { %5378 = vrcp.f32 %v2466_v7  ;;  %v5369_v11 = vpop.eup %5368  ;;  %v2464_v15 = vadd.f32 1.0, %v5367_v10 }
 0x639   : > { %v5371_v12 = vpop.eup %5370 }
 0x63a   : > { %v2467_v22 = vadd.f32 1.0, %v5371_v12  ;;  %5380 = vrcp.f32 %v2464_v15 }
 0x63f   : > { %v5373_v14 = vpop.eup %5372 }
 0x640   : > { %v5375_v16 = vpop.eup %5374  ;;  %v2486_v18 = vmul.f32 %v5373_v14, %v5365_v8 }
 0x641   : > { %v5377_v19 = vpop.eup %5376  ;;  %v2484_v20 = vmul.f32 %v5375_v16, %v2482_v13 }
 0x642   : > { %v5379_v21 = vpop.eup %5378  ;;  %v2487_v23 = vmul.f32 %v5377_v19, %v5369_v11 }
 0x643   : > { %v2485_v24 = vmul.f32 %v5379_v21, %v2483_v17  ;;  %v2488_v25 = vadd.f32 %v2486_v18, %v2484_v20 }
 0x644   : > { %v5381_v27 = vpop.eup %5380 }
 0x645   : > { %5382 = vtanh.f32 %v2488_v25  ;;  %2494 = vst [vmem:[#allocation6] sm:$0xff] %v2488_v25  ;;  %v2489_v26 = vadd.f32 %v2487_v23, %v2485_v24 }
 0x646   : > { %5384 = vrcp.f32 %v2467_v22 }
 0x647   : > { %5386 = vtanh.f32 %v2489_v26  ;;  %2495 = vst [vmem:[#allocation6 + $0x8] sm:$0xff] %v2489_v26 }
 0x64e   : > { %2500 = sbr.rel (%p4668_p11) target bundleno = 1623 (0x657), region = 114 }
 0x64f   : > { %v5383_v28 = vpop.eup %5382 }
 0x650   : > { %v5385_v29 = vpop.eup %5384  ;;  %v2492_v30 = vmul.f32 %v5383_v28, %v5381_v27 }
 0x651   : > { %v5387_v31 = vpop.eup %5386 }
 0x652   : > { %2496 = vst [vmem:[#allocation5] sm:$0xff] %v2492_v30  ;;  %v2493_v32 = vmul.f32 %v5387_v31, %v5385_v29 }
 0x654   : > { %2497 = vst [vmem:[#allocation5 + $0x8] sm:$0xff] %v2493_v32  ;;  %v2501_v33 = vpack.c.bf16 (!%p4668_p11), %v2493_v32, %v2492_v30 }
 0x656   : > { %2503 = vst [vmem:[#allocation3 + $0x10] sm:$0xff] %v2501_v33 }
 0x657 PF: > { %v5388_v34 = vld [vmem:[%s6356_s12 + $0x4] ss:$16 sps:$4 sm:$0xff]   ;;  %2742 = vmatprep.mubr.bf16.mxu0 %v5921_v3  ;;  %2785 = vmatprep.mubr.bf16.mxu1 %v5921_v3  ;;  %v5390_v35 = vld [vmem:[%s6356_s12] ss:$16 sps:$4 sm:$0xff]   ;;  %v5399_v39 = vld [vmem:[%s6356_s12 + $0xc] ss:$16 sps:$4 sm:$0xff]  }
 0x658   : > { %2710 = vmatprep.subr.bf16.mxu0 %v5388_v34  ;;  %v5391_v36 = vld [vmem:[%s6356_s12 + $0x24] ss:$16 sps:$4 sm:$0xff]   ;;  %v5393_v37 = vld [vmem:[%s6356_s12 + $0x20] ss:$16 sps:$4 sm:$0xff]   ;;  %v5402_v40 = vld [vmem:[%s6356_s12 + $0x8] ss:$16 sps:$4 sm:$0xff]   ;;  %2753 = vmatprep.subr.bf16.mxu1 %v5399_v39 }
 0x659   : > { %2711 = vmatpush1.bf16.msra.mxu0 %v5390_v35  ;;  %v5394_v38 = vld [vmem:[%s6356_s12 + $0x44] ss:$16 sps:$4 sm:$0xff]   ;;  %v5396_v41 = vld [vmem:[%s6356_s12 + $0x40] ss:$16 sps:$4 sm:$0xff]   ;;  %2754 = vmatpush1.bf16.msra.mxu1 %v5402_v40  ;;  %v5405_v43 = vld [vmem:[%s6356_s12 + $0x2c] ss:$16 sps:$4 sm:$0xff]  }
 0x65a   : > { %2712 = vmatprep.subr.bf16.mxu0 %v5391_v36  ;;  %v5397_v42 = vld [vmem:[%s6356_s12 + $0x64] ss:$16 sps:$4 sm:$0xff]   ;;  %v5408_v44 = vld [vmem:[%s6356_s12 + $0x28] ss:$16 sps:$4 sm:$0xff]   ;;  %2755 = vmatprep.subr.bf16.mxu1 %v5405_v43  ;;  %v5401_v45 = vld [vmem:[%s6356_s12 + $0x60] ss:$16 sps:$4 sm:$0xff]  }
 0x65b   : > { %v5403_v46 = vld [vmem:[%s6356_s12 + $0x84] ss:$16 sps:$4 sm:$0xff]   ;;  %v5411_v47 = vld [vmem:[%s6356_s12 + $0x4c] ss:$16 sps:$4 sm:$0xff]   ;;  %v5414_v48 = vld [vmem:[%s6356_s12 + $0x48] ss:$16 sps:$4 sm:$0xff]  }
 0x65c   : > { %v5417_v49 = vld [vmem:[%s6356_s12 + $0x6c] ss:$16 sps:$4 sm:$0xff]   ;;  %v5407_v50 = vld [vmem:[%s6356_s12 + $0x80] ss:$16 sps:$4 sm:$0xff]   ;;  %v5409_v55 = vld [vmem:[%s6356_s12 + $0xa4] ss:$16 sps:$4 sm:$0xff]  }
 0x65d   : > { %2713 = vmatpush1.bf16.msra.mxu0 %v5393_v37  ;;  %2756 = vmatpush1.bf16.msra.mxu1 %v5408_v44  ;;  %v5420_v56 = vld [vmem:[%s6356_s12 + $0x68] ss:$16 sps:$4 sm:$0xff]   ;;  %v5423_v61 = vld [vmem:[%s6356_s12 + $0x8c] ss:$16 sps:$4 sm:$0xff]   ;;  %v5413_v62 = vld [vmem:[%s6356_s12 + $0xa0] ss:$16 sps:$4 sm:$0xff]  }
 0x65e   : > { %2714 = vmatprep.subr.bf16.mxu0 %v5394_v38  ;;  %2757 = vmatprep.subr.bf16.mxu1 %v5411_v47  ;;  %v5415_v63 = vld [vmem:[%s6356_s12 + $0xc4] ss:$16 sps:$4 sm:$0xff]   ;;  %v5426_v0 = vld [vmem:[%s6356_s12 + $0x88] ss:$16 sps:$4 sm:$0xff]   ;;  %v5427_v1 = vld [vmem:[%s6356_s12 + $0xac] ss:$16 sps:$4 sm:$0xff]  }
 0x65f   : > { %v5419_v2 = vld [vmem:[%s6356_s12 + $0xc0] ss:$16 sps:$4 sm:$0xff]   ;;  %v5421_v51 = vld [vmem:[%s6356_s12 + $0xe4] ss:$16 sps:$4 sm:$0xff]   ;;  %v5429_v52 = vld [vmem:[%s6356_s12 + $0xa8] ss:$16 sps:$4 sm:$0xff]  }
 0x660   : > { %v5430_v53 = vld [vmem:[%s6356_s12 + $0xcc] ss:$16 sps:$4 sm:$0xff]   ;;  %v5425_v54 = vld [vmem:[%s6356_s12 + $0xe0] ss:$16 sps:$4 sm:$0xff]   ;;  %v5432_v9 = vld [vmem:[%s6356_s12 + $0xc8] ss:$16 sps:$4 sm:$0xff]  }
 0x661   : > { %2715 = vmatpush1.bf16.msra.mxu0 %v5396_v41  ;;  %2758 = vmatpush1.bf16.msra.mxu1 %v5414_v48  ;;  %v2515_v4 = vld [vmem:[#allocation5] sm:$0xff]  ;;  %v2516_v5 = vld [vmem:[#allocation5 + $0x8] sm:$0xff]  ;;  %v2509_v20 = vld [vmem:[#allocation4 + $0xd0] sm:$0xff] }
 0x662   : > { %2716 = vmatprep.subr.bf16.mxu0 %v5397_v42  ;;  %2759 = vmatprep.subr.bf16.mxu1 %v5417_v49  ;;  %v5433_v6 = vld [vmem:[%s6356_s12 + $0xec] ss:$16 sps:$4 sm:$0xff]   ;;  %v2517_v57 = vpack.c.bf16 %v2516_v5, %v2515_v4  ;;  %v5435_v58 = vld [vmem:[%s6356_s12 + $0xe8] ss:$16 sps:$4 sm:$0xff]   ;;  %v2507_v59 = vld [vmem:[#allocation4 + $0xc0] sm:$0xff] }
 0x663   : > { %v2508_v60 = vld [vmem:[#allocation4 + $0xc8] sm:$0xff]  ;;  %v2511_v8 = vld [vmem:[#allocation4 + $0xe0] sm:$0xff]  ;;  %v2513_v25 = vld [vmem:[#allocation4 + $0xf0] sm:$0xff] }
 0x664   : > { %v2512_v12 = vld [vmem:[#allocation4 + $0xe8] sm:$0xff]  ;;  %v2510_v27 = vld [vmem:[#allocation4 + $0xd8] sm:$0xff]  ;;  %v2842_v48 = vld [vmem:[#allocation6] sm:$0xff] }
 0x665   : > { %2717 = vmatpush1.bf16.msra.mxu0 %v5401_v45  ;;  %2760 = vmatpush1.bf16.msra.mxu1 %v5420_v56  ;;  %v2514_v31 = vld [vmem:[#allocation4 + $0xf8] sm:$0xff] }
 0x666   : > { %2718 = vmatprep.subr.bf16.mxu0 %v5403_v46  ;;  %2761 = vmatprep.subr.bf16.mxu1 %v5423_v61  ;;  %v2843_v56 = vld [vmem:[#allocation6 + $0x8] sm:$0xff] }
 0x669   : > { %2719 = vmatpush1.bf16.msra.mxu0 %v5407_v50  ;;  %2762 = vmatpush1.bf16.msra.mxu1 %v5426_v0 }
 0x66a   : > { %2720 = vmatprep.subr.bf16.mxu0 %v5409_v55  ;;  %2763 = vmatprep.subr.bf16.mxu1 %v5427_v1 }
 0x66d   : > { %2721 = vmatpush1.bf16.msra.mxu0 %v5413_v62  ;;  %2764 = vmatpush1.bf16.msra.mxu1 %v5429_v52 }
 0x66e   : > { %2722 = vmatprep.subr.bf16.mxu0 %v5415_v63  ;;  %2765 = vmatprep.subr.bf16.mxu1 %v5430_v53 }
 0x671   : > { %2723 = vmatpush1.bf16.msra.mxu0 %v5419_v2  ;;  %2766 = vmatpush1.bf16.msra.mxu1 %v5432_v9 }
 0x672   : > { %2724 = vmatprep.subr.bf16.mxu0 %v5421_v51  ;;  %2767 = vmatprep.subr.bf16.mxu1 %v5433_v6 }
 0x675   : > { %2725 = vmatpush1.bf16.msra.mxu0 %v5425_v54  ;;  %2768 = vmatpush1.bf16.msra.mxu1 %v5435_v58 }
 0x678   : > { %2743 = vmatmul.mubr.bf16.vlgmr.msra.gmra.mrb[12].mxu0 %v2517_v57  ;;  %2786 = vmatmul.mubr.bf16.vlgmr.msra.gmra.mrb[12].mxu1 %v2517_v57 }
 0x74b   : > { %v2744_v7 = vpop.f32.mrb[12].mxu0  ;;  %v2787_v22 = vpop.f32.mrb[12].mxu1 }
 0x74c   : > { %v2796_v10 = vadd.f32 %v2744_v7, %v2507_v59  ;;  %v2746_v11 = vpop.f32.mrb[13].mxu0  ;;  %v2789_v24 = vpop.f32.mrb[13].mxu1  ;;  %v2798_v26 = vadd.f32 %v2787_v22, %v2509_v20 }
 0x74d   : > { %v2797_v13 = vadd.f32 %v2746_v11, %v2508_v60  ;;  %v2748_v14 = vpop.f32.mrb[14].mxu0  ;;  %v2791_v28 = vpop.f32.mrb[14].mxu1  ;;  %v2799_v32 = vadd.f32 %v2789_v24, %v2510_v27 }
 0x74e   : > { %v4779_v15 = vmul.f32 -1.442695, %v2796_v10  ;;  %v2800_v16 = vadd.f32 %v2748_v14, %v2511_v8  ;;  %v2750_v17 = vpop.f32.mrb[15].mxu0  ;;  %v2793_v29 = vpop.f32.mrb[15].mxu1  ;;  %v2802_v30 = vadd.f32 %v2791_v28, %v2513_v25  ;;  %v4781_v33 = vmul.f32 -1.442695, %v2798_v26 }
 0x74f   : > { %v4780_v18 = vmul.f32 -1.442695, %v2797_v13  ;;  %v2801_v19 = vadd.f32 %v2750_v17, %v2512_v12  ;;  %v2803_v34 = vadd.f32 %v2793_v29, %v2514_v31 }
 0x750   : > { %5436 = vpow2.f32 %v4779_v15  ;;  %v4782_v21 = vmul.f32 -1.442695, %v2800_v16  ;;  %v4784_v35 = vmul.f32 -1.442695, %v2802_v30 }
 0x751   : > { %5438 = vpow2.f32 %v4780_v18  ;;  %v4783_v23 = vmul.f32 -1.442695, %v2801_v19 }
 0x752   : > { %5440 = vpow2.f32 %v4782_v21 }
 0x753   : > { %5442 = vpow2.f32 %v4783_v23 }
 0x754   : > { %5444 = vtanh.f32 %v2799_v32 }
 0x755   : > { %5446 = vpow2.f32 %v4781_v33 }
 0x756   : > { %5448 = vtanh.f32 %v2803_v34 }
 0x757   : > { %5450 = vpow2.f32 %v4784_v35 }
 0x75a   : > { %v5437_v36 = vpop.eup %5436 }
 0x75b   : > { %v5439_v37 = vpop.eup %5438  ;;  %v2822_v38 = vadd.f32 1.0, %v5437_v36 }
 0x75c   : > { %v5441_v39 = vpop.eup %5440  ;;  %v2823_v40 = vadd.f32 1.0, %v5439_v37 }
 0x75d   : > { %v5443_v41 = vpop.eup %5442  ;;  %5452 = vrcp.f32 %v2822_v38  ;;  %v2825_v42 = vadd.f32 1.0, %v5441_v39 }
 0x75e   : > { %5454 = vrcp.f32 %v2823_v40  ;;  %v2826_v43 = vadd.f32 1.0, %v5443_v41  ;;  %v5445_v44 = vpop.eup %5444 }
 0x75f   : > { %5456 = vrcp.f32 %v2825_v42  ;;  %v5447_v45 = vpop.eup %5446 }
 0x760   : > { %5458 = vrcp.f32 %v2826_v43  ;;  %v5449_v46 = vpop.eup %5448  ;;  %v2824_v50 = vadd.f32 1.0, %v5447_v45 }
 0x761   : > { %v5451_v47 = vpop.eup %5450 }
 0x762   : > { %v2827_v1 = vadd.f32 1.0, %v5451_v47  ;;  %5460 = vrcp.f32 %v2824_v50 }
 0x767   : > { %v5453_v49 = vpop.eup %5452 }
 0x768   : > { %v5455_v55 = vpop.eup %5454  ;;  %v2846_v61 = vmul.f32 %v5453_v49, %v5445_v44 }
 0x769   : > { %v5457_v62 = vpop.eup %5456  ;;  %v2844_v63 = vmul.f32 %v5455_v55, %v2842_v48 }
 0x76a   : > { %v5459_v0 = vpop.eup %5458  ;;  %v2847_v2 = vmul.f32 %v5457_v62, %v5449_v46 }
 0x76b   : > { %v2845_v51 = vmul.f32 %v5459_v0, %v2843_v56  ;;  %v2848_v52 = vadd.f32 %v2846_v61, %v2844_v63 }
 0x76c   : > { %v5461_v54 = vpop.eup %5460 }
 0x76d   : > { %5462 = vtanh.f32 %v2848_v52  ;;  %2854 = vst [vmem:[#allocation6] sm:$0xff] %v2848_v52  ;;  %v2849_v53 = vadd.f32 %v2847_v2, %v2845_v51 }
 0x76e   : > { %5464 = vrcp.f32 %v2827_v1 }
 0x76f   : > { %5466 = vtanh.f32 %v2849_v53  ;;  %2855 = vst [vmem:[#allocation6 + $0x8] sm:$0xff] %v2849_v53 }
 0x776   : > { %2860 = sbr.rel (%p4668_p11) target bundleno = 1919 (0x77f), region = 118 }
 0x777   : > { %v5463_v4 = vpop.eup %5462 }
 0x778   : > { %v5465_v5 = vpop.eup %5464  ;;  %v2852_v9 = vmul.f32 %v5463_v4, %v5461_v54 }
 0x779   : > { %v5467_v6 = vpop.eup %5466 }
 0x77a   : > { %2856 = vst [vmem:[#allocation5] sm:$0xff] %v2852_v9  ;;  %v2853_v57 = vmul.f32 %v5467_v6, %v5465_v5 }
 0x77c   : > { %2857 = vst [vmem:[#allocation5 + $0x8] sm:$0xff] %v2853_v57  ;;  %v2861_v58 = vpack.c.bf16 (!%p4668_p11), %v2853_v57, %v2852_v9 }
 0x77e   : > { %2863 = vst [vmem:[#allocation3 + $0x18] sm:$0xff] %v2861_v58 }
 0x77f PF: > { %v5468_v59 = vld [vmem:[%s6356_s12 + $0x4] ss:$16 sps:$4 sm:$0xff]   ;;  %3102 = vmatprep.mubr.bf16.mxu0 %v5921_v3  ;;  %3145 = vmatprep.mubr.bf16.mxu1 %v5921_v3  ;;  %v5470_v60 = vld [vmem:[%s6356_s12] ss:$16 sps:$4 sm:$0xff]   ;;  %v5479_v11 = vld [vmem:[%s6356_s12 + $0xc] ss:$16 sps:$4 sm:$0xff]  }
 0x780   : > { %3070 = vmatprep.subr.bf16.mxu0 %v5468_v59  ;;  %v5471_v7 = vld [vmem:[%s6356_s12 + $0x24] ss:$16 sps:$4 sm:$0xff]   ;;  %v5473_v8 = vld [vmem:[%s6356_s12 + $0x20] ss:$16 sps:$4 sm:$0xff]   ;;  %v5482_v12 = vld [vmem:[%s6356_s12 + $0x8] ss:$16 sps:$4 sm:$0xff]   ;;  %3113 = vmatprep.subr.bf16.mxu1 %v5479_v11 }
 0x781   : > { %3071 = vmatpush1.bf16.msra.mxu0 %v5470_v60  ;;  %v5474_v10 = vld [vmem:[%s6356_s12 + $0x44] ss:$16 sps:$4 sm:$0xff]   ;;  %v5476_v13 = vld [vmem:[%s6356_s12 + $0x40] ss:$16 sps:$4 sm:$0xff]   ;;  %3114 = vmatpush1.bf16.msra.mxu1 %v5482_v12  ;;  %v5485_v15 = vld [vmem:[%s6356_s12 + $0x2c] ss:$16 sps:$4 sm:$0xff]  }
 0x782   : > { %3072 = vmatprep.subr.bf16.mxu0 %v5471_v7  ;;  %v5477_v14 = vld [vmem:[%s6356_s12 + $0x64] ss:$16 sps:$4 sm:$0xff]   ;;  %v5488_v16 = vld [vmem:[%s6356_s12 + $0x28] ss:$16 sps:$4 sm:$0xff]   ;;  %3115 = vmatprep.subr.bf16.mxu1 %v5485_v15  ;;  %v5481_v17 = vld [vmem:[%s6356_s12 + $0x60] ss:$16 sps:$4 sm:$0xff]  }
 0x783   : > { %v5483_v18 = vld [vmem:[%s6356_s12 + $0x84] ss:$16 sps:$4 sm:$0xff]   ;;  %v5491_v19 = vld [vmem:[%s6356_s12 + $0x4c] ss:$16 sps:$4 sm:$0xff]   ;;  %v5494_v20 = vld [vmem:[%s6356_s12 + $0x48] ss:$16 sps:$4 sm:$0xff]  }
 0x784   : > { %v5497_v21 = vld [vmem:[%s6356_s12 + $0x6c] ss:$16 sps:$4 sm:$0xff]   ;;  %v5487_v22 = vld [vmem:[%s6356_s12 + $0x80] ss:$16 sps:$4 sm:$0xff]   ;;  %v5489_v23 = vld [vmem:[%s6356_s12 + $0xa4] ss:$16 sps:$4 sm:$0xff]  }
 0x785   : > { %3073 = vmatpush1.bf16.msra.mxu0 %v5473_v8  ;;  %3116 = vmatpush1.bf16.msra.mxu1 %v5488_v16  ;;  %v5500_v24 = vld [vmem:[%s6356_s12 + $0x68] ss:$16 sps:$4 sm:$0xff]   ;;  %v5503_v25 = vld [vmem:[%s6356_s12 + $0x8c] ss:$16 sps:$4 sm:$0xff]   ;;  %v5493_v26 = vld [vmem:[%s6356_s12 + $0xa0] ss:$16 sps:$4 sm:$0xff]  }
 0x786   : > { %3074 = vmatprep.subr.bf16.mxu0 %v5474_v10  ;;  %3117 = vmatprep.subr.bf16.mxu1 %v5491_v19  ;;  %v5495_v27 = vld [vmem:[%s6356_s12 + $0xc4] ss:$16 sps:$4 sm:$0xff]   ;;  %v5506_v28 = vld [vmem:[%s6356_s12 + $0x88] ss:$16 sps:$4 sm:$0xff]   ;;  %v5507_v29 = vld [vmem:[%s6356_s12 + $0xac] ss:$16 sps:$4 sm:$0xff]  }
 0x787   : > { %v5499_v30 = vld [vmem:[%s6356_s12 + $0xc0] ss:$16 sps:$4 sm:$0xff]   ;;  %v5501_v31 = vld [vmem:[%s6356_s12 + $0xe4] ss:$16 sps:$4 sm:$0xff]   ;;  %v5509_v32 = vld [vmem:[%s6356_s12 + $0xa8] ss:$16 sps:$4 sm:$0xff]  }
 0x788   : > { %v5510_v33 = vld [vmem:[%s6356_s12 + $0xcc] ss:$16 sps:$4 sm:$0xff]   ;;  %v5505_v34 = vld [vmem:[%s6356_s12 + $0xe0] ss:$16 sps:$4 sm:$0xff]   ;;  %v5512_v37 = vld [vmem:[%s6356_s12 + $0xc8] ss:$16 sps:$4 sm:$0xff]  }
 0x789   : > { %3075 = vmatpush1.bf16.msra.mxu0 %v5476_v13  ;;  %3118 = vmatpush1.bf16.msra.mxu1 %v5494_v20  ;;  %v2875_v35 = vld [vmem:[#allocation5] sm:$0xff]  ;;  %v2876_v36 = vld [vmem:[#allocation5 + $0x8] sm:$0xff]  ;;  %v2869_v63 = vld [vmem:[#allocation4 + $0x110] sm:$0xff] }
 0x78a   : > { %3076 = vmatprep.subr.bf16.mxu0 %v5477_v14  ;;  %3119 = vmatprep.subr.bf16.mxu1 %v5497_v21  ;;  %v5513_v38 = vld [vmem:[%s6356_s12 + $0xec] ss:$16 sps:$4 sm:$0xff]   ;;  %v2877_v39 = vpack.c.bf16 %v2876_v36, %v2875_v35  ;;  %v5515_v40 = vld [vmem:[%s6356_s12 + $0xe8] ss:$16 sps:$4 sm:$0xff]   ;;  %v2867_v41 = vld [vmem:[#allocation4 + $0x100] sm:$0xff] }
 0x78b   : > { %v2868_v42 = vld [vmem:[#allocation4 + $0x108] sm:$0xff]  ;;  %v2871_v44 = vld [vmem:[#allocation4 + $0x120] sm:$0xff]  ;;  %v2873_v52 = vld [vmem:[#allocation4 + $0x130] sm:$0xff] }
 0x78c   : > { %v2872_v47 = vld [vmem:[#allocation4 + $0x128] sm:$0xff]  ;;  %v2870_v54 = vld [vmem:[#allocation4 + $0x118] sm:$0xff]  ;;  %v3202_v20 = vld [vmem:[#allocation6] sm:$0xff] }
 0x78d   : > { %3077 = vmatpush1.bf16.msra.mxu0 %v5481_v17  ;;  %3120 = vmatpush1.bf16.msra.mxu1 %v5500_v24  ;;  %v2874_v6 = vld [vmem:[#allocation4 + $0x138] sm:$0xff] }
 0x78e   : > { %3078 = vmatprep.subr.bf16.mxu0 %v5483_v18  ;;  %3121 = vmatprep.subr.bf16.mxu1 %v5503_v25  ;;  %v3203_v24 = vld [vmem:[#allocation6 + $0x8] sm:$0xff] }
 0x791   : > { %3079 = vmatpush1.bf16.msra.mxu0 %v5487_v22  ;;  %3122 = vmatpush1.bf16.msra.mxu1 %v5506_v28 }
 0x792   : > { %3080 = vmatprep.subr.bf16.mxu0 %v5489_v23  ;;  %3123 = vmatprep.subr.bf16.mxu1 %v5507_v29 }
 0x795   : > { %3081 = vmatpush1.bf16.msra.mxu0 %v5493_v26  ;;  %3124 = vmatpush1.bf16.msra.mxu1 %v5509_v32 }
 0x796   : > { %3082 = vmatprep.subr.bf16.mxu0 %v5495_v27  ;;  %3125 = vmatprep.subr.bf16.mxu1 %v5510_v33 }
 0x799   : > { %3083 = vmatpush1.bf16.msra.mxu0 %v5499_v30  ;;  %3126 = vmatpush1.bf16.msra.mxu1 %v5512_v37 }
 0x79a   : > { %3084 = vmatprep.subr.bf16.mxu0 %v5501_v31  ;;  %3127 = vmatprep.subr.bf16.mxu1 %v5513_v38 }
 0x79d   : > { %3085 = vmatpush1.bf16.msra.mxu0 %v5505_v34  ;;  %3128 = vmatpush1.bf16.msra.mxu1 %v5515_v40 }
 0x7a0   : > { %3103 = vmatmul.mubr.bf16.vlgmr.msra.gmra.mrb[16].mxu0 %v2877_v39  ;;  %3146 = vmatmul.mubr.bf16.vlgmr.msra.gmra.mrb[16].mxu1 %v2877_v39 }
 0x873   : > { %v3104_v43 = vpop.f32.mrb[16].mxu0  ;;  %v3147_v1 = vpop.f32.mrb[16].mxu1 }
 0x874   : > { %v3156_v45 = vadd.f32 %v3104_v43, %v2867_v41  ;;  %v3106_v46 = vpop.f32.mrb[17].mxu0  ;;  %v3149_v51 = vpop.f32.mrb[17].mxu1  ;;  %v3158_v53 = vadd.f32 %v3147_v1, %v2869_v63 }
 0x875   : > { %v3157_v48 = vadd.f32 %v3106_v46, %v2868_v42  ;;  %v3108_v49 = vpop.f32.mrb[18].mxu0  ;;  %v3151_v4 = vpop.f32.mrb[18].mxu1  ;;  %v3159_v57 = vadd.f32 %v3149_v51, %v2870_v54 }
 0x876   : > { %v4818_v50 = vmul.f32 -1.442695, %v3156_v45  ;;  %v3160_v55 = vadd.f32 %v3108_v49, %v2871_v44  ;;  %v3110_v56 = vpop.f32.mrb[19].mxu0  ;;  %v3153_v5 = vpop.f32.mrb[19].mxu1  ;;  %v3162_v9 = vadd.f32 %v3151_v4, %v2873_v52  ;;  %v4820_v58 = vmul.f32 -1.442695, %v3158_v53 }
 0x877   : > { %v4819_v61 = vmul.f32 -1.442695, %v3157_v48  ;;  %v3161_v62 = vadd.f32 %v3110_v56, %v2872_v47  ;;  %v3163_v59 = vadd.f32 %v3153_v5, %v2874_v6 }
 0x878   : > { %5516 = vpow2.f32 %v4818_v50  ;;  %v4821_v0 = vmul.f32 -1.442695, %v3160_v55  ;;  %v4823_v60 = vmul.f32 -1.442695, %v3162_v9 }
 0x879   : > { %5518 = vpow2.f32 %v4819_v61  ;;  %v4822_v2 = vmul.f32 -1.442695, %v3161_v62 }
 0x87a   : > { %5520 = vpow2.f32 %v4821_v0 }
 0x87b   : > { %5522 = vpow2.f32 %v4822_v2 }
 0x87c   : > { %5524 = vtanh.f32 %v3159_v57 }
 0x87d   : > { %5526 = vpow2.f32 %v4820_v58 }
 0x87e   : > { %5528 = vtanh.f32 %v3163_v59 }
 0x87f   : > { %5530 = vpow2.f32 %v4823_v60 }
 0x882   : > { %v5517_v7 = vpop.eup %5516 }
 0x883   : > { %v5519_v8 = vpop.eup %5518  ;;  %v3182_v10 = vadd.f32 1.0, %v5517_v7 }
 0x884   : > { %v5521_v11 = vpop.eup %5520  ;;  %v3183_v12 = vadd.f32 1.0, %v5519_v8 }
 0x885   : > { %v5523_v13 = vpop.eup %5522  ;;  %5532 = vrcp.f32 %v3182_v10  ;;  %v3185_v14 = vadd.f32 1.0, %v5521_v11 }
 0x886   : > { %5534 = vrcp.f32 %v3183_v12  ;;  %v3186_v15 = vadd.f32 1.0, %v5523_v13  ;;  %v5525_v16 = vpop.eup %5524 }
 0x887   : > { %5536 = vrcp.f32 %v3185_v14  ;;  %v5527_v17 = vpop.eup %5526 }
 0x888   : > { %5538 = vrcp.f32 %v3186_v15  ;;  %v5529_v18 = vpop.eup %5528  ;;  %v3184_v22 = vadd.f32 1.0, %v5527_v17 }
 0x889   : > { %v5531_v19 = vpop.eup %5530 }
 0x88a   : > { %v3187_v29 = vadd.f32 1.0, %v5531_v19  ;;  %5540 = vrcp.f32 %v3184_v22 }
 0x88f   : > { %v5533_v21 = vpop.eup %5532 }
 0x890   : > { %v5535_v23 = vpop.eup %5534  ;;  %v3206_v25 = vmul.f32 %v5533_v21, %v5525_v16 }
 0x891   : > { %v5537_v26 = vpop.eup %5536  ;;  %v3204_v27 = vmul.f32 %v5535_v23, %v3202_v20 }
 0x892   : > { %v5539_v28 = vpop.eup %5538  ;;  %v3207_v30 = vmul.f32 %v5537_v26, %v5529_v18 }
 0x893   : > { %v3205_v31 = vmul.f32 %v5539_v28, %v3203_v24  ;;  %v3208_v32 = vadd.f32 %v3206_v25, %v3204_v27 }
 0x894   : > { %v5541_v34 = vpop.eup %5540 }
 0x895   : > { %5542 = vtanh.f32 %v3208_v32  ;;  %3214 = vst [vmem:[#allocation6] sm:$0xff] %v3208_v32  ;;  %v3209_v33 = vadd.f32 %v3207_v30, %v3205_v31 }
 0x896   : > { %5544 = vrcp.f32 %v3187_v29 }
 0x897   : > { %5546 = vtanh.f32 %v3209_v33  ;;  %3215 = vst [vmem:[#allocation6 + $0x8] sm:$0xff] %v3209_v33 }
 0x89e   : > { %3220 = sbr.rel (%p4668_p11) target bundleno = 2215 (0x8a7), region = 122 }
 0x89f   : > { %v5543_v35 = vpop.eup %5542 }
 0x8a0   : > { %v5545_v36 = vpop.eup %5544  ;;  %v3212_v37 = vmul.f32 %v5543_v35, %v5541_v34 }
 0x8a1   : > { %v5547_v38 = vpop.eup %5546 }
 0x8a2   : > { %3216 = vst [vmem:[#allocation5] sm:$0xff] %v3212_v37  ;;  %v3213_v39 = vmul.f32 %v5547_v38, %v5545_v36 }
 0x8a4   : > { %3217 = vst [vmem:[#allocation5 + $0x8] sm:$0xff] %v3213_v39  ;;  %v3221_v40 = vpack.c.bf16 (!%p4668_p11), %v3213_v39, %v3212_v37 }
 0x8a6   : > { %3223 = vst [vmem:[#allocation3 + $0x20] sm:$0xff] %v3221_v40 }
 0x8a7 PF: > { %v5548_v41 = vld [vmem:[%s6356_s12 + $0x4] ss:$16 sps:$4 sm:$0xff]   ;;  %3462 = vmatprep.mubr.bf16.mxu0 %v5921_v3  ;;  %3505 = vmatprep.mubr.bf16.mxu1 %v5921_v3  ;;  %v5550_v42 = vld [vmem:[%s6356_s12] ss:$16 sps:$4 sm:$0xff]   ;;  %v5559_v46 = vld [vmem:[%s6356_s12 + $0xc] ss:$16 sps:$4 sm:$0xff]  }
 0x8a8   : > { %3430 = vmatprep.subr.bf16.mxu0 %v5548_v41  ;;  %v5551_v43 = vld [vmem:[%s6356_s12 + $0x24] ss:$16 sps:$4 sm:$0xff]   ;;  %v5553_v44 = vld [vmem:[%s6356_s12 + $0x20] ss:$16 sps:$4 sm:$0xff]   ;;  %v5562_v47 = vld [vmem:[%s6356_s12 + $0x8] ss:$16 sps:$4 sm:$0xff]   ;;  %3473 = vmatprep.subr.bf16.mxu1 %v5559_v46 }
 0x8a9   : > { %3431 = vmatpush1.bf16.msra.mxu0 %v5550_v42  ;;  %v5554_v45 = vld [vmem:[%s6356_s12 + $0x44] ss:$16 sps:$4 sm:$0xff]   ;;  %v5556_v48 = vld [vmem:[%s6356_s12 + $0x40] ss:$16 sps:$4 sm:$0xff]   ;;  %3474 = vmatpush1.bf16.msra.mxu1 %v5562_v47  ;;  %v5565_v50 = vld [vmem:[%s6356_s12 + $0x2c] ss:$16 sps:$4 sm:$0xff]  }
 0x8aa   : > { %3432 = vmatprep.subr.bf16.mxu0 %v5551_v43  ;;  %v5557_v49 = vld [vmem:[%s6356_s12 + $0x64] ss:$16 sps:$4 sm:$0xff]   ;;  %v5568_v55 = vld [vmem:[%s6356_s12 + $0x28] ss:$16 sps:$4 sm:$0xff]   ;;  %3475 = vmatprep.subr.bf16.mxu1 %v5565_v50  ;;  %v5561_v56 = vld [vmem:[%s6356_s12 + $0x60] ss:$16 sps:$4 sm:$0xff]  }
 0x8ab   : > { %v5563_v61 = vld [vmem:[%s6356_s12 + $0x84] ss:$16 sps:$4 sm:$0xff]   ;;  %v5571_v62 = vld [vmem:[%s6356_s12 + $0x4c] ss:$16 sps:$4 sm:$0xff]   ;;  %v5574_v63 = vld [vmem:[%s6356_s12 + $0x48] ss:$16 sps:$4 sm:$0xff]  }
 0x8ac   : > { %v5577_v0 = vld [vmem:[%s6356_s12 + $0x6c] ss:$16 sps:$4 sm:$0xff]   ;;  %v5567_v1 = vld [vmem:[%s6356_s12 + $0x80] ss:$16 sps:$4 sm:$0xff]   ;;  %v5569_v2 = vld [vmem:[%s6356_s12 + $0xa4] ss:$16 sps:$4 sm:$0xff]  }
 0x8ad   : > { %3433 = vmatpush1.bf16.msra.mxu0 %v5553_v44  ;;  %3476 = vmatpush1.bf16.msra.mxu1 %v5568_v55  ;;  %v5580_v51 = vld [vmem:[%s6356_s12 + $0x68] ss:$16 sps:$4 sm:$0xff]   ;;  %v5583_v52 = vld [vmem:[%s6356_s12 + $0x8c] ss:$16 sps:$4 sm:$0xff]   ;;  %v5573_v53 = vld [vmem:[%s6356_s12 + $0xa0] ss:$16 sps:$4 sm:$0xff]  }
 0x8ae   : > { %3434 = vmatprep.subr.bf16.mxu0 %v5554_v45  ;;  %3477 = vmatprep.subr.bf16.mxu1 %v5571_v62  ;;  %v5575_v54 = vld [vmem:[%s6356_s12 + $0xc4] ss:$16 sps:$4 sm:$0xff]   ;;  %v5586_v4 = vld [vmem:[%s6356_s12 + $0x88] ss:$16 sps:$4 sm:$0xff]   ;;  %v5587_v5 = vld [vmem:[%s6356_s12 + $0xac] ss:$16 sps:$4 sm:$0xff]  }
 0x8af   : > { %v5579_v9 = vld [vmem:[%s6356_s12 + $0xc0] ss:$16 sps:$4 sm:$0xff]   ;;  %v5581_v6 = vld [vmem:[%s6356_s12 + $0xe4] ss:$16 sps:$4 sm:$0xff]   ;;  %v5589_v57 = vld [vmem:[%s6356_s12 + $0xa8] ss:$16 sps:$4 sm:$0xff]  }
 0x8b0   : > { %v5590_v58 = vld [vmem:[%s6356_s12 + $0xcc] ss:$16 sps:$4 sm:$0xff]   ;;  %v5585_v59 = vld [vmem:[%s6356_s12 + $0xe0] ss:$16 sps:$4 sm:$0xff]   ;;  %v5592_v8 = vld [vmem:[%s6356_s12 + $0xc8] ss:$16 sps:$4 sm:$0xff]  }
 0x8b1   : > { %3435 = vmatpush1.bf16.msra.mxu0 %v5556_v48  ;;  %3478 = vmatpush1.bf16.msra.mxu1 %v5574_v63  ;;  %v3235_v60 = vld [vmem:[#allocation5] sm:$0xff]  ;;  %v3236_v7 = vld [vmem:[#allocation5 + $0x8] sm:$0xff]  ;;  %v3229_v27 = vld [vmem:[#allocation4 + $0x150] sm:$0xff] }
 0x8b2   : > { %3436 = vmatprep.subr.bf16.mxu0 %v5557_v49  ;;  %3479 = vmatprep.subr.bf16.mxu1 %v5577_v0  ;;  %v5593_v10 = vld [vmem:[%s6356_s12 + $0xec] ss:$16 sps:$4 sm:$0xff]   ;;  %v3237_v11 = vpack.c.bf16 %v3236_v7, %v3235_v60  ;;  %v5595_v12 = vld [vmem:[%s6356_s12 + $0xe8] ss:$16 sps:$4 sm:$0xff]   ;;  %v3227_v13 = vld [vmem:[#allocation4 + $0x140] sm:$0xff] }
 0x8b3   : > { %v3228_v14 = vld [vmem:[#allocation4 + $0x148] sm:$0xff]  ;;  %v3231_v16 = vld [vmem:[#allocation4 + $0x160] sm:$0xff]  ;;  %v3233_v32 = vld [vmem:[#allocation4 + $0x170] sm:$0xff] }
 0x8b4   : > { %v3232_v19 = vld [vmem:[#allocation4 + $0x168] sm:$0xff]  ;;  %v3230_v34 = vld [vmem:[#allocation4 + $0x158] sm:$0xff]  ;;  %v3562_v63 = vld [vmem:[#allocation6] sm:$0xff] }
 0x8b5   : > { %3437 = vmatpush1.bf16.msra.mxu0 %v5561_v56  ;;  %3480 = vmatpush1.bf16.msra.mxu1 %v5580_v51  ;;  %v3234_v38 = vld [vmem:[#allocation4 + $0x178] sm:$0xff] }
 0x8b6   : > { %3438 = vmatprep.subr.bf16.mxu0 %v5563_v61  ;;  %3481 = vmatprep.subr.bf16.mxu1 %v5583_v52  ;;  %v3563_v51 = vld [vmem:[#allocation6 + $0x8] sm:$0xff] }
 0x8b9   : > { %3439 = vmatpush1.bf16.msra.mxu0 %v5567_v1  ;;  %3482 = vmatpush1.bf16.msra.mxu1 %v5586_v4 }
 0x8ba   : > { %3440 = vmatprep.subr.bf16.mxu0 %v5569_v2  ;;  %3483 = vmatprep.subr.bf16.mxu1 %v5587_v5 }
 0x8bd   : > { %3441 = vmatpush1.bf16.msra.mxu0 %v5573_v53  ;;  %3484 = vmatpush1.bf16.msra.mxu1 %v5589_v57 }
 0x8be   : > { %3442 = vmatprep.subr.bf16.mxu0 %v5575_v54  ;;  %3485 = vmatprep.subr.bf16.mxu1 %v5590_v58 }
 0x8c1   : > { %3443 = vmatpush1.bf16.msra.mxu0 %v5579_v9  ;;  %3486 = vmatpush1.bf16.msra.mxu1 %v5592_v8 }
 0x8c2   : > { %3444 = vmatprep.subr.bf16.mxu0 %v5581_v6  ;;  %3487 = vmatprep.subr.bf16.mxu1 %v5593_v10 }
 0x8c5   : > { %3445 = vmatpush1.bf16.msra.mxu0 %v5585_v59  ;;  %3488 = vmatpush1.bf16.msra.mxu1 %v5595_v12 }
 0x8c8   : > { %3463 = vmatmul.mubr.bf16.vlgmr.msra.gmra.mrb[20].mxu0 %v3237_v11  ;;  %3506 = vmatmul.mubr.bf16.vlgmr.msra.gmra.mrb[20].mxu1 %v3237_v11 }
 0x99b   : > { %v3464_v15 = vpop.f32.mrb[20].mxu0  ;;  %v3507_v29 = vpop.f32.mrb[20].mxu1 }
 0x99c   : > { %v3516_v17 = vadd.f32 %v3464_v15, %v3227_v13  ;;  %v3466_v18 = vpop.f32.mrb[21].mxu0  ;;  %v3509_v31 = vpop.f32.mrb[21].mxu1  ;;  %v3518_v33 = vadd.f32 %v3507_v29, %v3229_v27 }
 0x99d   : > { %v3517_v20 = vadd.f32 %v3466_v18, %v3228_v14  ;;  %v3468_v21 = vpop.f32.mrb[22].mxu0  ;;  %v3511_v35 = vpop.f32.mrb[22].mxu1  ;;  %v3519_v39 = vadd.f32 %v3509_v31, %v3230_v34 }
 0x99e   : > { %v4857_v22 = vmul.f32 -1.442695, %v3516_v17  ;;  %v3520_v23 = vadd.f32 %v3468_v21, %v3231_v16  ;;  %v3470_v24 = vpop.f32.mrb[23].mxu0  ;;  %v3513_v36 = vpop.f32.mrb[23].mxu1  ;;  %v3522_v37 = vadd.f32 %v3511_v35, %v3233_v32  ;;  %v4859_v40 = vmul.f32 -1.442695, %v3518_v33 }
 0x99f   : > { %v4858_v25 = vmul.f32 -1.442695, %v3517_v20  ;;  %v3521_v26 = vadd.f32 %v3470_v24, %v3232_v19  ;;  %v3523_v41 = vadd.f32 %v3513_v36, %v3234_v38 }
 0x9a0   : > { %5596 = vpow2.f32 %v4857_v22  ;;  %v4860_v28 = vmul.f32 -1.442695, %v3520_v23  ;;  %v4862_v42 = vmul.f32 -1.442695, %v3522_v37 }
 0x9a1   : > { %5598 = vpow2.f32 %v4858_v25  ;;  %v4861_v30 = vmul.f32 -1.442695, %v3521_v26 }
 0x9a2   : > { %5600 = vpow2.f32 %v4860_v28 }
 0x9a3   : > { %5602 = vpow2.f32 %v4861_v30 }
 0x9a4   : > { %5604 = vtanh.f32 %v3519_v39 }
 0x9a5   : > { %5606 = vpow2.f32 %v4859_v40 }
 0x9a6   : > { %5608 = vtanh.f32 %v3523_v41 }
 0x9a7   : > { %5610 = vpow2.f32 %v4862_v42 }
 0x9aa   : > { %v5597_v43 = vpop.eup %5596 }
 0x9ab   : > { %v5599_v44 = vpop.eup %5598  ;;  %v3542_v45 = vadd.f32 1.0, %v5597_v43 }
 0x9ac   : > { %v5601_v46 = vpop.eup %5600  ;;  %v3543_v47 = vadd.f32 1.0, %v5599_v44 }
 0x9ad   : > { %v5603_v48 = vpop.eup %5602  ;;  %5612 = vrcp.f32 %v3542_v45  ;;  %v3545_v49 = vadd.f32 1.0, %v5601_v46 }
 0x9ae   : > { %5614 = vrcp.f32 %v3543_v47  ;;  %v3546_v50 = vadd.f32 1.0, %v5603_v48  ;;  %v5605_v55 = vpop.eup %5604 }
 0x9af   : > { %5616 = vrcp.f32 %v3545_v49  ;;  %v5607_v56 = vpop.eup %5606 }
 0x9b0   : > { %5618 = vrcp.f32 %v3546_v50  ;;  %v5609_v61 = vpop.eup %5608  ;;  %v3544_v1 = vadd.f32 1.0, %v5607_v56 }
 0x9b1   : > { %v5611_v62 = vpop.eup %5610 }
 0x9b2   : > { %v3547_v5 = vadd.f32 1.0, %v5611_v62  ;;  %5620 = vrcp.f32 %v3544_v1 }
 0x9b7   : > { %v5613_v0 = vpop.eup %5612 }
 0x9b8   : > { %v5615_v2 = vpop.eup %5614  ;;  %v3566_v52 = vmul.f32 %v5613_v0, %v5605_v55 }
 0x9b9   : > { %v5617_v53 = vpop.eup %5616  ;;  %v3564_v54 = vmul.f32 %v5615_v2, %v3562_v63 }
 0x9ba   : > { %v5619_v4 = vpop.eup %5618  ;;  %v3567_v9 = vmul.f32 %v5617_v53, %v5609_v61 }
 0x9bb   : > { %v3565_v6 = vmul.f32 %v5619_v4, %v3563_v51  ;;  %v3568_v57 = vadd.f32 %v3566_v52, %v3564_v54 }
 0x9bc   : > { %v5621_v59 = vpop.eup %5620 }
 0x9bd   : > { %5622 = vtanh.f32 %v3568_v57  ;;  %3574 = vst [vmem:[#allocation6] sm:$0xff] %v3568_v57  ;;  %v3569_v58 = vadd.f32 %v3567_v9, %v3565_v6 }
 0x9be   : > { %5624 = vrcp.f32 %v3547_v5 }
 0x9bf   : > { %5626 = vtanh.f32 %v3569_v58  ;;  %3575 = vst [vmem:[#allocation6 + $0x8] sm:$0xff] %v3569_v58 }
 0x9c6   : > { %3580 = sbr.rel (%p4668_p11) target bundleno = 2511 (0x9cf), region = 126 }
 0x9c7   : > { %v5623_v60 = vpop.eup %5622 }
 0x9c8   : > { %v5625_v7 = vpop.eup %5624  ;;  %v3572_v8 = vmul.f32 %v5623_v60, %v5621_v59 }
 0x9c9   : > { %v5627_v10 = vpop.eup %5626 }
 0x9ca   : > { %3576 = vst [vmem:[#allocation5] sm:$0xff] %v3572_v8  ;;  %v3573_v11 = vmul.f32 %v5627_v10, %v5625_v7 }
 0x9cc   : > { %3577 = vst [vmem:[#allocation5 + $0x8] sm:$0xff] %v3573_v11  ;;  %v3581_v12 = vpack.c.bf16 (!%p4668_p11), %v3573_v11, %v3572_v8 }
 0x9ce   : > { %3583 = vst [vmem:[#allocation3 + $0x28] sm:$0xff] %v3581_v12 }
 0x9cf PF: > { %v5628_v13 = vld [vmem:[%s6356_s12 + $0x4] ss:$16 sps:$4 sm:$0xff]   ;;  %3822 = vmatprep.mubr.bf16.mxu0 %v5921_v3  ;;  %3865 = vmatprep.mubr.bf16.mxu1 %v5921_v3  ;;  %v5630_v14 = vld [vmem:[%s6356_s12] ss:$16 sps:$4 sm:$0xff]   ;;  %v5639_v18 = vld [vmem:[%s6356_s12 + $0xc] ss:$16 sps:$4 sm:$0xff]  }
 0x9d0   : > { %3790 = vmatprep.subr.bf16.mxu0 %v5628_v13  ;;  %v5631_v15 = vld [vmem:[%s6356_s12 + $0x24] ss:$16 sps:$4 sm:$0xff]   ;;  %v5633_v16 = vld [vmem:[%s6356_s12 + $0x20] ss:$16 sps:$4 sm:$0xff]   ;;  %v5642_v19 = vld [vmem:[%s6356_s12 + $0x8] ss:$16 sps:$4 sm:$0xff]   ;;  %3833 = vmatprep.subr.bf16.mxu1 %v5639_v18 }
 0x9d1   : > { %3791 = vmatpush1.bf16.msra.mxu0 %v5630_v14  ;;  %v5634_v17 = vld [vmem:[%s6356_s12 + $0x44] ss:$16 sps:$4 sm:$0xff]   ;;  %v5636_v20 = vld [vmem:[%s6356_s12 + $0x40] ss:$16 sps:$4 sm:$0xff]   ;;  %3834 = vmatpush1.bf16.msra.mxu1 %v5642_v19  ;;  %v5645_v22 = vld [vmem:[%s6356_s12 + $0x2c] ss:$16 sps:$4 sm:$0xff]  }
 0x9d2   : > { %3792 = vmatprep.subr.bf16.mxu0 %v5631_v15  ;;  %v5637_v21 = vld [vmem:[%s6356_s12 + $0x64] ss:$16 sps:$4 sm:$0xff]   ;;  %v5648_v23 = vld [vmem:[%s6356_s12 + $0x28] ss:$16 sps:$4 sm:$0xff]   ;;  %3835 = vmatprep.subr.bf16.mxu1 %v5645_v22  ;;  %v5641_v24 = vld [vmem:[%s6356_s12 + $0x60] ss:$16 sps:$4 sm:$0xff]  }
 0x9d3   : > { %v5643_v25 = vld [vmem:[%s6356_s12 + $0x84] ss:$16 sps:$4 sm:$0xff]   ;;  %v5651_v26 = vld [vmem:[%s6356_s12 + $0x4c] ss:$16 sps:$4 sm:$0xff]   ;;  %v5654_v27 = vld [vmem:[%s6356_s12 + $0x48] ss:$16 sps:$4 sm:$0xff]  }
 0x9d4   : > { %v5657_v28 = vld [vmem:[%s6356_s12 + $0x6c] ss:$16 sps:$4 sm:$0xff]   ;;  %v5647_v29 = vld [vmem:[%s6356_s12 + $0x80] ss:$16 sps:$4 sm:$0xff]   ;;  %v5649_v30 = vld [vmem:[%s6356_s12 + $0xa4] ss:$16 sps:$4 sm:$0xff]  }
 0x9d5   : > { %3793 = vmatpush1.bf16.msra.mxu0 %v5633_v16  ;;  %3836 = vmatpush1.bf16.msra.mxu1 %v5648_v23  ;;  %v5660_v31 = vld [vmem:[%s6356_s12 + $0x68] ss:$16 sps:$4 sm:$0xff]   ;;  %v5663_v32 = vld [vmem:[%s6356_s12 + $0x8c] ss:$16 sps:$4 sm:$0xff]   ;;  %v5653_v33 = vld [vmem:[%s6356_s12 + $0xa0] ss:$16 sps:$4 sm:$0xff]  }
 0x9d6   : > { %3794 = vmatprep.subr.bf16.mxu0 %v5634_v17  ;;  %3837 = vmatprep.subr.bf16.mxu1 %v5651_v26  ;;  %v5655_v34 = vld [vmem:[%s6356_s12 + $0xc4] ss:$16 sps:$4 sm:$0xff]   ;;  %v5666_v35 = vld [vmem:[%s6356_s12 + $0x88] ss:$16 sps:$4 sm:$0xff]   ;;  %v5667_v36 = vld [vmem:[%s6356_s12 + $0xac] ss:$16 sps:$4 sm:$0xff]  }
 0x9d7   : > { %v5659_v37 = vld [vmem:[%s6356_s12 + $0xc0] ss:$16 sps:$4 sm:$0xff]   ;;  %v5661_v38 = vld [vmem:[%s6356_s12 + $0xe4] ss:$16 sps:$4 sm:$0xff]   ;;  %v5669_v39 = vld [vmem:[%s6356_s12 + $0xa8] ss:$16 sps:$4 sm:$0xff]  }
 0x9d8   : > { %v5670_v40 = vld [vmem:[%s6356_s12 + $0xcc] ss:$16 sps:$4 sm:$0xff]   ;;  %v5665_v41 = vld [vmem:[%s6356_s12 + $0xe0] ss:$16 sps:$4 sm:$0xff]   ;;  %v5672_v44 = vld [vmem:[%s6356_s12 + $0xc8] ss:$16 sps:$4 sm:$0xff]  }
 0x9d9   : > { %3795 = vmatpush1.bf16.msra.mxu0 %v5636_v20  ;;  %3838 = vmatpush1.bf16.msra.mxu1 %v5654_v27  ;;  %v3595_v42 = vld [vmem:[#allocation5] sm:$0xff]  ;;  %v3596_v43 = vld [vmem:[#allocation5 + $0x8] sm:$0xff]  ;;  %v3589_v54 = vld [vmem:[#allocation4 + $0x190] sm:$0xff] }
 0x9da   : > { %3796 = vmatprep.subr.bf16.mxu0 %v5637_v21  ;;  %3839 = vmatprep.subr.bf16.mxu1 %v5657_v28  ;;  %v5673_v45 = vld [vmem:[%s6356_s12 + $0xec] ss:$16 sps:$4 sm:$0xff]   ;;  %v3597_v46 = vpack.c.bf16 %v3596_v43, %v3595_v42  ;;  %v5675_v47 = vld [vmem:[%s6356_s12 + $0xe8] ss:$16 sps:$4 sm:$0xff]   ;;  %v3587_v48 = vld [vmem:[#allocation4 + $0x180] sm:$0xff] }
 0x9db   : > { %v3588_v49 = vld [vmem:[#allocation4 + $0x188] sm:$0xff]  ;;  %v3591_v55 = vld [vmem:[#allocation4 + $0x1a0] sm:$0xff]  ;;  %v3593_v57 = vld [vmem:[#allocation4 + $0x1b0] sm:$0xff] }
 0x9dc   : > { %v3592_v62 = vld [vmem:[#allocation4 + $0x1a8] sm:$0xff]  ;;  %v3590_v59 = vld [vmem:[#allocation4 + $0x198] sm:$0xff]  ;;  %v3922_v27 = vld [vmem:[#allocation6] sm:$0xff] }
 0x9dd   : > { %3797 = vmatpush1.bf16.msra.mxu0 %v5641_v24  ;;  %3840 = vmatpush1.bf16.msra.mxu1 %v5660_v31  ;;  %v3594_v10 = vld [vmem:[#allocation4 + $0x1b8] sm:$0xff] }
 0x9de   : > { %3798 = vmatprep.subr.bf16.mxu0 %v5643_v25  ;;  %3841 = vmatprep.subr.bf16.mxu1 %v5663_v32  ;;  %v3923_v31 = vld [vmem:[#allocation6 + $0x8] sm:$0xff] }
 0x9e1   : > { %3799 = vmatpush1.bf16.msra.mxu0 %v5647_v29  ;;  %3842 = vmatpush1.bf16.msra.mxu1 %v5666_v35 }
 0x9e2   : > { %3800 = vmatprep.subr.bf16.mxu0 %v5649_v30  ;;  %3843 = vmatprep.subr.bf16.mxu1 %v5667_v36 }
 0x9e5   : > { %3801 = vmatpush1.bf16.msra.mxu0 %v5653_v33  ;;  %3844 = vmatpush1.bf16.msra.mxu1 %v5669_v39 }
 0x9e6   : > { %3802 = vmatprep.subr.bf16.mxu0 %v5655_v34  ;;  %3845 = vmatprep.subr.bf16.mxu1 %v5670_v40 }
 0x9e9   : > { %3803 = vmatpush1.bf16.msra.mxu0 %v5659_v37  ;;  %3846 = vmatpush1.bf16.msra.mxu1 %v5672_v44 }
 0x9ea   : > { %3804 = vmatprep.subr.bf16.mxu0 %v5661_v38  ;;  %3847 = vmatprep.subr.bf16.mxu1 %v5673_v45 }
 0x9ed   : > { %3805 = vmatpush1.bf16.msra.mxu0 %v5665_v41  ;;  %3848 = vmatpush1.bf16.msra.mxu1 %v5675_v47 }
 0x9f0   : > { %3823 = vmatmul.mubr.bf16.vlgmr.msra.gmra.mrb[24].mxu0 %v3597_v46  ;;  %3866 = vmatmul.mubr.bf16.vlgmr.msra.gmra.mrb[24].mxu1 %v3597_v46 }
 0xac3   : > { %v3824_v50 = vpop.f32.mrb[24].mxu0  ;;  %v3867_v5 = vpop.f32.mrb[24].mxu1 }
 0xac4   : > { %v3876_v56 = vadd.f32 %v3824_v50, %v3587_v48  ;;  %v3826_v61 = vpop.f32.mrb[25].mxu0  ;;  %v3869_v6 = vpop.f32.mrb[25].mxu1  ;;  %v3878_v58 = vadd.f32 %v3867_v5, %v3589_v54 }
 0xac5   : > { %v3877_v63 = vadd.f32 %v3826_v61, %v3588_v49  ;;  %v3828_v0 = vpop.f32.mrb[26].mxu0  ;;  %v3871_v60 = vpop.f32.mrb[26].mxu1  ;;  %v3879_v11 = vadd.f32 %v3869_v6, %v3590_v59 }
 0xac6   : > { %v4896_v1 = vmul.f32 -1.442695, %v3876_v56  ;;  %v3880_v2 = vadd.f32 %v3828_v0, %v3591_v55  ;;  %v3830_v51 = vpop.f32.mrb[27].mxu0  ;;  %v3873_v7 = vpop.f32.mrb[27].mxu1  ;;  %v3882_v8 = vadd.f32 %v3871_v60, %v3593_v57  ;;  %v4898_v12 = vmul.f32 -1.442695, %v3878_v58 }
 0xac7   : > { %v4897_v52 = vmul.f32 -1.442695, %v3877_v63  ;;  %v3881_v53 = vadd.f32 %v3830_v51, %v3592_v62  ;;  %v3883_v13 = vadd.f32 %v3873_v7, %v3594_v10 }
 0xac8   : > { %5676 = vpow2.f32 %v4896_v1  ;;  %v4899_v4 = vmul.f32 -1.442695, %v3880_v2  ;;  %v4901_v14 = vmul.f32 -1.442695, %v3882_v8 }
 0xac9   : > { %5678 = vpow2.f32 %v4897_v52  ;;  %v4900_v9 = vmul.f32 -1.442695, %v3881_v53 }
 0xaca   : > { %5680 = vpow2.f32 %v4899_v4 }
 0xacb   : > { %5682 = vpow2.f32 %v4900_v9 }
 0xacc   : > { %5684 = vtanh.f32 %v3879_v11 }
 0xacd   : > { %5686 = vpow2.f32 %v4898_v12 }
 0xace   : > { %5688 = vtanh.f32 %v3883_v13 }
 0xacf   : > { %5690 = vpow2.f32 %v4901_v14 }
 0xad2   : > { %v5677_v15 = vpop.eup %5676 }
 0xad3   : > { %v5679_v16 = vpop.eup %5678  ;;  %v3902_v17 = vadd.f32 1.0, %v5677_v15 }
 0xad4   : > { %v5681_v18 = vpop.eup %5680  ;;  %v3903_v19 = vadd.f32 1.0, %v5679_v16 }
 0xad5   : > { %v5683_v20 = vpop.eup %5682  ;;  %5692 = vrcp.f32 %v3902_v17  ;;  %v3905_v21 = vadd.f32 1.0, %v5681_v18 }
 0xad6   : > { %5694 = vrcp.f32 %v3903_v19  ;;  %v3906_v22 = vadd.f32 1.0, %v5683_v20  ;;  %v5685_v23 = vpop.eup %5684 }
 0xad7   : > { %5696 = vrcp.f32 %v3905_v21  ;;  %v5687_v24 = vpop.eup %5686 }
 0xad8   : > { %5698 = vrcp.f32 %v3906_v22  ;;  %v5689_v25 = vpop.eup %5688  ;;  %v3904_v29 = vadd.f32 1.0, %v5687_v24 }
 0xad9   : > { %v5691_v26 = vpop.eup %5690 }
 0xada   : > { %v3907_v36 = vadd.f32 1.0, %v5691_v26  ;;  %5700 = vrcp.f32 %v3904_v29 }
 0xadf   : > { %v5693_v28 = vpop.eup %5692 }
 0xae0   : > { %v5695_v30 = vpop.eup %5694  ;;  %v3926_v32 = vmul.f32 %v5693_v28, %v5685_v23 }
 0xae1   : > { %v5697_v33 = vpop.eup %5696  ;;  %v3924_v34 = vmul.f32 %v5695_v30, %v3922_v27 }
 0xae2   : > { %v5699_v35 = vpop.eup %5698  ;;  %v3927_v37 = vmul.f32 %v5697_v33, %v5689_v25 }
 0xae3   : > { %v3925_v38 = vmul.f32 %v5699_v35, %v3923_v31  ;;  %v3928_v39 = vadd.f32 %v3926_v32, %v3924_v34 }
 0xae4   : > { %v5701_v41 = vpop.eup %5700 }
 0xae5   : > { %5702 = vtanh.f32 %v3928_v39  ;;  %3934 = vst [vmem:[#allocation6] sm:$0xff] %v3928_v39  ;;  %v3929_v40 = vadd.f32 %v3927_v37, %v3925_v38 }
 0xae6   : > { %5704 = vrcp.f32 %v3907_v36 }
 0xae7   : > { %5706 = vtanh.f32 %v3929_v40  ;;  %3935 = vst [vmem:[#allocation6 + $0x8] sm:$0xff] %v3929_v40 }
 0xaee   : > { %3940 = sbr.rel (%p4668_p11) target bundleno = 2807 (0xaf7), region = 130 }
 0xaef   : > { %v5703_v42 = vpop.eup %5702 }
 0xaf0   : > { %v5705_v43 = vpop.eup %5704  ;;  %v3932_v44 = vmul.f32 %v5703_v42, %v5701_v41 }
 0xaf1   : > { %v5707_v45 = vpop.eup %5706 }
 0xaf2   : > { %3936 = vst [vmem:[#allocation5] sm:$0xff] %v3932_v44  ;;  %v3933_v46 = vmul.f32 %v5707_v45, %v5705_v43 }
 0xaf4   : > { %3937 = vst [vmem:[#allocation5 + $0x8] sm:$0xff] %v3933_v46  ;;  %v3941_v47 = vpack.c.bf16 (!%p4668_p11), %v3933_v46, %v3932_v44 }
 0xaf6   : > { %3943 = vst [vmem:[#allocation3 + $0x30] sm:$0xff] %v3941_v47 }
 0xaf7 PF: > { %v5708_v48 = vld [vmem:[%s6356_s12 + $0x4] ss:$16 sps:$4 sm:$0xff]   ;;  %4182 = vmatprep.mubr.bf16.mxu0 %v5921_v3  ;;  %4225 = vmatprep.mubr.bf16.mxu1 %v5921_v3  ;;  %v5710_v49 = vld [vmem:[%s6356_s12] ss:$16 sps:$4 sm:$0xff]   ;;  %v5719_v61 = vld [vmem:[%s6356_s12 + $0xc] ss:$16 sps:$4 sm:$0xff]  }
 0xaf8   : > { %4150 = vmatprep.subr.bf16.mxu0 %v5708_v48  ;;  %v5711_v50 = vld [vmem:[%s6356_s12 + $0x24] ss:$16 sps:$4 sm:$0xff]   ;;  %v5713_v55 = vld [vmem:[%s6356_s12 + $0x20] ss:$16 sps:$4 sm:$0xff]   ;;  %v5722_v62 = vld [vmem:[%s6356_s12 + $0x8] ss:$16 sps:$4 sm:$0xff]   ;;  %4193 = vmatprep.subr.bf16.mxu1 %v5719_v61 }
 0xaf9   : > { %4151 = vmatpush1.bf16.msra.mxu0 %v5710_v49  ;;  %v5714_v56 = vld [vmem:[%s6356_s12 + $0x44] ss:$16 sps:$4 sm:$0xff]   ;;  %v5716_v63 = vld [vmem:[%s6356_s12 + $0x40] ss:$16 sps:$4 sm:$0xff]   ;;  %4194 = vmatpush1.bf16.msra.mxu1 %v5722_v62  ;;  %v5725_v0 = vld [vmem:[%s6356_s12 + $0x2c] ss:$16 sps:$4 sm:$0xff]  }
 0xafa   : > { %4152 = vmatprep.subr.bf16.mxu0 %v5711_v50  ;;  %v5717_v3 = vld [vmem:[%s6356_s12 + $0x64] ss:$16 sps:$4 sm:$0xff]   ;;  %v5728_v1 = vld [vmem:[%s6356_s12 + $0x28] ss:$16 sps:$4 sm:$0xff]   ;;  %4195 = vmatprep.subr.bf16.mxu1 %v5725_v0  ;;  %v5721_v2 = vld [vmem:[%s6356_s12 + $0x60] ss:$16 sps:$4 sm:$0xff]  }
 0xafb   : > { %v5723_v51 = vld [vmem:[%s6356_s12 + $0x84] ss:$16 sps:$4 sm:$0xff]   ;;  %v5731_v52 = vld [vmem:[%s6356_s12 + $0x4c] ss:$16 sps:$4 sm:$0xff]   ;;  %v5734_v53 = vld [vmem:[%s6356_s12 + $0x48] ss:$16 sps:$4 sm:$0xff]  }
 0xafc   : > { %v5737_v54 = vld [vmem:[%s6356_s12 + $0x6c] ss:$16 sps:$4 sm:$0xff]   ;;  %v5727_v4 = vld [vmem:[%s6356_s12 + $0x80] ss:$16 sps:$4 sm:$0xff]   ;;  %v5729_v5 = vld [vmem:[%s6356_s12 + $0xa4] ss:$16 sps:$4 sm:$0xff]  }
 0xafd   : > { %4153 = vmatpush1.bf16.msra.mxu0 %v5713_v55  ;;  %4196 = vmatpush1.bf16.msra.mxu1 %v5728_v1  ;;  %v5740_v9 = vld [vmem:[%s6356_s12 + $0x68] ss:$16 sps:$4 sm:$0xff]   ;;  %v5743_v6 = vld [vmem:[%s6356_s12 + $0x8c] ss:$16 sps:$4 sm:$0xff]   ;;  %v5733_v57 = vld [vmem:[%s6356_s12 + $0xa0] ss:$16 sps:$4 sm:$0xff]  }
 0xafe   : > { %4154 = vmatprep.subr.bf16.mxu0 %v5714_v56  ;;  %4197 = vmatprep.subr.bf16.mxu1 %v5731_v52  ;;  %v5735_v58 = vld [vmem:[%s6356_s12 + $0xc4] ss:$16 sps:$4 sm:$0xff]   ;;  %v5746_v59 = vld [vmem:[%s6356_s12 + $0x88] ss:$16 sps:$4 sm:$0xff]   ;;  %v5747_v60 = vld [vmem:[%s6356_s12 + $0xac] ss:$16 sps:$4 sm:$0xff]  }
 0xaff   : > { %v5739_v7 = vld [vmem:[%s6356_s12 + $0xc0] ss:$16 sps:$4 sm:$0xff]   ;;  %v5741_v8 = vld [vmem:[%s6356_s12 + $0xe4] ss:$16 sps:$4 sm:$0xff]   ;;  %v5749_v10 = vld [vmem:[%s6356_s12 + $0xa8] ss:$16 sps:$4 sm:$0xff]  }
 0xb00   : > { %v5750_v11 = vld [vmem:[%s6356_s12 + $0xcc] ss:$16 sps:$4 sm:$0xff]   ;;  %v5745_v12 = vld [vmem:[%s6356_s12 + $0xe0] ss:$16 sps:$4 sm:$0xff]   ;;  %v5752_v15 = vld [vmem:[%s6356_s12 + $0xc8] ss:$16 sps:$4 sm:$0xff]  }
 0xb01   : > { %4155 = vmatpush1.bf16.msra.mxu0 %v5716_v63  ;;  %4198 = vmatpush1.bf16.msra.mxu1 %v5734_v53  ;;  %v3955_v13 = vld [vmem:[#allocation5] sm:$0xff]  ;;  %v3956_v14 = vld [vmem:[#allocation5 + $0x8] sm:$0xff]  ;;  %v3949_v33 = vld [vmem:[#allocation4 + $0x1d0] sm:$0xff] }
 0xb02   : > { %4156 = vmatprep.subr.bf16.mxu0 %v5717_v3  ;;  %4199 = vmatprep.subr.bf16.mxu1 %v5737_v54  ;;  %v5753_v16 = vld [vmem:[%s6356_s12 + $0xec] ss:$16 sps:$4 sm:$0xff]   ;;  %v3957_v17 = vpack.c.bf16 %v3956_v14, %v3955_v13  ;;  %v5755_v18 = vld [vmem:[%s6356_s12 + $0xe8] ss:$16 sps:$4 sm:$0xff]   ;;  %v3947_v19 = vld [vmem:[#allocation4 + $0x1c0] sm:$0xff] }
 0xb03   : > { %v3948_v20 = vld [vmem:[#allocation4 + $0x1c8] sm:$0xff]  ;;  %v3951_v22 = vld [vmem:[#allocation4 + $0x1e0] sm:$0xff]  ;;  %v3953_v38 = vld [vmem:[#allocation4 + $0x1f0] sm:$0xff] }
 0xb04   : > { %v3952_v25 = vld [vmem:[#allocation4 + $0x1e8] sm:$0xff]  ;;  %v3950_v40 = vld [vmem:[#allocation4 + $0x1d8] sm:$0xff]  ;;  %v4282_v52 = vld [vmem:[#allocation6] sm:$0xff] }
 0xb05   : > { %4157 = vmatpush1.bf16.msra.mxu0 %v5721_v2  ;;  %4200 = vmatpush1.bf16.msra.mxu1 %v5740_v9  ;;  %v3954_v44 = vld [vmem:[#allocation4 + $0x1f8] sm:$0xff] }
 0xb06   : > { %4158 = vmatprep.subr.bf16.mxu0 %v5723_v51  ;;  %4201 = vmatprep.subr.bf16.mxu1 %v5743_v6 }
 0xb09   : > { %4159 = vmatpush1.bf16.msra.mxu0 %v5727_v4  ;;  %4202 = vmatpush1.bf16.msra.mxu1 %v5746_v59 }
 0xb0a   : > { %4160 = vmatprep.subr.bf16.mxu0 %v5729_v5  ;;  %4203 = vmatprep.subr.bf16.mxu1 %v5747_v60  ;;  %v4283_v5 = vld [vmem:[#allocation6 + $0x8] sm:$0xff] }
 0xb0d   : > { %4161 = vmatpush1.bf16.msra.mxu0 %v5733_v57  ;;  %4204 = vmatpush1.bf16.msra.mxu1 %v5749_v10 }
 0xb0e   : > { %4162 = vmatprep.subr.bf16.mxu0 %v5735_v58  ;;  %4205 = vmatprep.subr.bf16.mxu1 %v5750_v11 }
 0xb11   : > { %4163 = vmatpush1.bf16.msra.mxu0 %v5739_v7  ;;  %4206 = vmatpush1.bf16.msra.mxu1 %v5752_v15 }
 0xb12   : > { %4164 = vmatprep.subr.bf16.mxu0 %v5741_v8  ;;  %4207 = vmatprep.subr.bf16.mxu1 %v5753_v16 }
 0xb15   : > { %4165 = vmatpush1.bf16.msra.mxu0 %v5745_v12  ;;  %4208 = vmatpush1.bf16.msra.mxu1 %v5755_v18 }
 0xb18   : > { %4183 = vmatmul.mubr.bf16.vlgmr.msra.gmra.mrb[28].mxu0 %v3957_v17  ;;  %4226 = vmatmul.mubr.bf16.vlgmr.msra.gmra.mrb[28].mxu1 %v3957_v17 }
 0xbeb   : > { %v4184_v21 = vpop.f32.mrb[28].mxu0  ;;  %v4227_v35 = vpop.f32.mrb[28].mxu1 }
 0xbec   : > { %v4236_v23 = vadd.f32 %v4184_v21, %v3947_v19  ;;  %v4186_v24 = vpop.f32.mrb[29].mxu0  ;;  %v4229_v37 = vpop.f32.mrb[29].mxu1  ;;  %v4238_v39 = vadd.f32 %v4227_v35, %v3949_v33 }
 0xbed   : > { %v4237_v26 = vadd.f32 %v4186_v24, %v3948_v20  ;;  %v4188_v27 = vpop.f32.mrb[30].mxu0  ;;  %v4231_v41 = vpop.f32.mrb[30].mxu1  ;;  %v4239_v45 = vadd.f32 %v4229_v37, %v3950_v40 }
 0xbee   : > { %v4935_v28 = vmul.f32 -1.442695, %v4236_v23  ;;  %v4240_v29 = vadd.f32 %v4188_v27, %v3951_v22  ;;  %v4190_v30 = vpop.f32.mrb[31].mxu0  ;;  %v4233_v42 = vpop.f32.mrb[31].mxu1  ;;  %v4242_v43 = vadd.f32 %v4231_v41, %v3953_v38  ;;  %v4937_v46 = vmul.f32 -1.442695, %v4238_v39 }
 0xbef   : > { %v4936_v31 = vmul.f32 -1.442695, %v4237_v26  ;;  %v4241_v32 = vadd.f32 %v4190_v30, %v3952_v25  ;;  %v4243_v47 = vadd.f32 %v4233_v42, %v3954_v44 }
 0xbf0   : > { %5756 = vpow2.f32 %v4935_v28  ;;  %v4938_v34 = vmul.f32 -1.442695, %v4240_v29  ;;  %v4940_v48 = vmul.f32 -1.442695, %v4242_v43 }
 0xbf1   : > { %5758 = vpow2.f32 %v4936_v31  ;;  %v4939_v36 = vmul.f32 -1.442695, %v4241_v32 }
 0xbf2   : > { %5760 = vpow2.f32 %v4938_v34 }
 0xbf3   : > { %5762 = vpow2.f32 %v4939_v36 }
 0xbf4   : > { %5764 = vtanh.f32 %v4239_v45 }
 0xbf5   : > { %5766 = vpow2.f32 %v4937_v46 }
 0xbf6   : > { %5768 = vtanh.f32 %v4243_v47 }
 0xbf7   : > { %5770 = vpow2.f32 %v4940_v48 }
 0xbfa   : > { %v5757_v49 = vpop.eup %5756 }
 0xbfb   : > { %v5759_v50 = vpop.eup %5758  ;;  %v4262_v55 = vadd.f32 1.0, %v5757_v49 }
 0xbfc   : > { %v5761_v56 = vpop.eup %5760  ;;  %v4263_v61 = vadd.f32 1.0, %v5759_v50 }
 0xbfd   : > { %v5763_v62 = vpop.eup %5762  ;;  %5772 = vrcp.f32 %v4262_v55  ;;  %v4265_v63 = vadd.f32 1.0, %v5761_v56 }
 0xbfe   : > { %5774 = vrcp.f32 %v4263_v61  ;;  %v4266_v3 = vadd.f32 1.0, %v5763_v62  ;;  %v5765_v0 = vpop.eup %5764 }
 0xbff   : > { %5776 = vrcp.f32 %v4265_v63  ;;  %v5767_v1 = vpop.eup %5766 }
 0xc00   : > { %5778 = vrcp.f32 %v4266_v3  ;;  %v5769_v2 = vpop.eup %5768  ;;  %v4264_v54 = vadd.f32 1.0, %v5767_v1 }
 0xc01   : > { %v5771_v51 = vpop.eup %5770 }
 0xc02   : > { %v4267_v59 = vadd.f32 1.0, %v5771_v51  ;;  %5780 = vrcp.f32 %v4264_v54 }
 0xc07   : > { %v5773_v53 = vpop.eup %5772 }
 0xc08   : > { %v5775_v4 = vpop.eup %5774  ;;  %v4286_v9 = vmul.f32 %v5773_v53, %v5765_v0 }
 0xc09   : > { %v5777_v6 = vpop.eup %5776  ;;  %v4284_v57 = vmul.f32 %v5775_v4, %v4282_v52 }
 0xc0a   : > { %v5779_v58 = vpop.eup %5778  ;;  %v4287_v60 = vmul.f32 %v5777_v6, %v5769_v2 }
 0xc0b   : > { %v4285_v7 = vmul.f32 %v5779_v58, %v4283_v5  ;;  %v4288_v8 = vadd.f32 %v4286_v9, %v4284_v57 }
 0xc0c   : > { %v5781_v11 = vpop.eup %5780 }
 0xc0d   : > { %5782 = vtanh.f32 %v4288_v8  ;;  %4294 = vst [vmem:[#allocation6] sm:$0xff] %v4288_v8  ;;  %v4289_v10 = vadd.f32 %v4287_v60, %v4285_v7 }
 0xc0e   : > { %5784 = vrcp.f32 %v4267_v59 }
 0xc0f   : > { %5786 = vtanh.f32 %v4289_v10  ;;  %4295 = vst [vmem:[#allocation6 + $0x8] sm:$0xff] %v4289_v10 }
 0xc16   : > { %4300 = sbr.rel (%p4668_p11) target bundleno = 3103 (0xc1f), region = 134 }
 0xc17   : > { %v5783_v12 = vpop.eup %5782 }
 0xc18   : > { %v5785_v13 = vpop.eup %5784  ;;  %v4292_v14 = vmul.f32 %v5783_v12, %v5781_v11 }
 0xc19   : > { %v5787_v15 = vpop.eup %5786 }
 0xc1a   : > { %4296 = vst [vmem:[#allocation5] sm:$0xff] %v4292_v14  ;;  %v4293_v16 = vmul.f32 %v5787_v15, %v5785_v13 }
 0xc1c   : > { %4297 = vst [vmem:[#allocation5 + $0x8] sm:$0xff] %v4293_v16  ;;  %v4301_v17 = vpack.c.bf16 (!%p4668_p11), %v4293_v16, %v4292_v14 }
 0xc1e   : > { %4303 = vst [vmem:[#allocation3 + $0x38] sm:$0xff] %v4301_v17 }
 0xc1f PF: > { %p4942_p12 = scmp.ne.s32.totalorder %s5904_s26, 1 }
 0xc20   : > { %v5788_v18 = vld [vmem:[%s6690_s5] sm:$0xff] (!%p4942_p12)   ;;  %v5923_v19 = vmov (!%p4942_p12), 0.0   ;;  %v5789_v20 = vld [vmem:[%s6690_s5 + $0x8] sm:$0xff] (!%p4942_p12)   ;;  %vm5924_vm0 = vmmov (!%p4942_p12), 0   ;;  %v5790_v21 = vld [vmem:[%s6690_s5 + $0x10] sm:$0xff] (!%p4942_p12)   ;;  %vm4423_vm1 = vcmask (!%p4942_p12), 7168  }
 0xc21   : > { %4307 = sbr.rel (%p4942_p12) target bundleno = 3354 (0xd1a), region = 138  ;;  %4969 = vmatprep.subr.bf16.mxu0 (!%p4942_p12), %v5923_v19  ;;  %4985 = vmatprep.mubr.msk.bf16.mxu0 (!%p4942_p12), %vm5924_vm0, %v5923_v19  ;;  %v5791_v22 = vld [vmem:[%s6690_s5 + $0x18] sm:$0xff] (!%p4942_p12)   ;;  %v5792_v23 = vld [vmem:[%s6690_s5 + $0x20] sm:$0xff] (!%p4942_p12)   ;;  %v5793_v24 = vld [vmem:[%s6690_s5 + $0x28] sm:$0xff] (!%p4942_p12)  }
 0xc22   : > { %4970 = vmatpush3.bf16.msra.mxu0 (!%p4942_p12), %v5788_v18  ;;  %v5794_v25 = vld [vmem:[%s6690_s5 + $0x30] sm:$0xff] (!%p4942_p12)   ;;  %v5795_v26 = vld [vmem:[%s6690_s5 + $0x38] sm:$0xff] (!%p4942_p12)   ;;  %v4943_v30 = vld [vmem:[#allocation8] ss:$0 sm:$0xff] (!%p4942_p12) }
 0xc23   : > { %4971 = vmatprep.subr.bf16.mxu0 (!%p4942_p12), %v5923_v19  ;;  %v4308_v27 = vld [vmem:[#allocation5] sm:$0xff] (!%p4942_p12) }
 0xc25   : > { %v4309_v28 = vld [vmem:[#allocation5 + $0x8] sm:$0xff] (!%p4942_p12) }
 0xc26   : > { %4972 = vmatpush3.bf16.msra.mxu0 (!%p4942_p12), %v5789_v20  ;;  %v4310_v29 = vpack.c.bf16 (!%p4942_p12), %v4309_v28, %v4308_v27 }
 0xc27   : > { %4973 = vmatprep.subr.bf16.mxu0 (!%p4942_p12), %v5923_v19 }
 0xc2a   : > { %4974 = vmatpush3.bf16.msra.mxu0 %v5790_v21 }
 0xc2b   : > { %4975 = vmatprep.subr.bf16.mxu0 %v5923_v19 }
 0xc2e   : > { %4976 = vmatpush3.bf16.msra.mxu0 %v5791_v22 }
 0xc2f   : > { %4977 = vmatprep.subr.bf16.mxu0 %v5923_v19 }
 0xc32   : > { %4978 = vmatpush3.bf16.msra.mxu0 %v5792_v23 }
 0xc33   : > { %4979 = vmatprep.subr.bf16.mxu0 %v5923_v19 }
 0xc36   : > { %4980 = vmatpush3.bf16.msra.mxu0 %v5793_v24 }
 0xc37   : > { %4981 = vmatprep.subr.bf16.mxu0 %v5923_v19 }
 0xc3a   : > { %4982 = vmatpush3.bf16.msra.mxu0 %v5794_v25 }
 0xc3b   : > { %4983 = vmatprep.subr.bf16.mxu0 %v5923_v19 }
 0xc3e   : > { %4984 = vmatpush3.bf16.msra.mxu0 %v5795_v26 }
 0xc41   : > { %4986 = vmatmul.mubr.bf16.vlgmr.msra.gmra.mrb[0].mxu0 %v4310_v29 }
 0xd14   : > { %v4416_v31 = vpop.f32.mrb[0].mxu0 }
 0xd15   : > { %v4417_v32 = vadd.f32 %v4943_v30, %v4416_v31  ;;  %v4987_v33 = vpop.f32.mrb[1].mxu0 }
 0xd16   : > { %v4419_v34 = vpop.f32.mrb[2].mxu0 }
 0xd17   : > { %4424 = vst.msk [vmem:[%s6692_s7] sm:$0xff] %vm4423_vm1, %v4417_v32  ;;  %v4420_v35 = vadd.f32 %v4943_v30, %v4419_v34  ;;  %v4988_v36 = vpop.f32.mrb[3].mxu0 }
 0xd19   : > { %4425 = vst.msk [vmem:[%s6692_s7 + $0x8] sm:$0xff] %vm4423_vm1, %v4420_v35 }
 0xd1a PF: > { %s21_s28 = sadd.s32 1, %s5912_s28   ;;  %s6703_s26 = smov %s5908_s27 }
 0xd1b   : > { %p18_p13 = scmp.ge.s32.totalorder %s21_s28, 4   ;;  %s6704_s27 = smov %s6706_s11 }
 0xd1d   :  { %20 = sbr.rel (!%p18_p13) target bundleno = 6 (0x6), region = 197 }
 0xd24   :  { %4448 = vsyncpa [#allocation10], 1 }
 0xd25   :  { %4450 = vsyncpa [#allocation10 + $0x1], 1 }
 0xd26   :  { %4451 = vsyncpa [#allocation12], 1 }
 0xd27   :  { %4452 = vsyncmov [#allocation7] }
 0xd2a   :  { %s4453_s12 = vpop.sfrf %4452 }
 0xd2b   :  { %p4956_p6 = scmp.ne.s32.totalorder %s4453_s12, 0 }
 0xd2d   :  { %4457 = shalt.err (%p4956_p6)  }
 0xd2e   :  { %4459 = vsyncmov [#allocation7 + $0x1] }
 0xd31   :  { %s4460_s29 = vpop.sfrf %4459 }
 0xd32   :  { %p4957_p0 = scmp.ne.s32.totalorder %s4460_s29, 0 }
 0xd34   :  { %4464 = shalt.err (%p4957_p0)  }

</bundles_post_ra>
